<compile_context>
chip_gen: v5e
topology: v5e:2x2
jax: 0.10.0
libtpu: 0.0.40
codegen_flags: <defaults>
</compile_context>

<pallas_src>
import functools

import jax
import jax.numpy as jnp
from jax.experimental import pallas as pl
from jax.experimental.pallas import tpu as pltpu


_VMEM_BUDGET = 44 * 1024 * 1024  # keeps double-buffered tiles safe on v7x (64 MiB VMEM)


def _round_up(x, m):
    return -(-x // m) * m


def _mxu_lane_tile():
    """N-tile width: 256 on v6e/v7x (2x256x256 MXU); 128 on v5-class and older."""
    try:
        kind = jax.devices()[0].device_kind.lower()
    except Exception:
        return 256
    return 128 if any(t in kind for t in ("v2", "v3", "v4", "v5")) else 256


# ----------------------------------------------------------------------------
# Kernel: fused (conv-as-matmul, BN scale pre-folded into W) + bias + ReLU
# ----------------------------------------------------------------------------
def _convbnr_matmul_kernel(x_ref, w_ref, b_ref, o_ref):
    # x: (tm, K) bf16 ; w: (K, tn) bf16 (scale folded) ; b: (1, tn) f32 ; o: (tm, tn)
    acc = jnp.dot(x_ref[...], w_ref[...], preferred_element_type=jnp.float32)
    o_ref[...] = jnp.maximum(acc + b_ref[...], 0.0).astype(o_ref.dtype)


def _pick_tiles(m, k, cout_pad, lane_tile, out_itemsize):
    """Choose (tm, tn) maximizing tile size under the VMEM budget; prefer whole-resident W."""
    def footprint(tm, tn):
        return ((2 * tm * k * 2)            # double-buffered x tile (bf16)
                + (2 * k * tn * 2)          # weights (counted 2x, conservative)
                + (2 * tn * 4)              # bias
                + (2 * tm * tn * out_itemsize))  # double-buffered out tile

    tm_cap = max(8, min(512, _round_up(m, 8)))
    for tn in (cout_pad, lane_tile):        # cout_pad first -> W loaded once for whole grid
        tm = tm_cap
        while tm > 128 and footprint(tm, tn) > _VMEM_BUDGET:
            tm = max(128, _round_up(tm // 2, 8))
        if footprint(tm, tn) <= _VMEM_BUDGET:
            return tm, tn, footprint(tm, tn)
    tm = max(8, min(128, tm_cap))
    return tm, lane_tile, footprint(tm, lane_tile)


def _fused_matmul_bias_relu(x2d, w2d, bias, *, out_dtype=jnp.bfloat16):
    # x2d: (M, K) bf16 ; w2d: (K, Cout) bf16 (BN scale folded) ; bias: (1, Cout) f32
    m, k = x2d.shape
    cout = w2d.shape[1]
    lane_tile = _mxu_lane_tile()
    cout_pad = _round_up(cout, lane_tile)   # lane-dense output tiles, no masked stores

    if cout_pad != cout:
        w2d = jnp.pad(w2d, ((0, 0), (0, cout_pad - cout)))
        bias = jnp.pad(bias, ((0, 0), (0, cout_pad - cout)))

    tm, tn, fp = _pick_tiles(m, k, cout_pad, lane_tile, jnp.dtype(out_dtype).itemsize)
    m_pad = _round_up(m, tm)
    if m_pad != m:
        x2d = jnp.pad(x2d, ((0, m_pad - m), (0, 0)))

    grid = (m_pad // tm, cout_pad // tn)
    vmem_limit = int(min(96 * 2**20, max(32 * 2**20, 2 * fp)))

    out = pl.pallas_call(
        _convbnr_matmul_kernel,
        out_shape=jax.ShapeDtypeStruct((m_pad, cout_pad), out_dtype),
        grid=grid,
        in_specs=[
            pl.BlockSpec((tm, k), lambda i, j: (i, 0)),
            # When grid[1] == 1 this block index is constant over the whole grid,
            # so the weights are DMA'd from HBM exactly once.
            pl.BlockSpec((k, tn), lambda i, j: (0, j)),
            pl.BlockSpec((1, tn), lambda i, j: (0, j)),
        ],
        out_specs=pl.BlockSpec((tm, tn), lambda i, j: (i, j)),
        compiler_params=pltpu.CompilerParams(
            dimension_semantics=("parallel", "parallel"),
            vmem_limit_bytes=vmem_limit),
    )(x2d, w2d, bias)

    if m_pad != m:
        out = out[:m]
    if cout_pad != cout:
        out = out[:, :cout]
    return out


# ----------------------------------------------------------------------------
# ConvBNR forward (NCHW in / NCHW out, like the PyTorch module)
# ----------------------------------------------------------------------------
def conv_bn_relu(x_nchw, weight_hwio, bn_scale, bn_bias, *, stride=1, dilation=1,
                 out_dtype=jnp.bfloat16):
    """Conv2d(padding=dilation, dilation=dilation, bias=False) + BN(eval, folded) + ReLU."""
    n, cin, h, w = x_nchw.shape
    kh, kw, _, cout = weight_hwio.shape
    pad = dilation                                  # ConvBNR uses padding=dilation

    # NCHW -> NHWC; cast to bf16 BEFORE the tap expansion (halves that HBM traffic).
    x = jnp.transpose(x_nchw, (0, 2, 3, 1)).astype(jnp.bfloat16)
    xp = jnp.pad(x, ((0, 0), (pad, pad), (pad, pad), (0, 0)))
    h_out = (h + 2 * pad - dilation * (kh - 1) - 1) // stride + 1
    w_out = (w + 2 * pad - dilation * (kw - 1) - 1) // stride + 1

    # Shifted-tap (im2col) extraction: channel order (dy, dx, cin) matches the
    # (kh, kw, cin, cout) -> (kh*kw*cin, cout) weight reshape below.
    taps = []
    for dy in range(kh):
        for dx in range(kw):
            y0, x0 = dy * dilation, dx * dilation
            taps.append(xp[:, y0:y0 + stride * (h_out - 1) + 1:stride,
                              x0:x0 + stride * (w_out - 1) + 1:stride, :])
    m = n * h_out * w_out
    x2d = jnp.concatenate(taps, axis=-1).reshape(m, kh * kw * cin)

    # Fold the BN scale into the f32 weights, then quantize to bf16 for the MXU.
    scale = bn_scale.reshape(1, cout).astype(jnp.float32)
    bias = bn_bias.reshape(1, cout).astype(jnp.float32)
    w2d = (weight_hwio.reshape(kh * kw * cin, cout).astype(jnp.float32) * scale
           ).astype(jnp.bfloat16)

    out2d = _fused_matmul_bias_relu(x2d, w2d, bias, out_dtype=out_dtype)

    out = out2d.reshape(n, h_out, w_out, cout)      # free reshape (rows are (n,h,w)-ordered)
    # TODO(synk): keep the surrounding network NHWC so this layout pass disappears.
    return jnp.transpose(out, (0, 3, 1, 2))         # NHWC -> NCHW


def fold_batchnorm(gamma, beta, running_mean, running_var, eps=1e-5, conv_bias=None):
    scale = gamma / jnp.sqrt(running_var + eps)
    shift = beta - running_mean * scale
    if conv_bias is not None:                       # ConvBNR default: bias=False
        shift = shift + conv_bias * scale
    return scale, shift


# ----------------------------------------------------------------------------
# Self-test
# ----------------------------------------------------------------------------
if __name__ == "__main__":
    key = jax.random.PRNGKey(0)
    k_x, k_w, k_g, k_b, k_m, k_v = jax.random.split(key, 6)

    N, CIN, H, W = 2, 64, 16, 16        # inplanes=64
    COUT, KS = 256, 3                   # planes=256, kernel_size=3

    x = jax.random.normal(k_x, (N, CIN, H, W), jnp.float32)
    weight = jax.random.normal(k_w, (KS, KS, CIN, COUT), jnp.float32) / jnp.sqrt(KS * KS * CIN)
    gamma = 1.0 + 0.1 * jax.random.normal(k_g, (COUT,), jnp.float32)
    beta = 0.1 * jax.random.normal(k_b, (COUT,), jnp.float32)
    r_mean = 0.1 * jax.random.normal(k_m, (COUT,), jnp.float32)
    r_var = 1.0 + 0.5 * jnp.abs(jax.random.normal(k_v, (COUT,), jnp.float32))
    scale, bias = fold_batchnorm(gamma, beta, r_mean, r_var)

    fwd = jax.jit(functools.partial(conv_bn_relu, stride=1, dilation=1))
    out = jax.block_until_ready(fwd(x, weight, scale, bias))

    assert out.shape == (N, COUT, H, W), out.shape
    assert out.dtype == jnp.bfloat16, out.dtype
    out_f32 = out.astype(jnp.float32)
    assert bool(jnp.all(jnp.isfinite(out_f32)))

    # Numerical sanity vs. plain-JAX conv on the SAME bf16-rounded operands
    # (scale folded into weights before the bf16 cast, like the kernel path).
    xb = x.astype(jnp.bfloat16).astype(jnp.float32)
    wb = (weight * scale[None, None, None, :]).astype(jnp.bfloat16).astype(jnp.float32)
    ref = jax.lax.conv_general_dilated(
        jnp.transpose(xb, (0, 2, 3, 1)), wb,
        window_strides=(1, 1), padding=((1, 1), (1, 1)),
        rhs_dilation=(1, 1), dimension_numbers=('NHWC', 'HWIO', 'NHWC'))
    ref = jnp.maximum(ref + bias[None, None, None, :], 0.0)
    ref = jnp.transpose(ref, (0, 3, 1, 2))
    max_err = float(jnp.max(jnp.abs(out_f32 - ref)))
    assert max_err < 0.1, max_err

    print("KERNEL_OK")
</pallas_src>

<mosaic_0001>
module attributes {stable_mosaic.version = 11 : i64} {
  func.func @_convbnr_matmul_kernel(%arg0: i32, %arg1: i32, %arg2: memref<512x576xbf16, #tpu.memory_space<vmem>>, %arg3: memref<576x256xbf16, #tpu.memory_space<vmem>>, %arg4: memref<1x256xf32, #tpu.memory_space<vmem>>, %arg5: memref<512x256xbf16, #tpu.memory_space<vmem>>) attributes {dimension_semantics = [#tpu.dimension_semantics<parallel>, #tpu.dimension_semantics<parallel>], iteration_bounds = array<i64: 1, 1>, scalar_prefetch = 0 : i64, scratch_operands = 0 : i64, tpu.core_type = #tpu.core_type<tc>, window_params = [{transform_indices = @transform_0, window_bounds = array<i64: 512, 576>}, {transform_indices = @transform_1, window_bounds = array<i64: 576, 256>}, {transform_indices = @transform_2, window_bounds = array<i64: 1, 256>}, {transform_indices = @transform_3, window_bounds = array<i64: 512, 256>}]} {
    %c0 = arith.constant 0 : index
    %c0_0 = arith.constant 0 : index
    %0 = vector.load %arg2[%c0, %c0_0] : memref<512x576xbf16, #tpu.memory_space<vmem>>, vector<512x576xbf16>
    %c0_1 = arith.constant 0 : index
    %c0_2 = arith.constant 0 : index
    %1 = vector.load %arg3[%c0_1, %c0_2] : memref<576x256xbf16, #tpu.memory_space<vmem>>, vector<576x256xbf16>
    %cst = arith.constant dense<0.000000e+00> : vector<512x256xf32>
    %2 = tpu.matmul %0, %1, %cst {dimension_numbers = #tpu.dot_dimension_numbers<[1], [0], [0], [1], [0, 0, 1, 1], [], []>} : vector<512x576xbf16>, vector<576x256xbf16>, vector<512x256xf32> -> vector<512x256xf32>
    %c0_3 = arith.constant 0 : index
    %c0_4 = arith.constant 0 : index
    %3 = vector.load %arg4[%c0_3, %c0_4] : memref<1x256xf32, #tpu.memory_space<vmem>>, vector<1x256xf32>
    %4 = vector.broadcast %3 : vector<1x256xf32> to vector<512x256xf32>
    %5 = arith.addf %2, %4 : vector<512x256xf32>
    %cst_5 = arith.constant 0.000000e+00 : f32
    %6 = vector.broadcast %cst_5 : f32 to vector<512x256xf32>
    %7 = arith.maximumf %5, %6 : vector<512x256xf32>
    %8 = arith.truncf %7 : vector<512x256xf32> to vector<512x256xbf16>
    %c0_6 = arith.constant 0 : index
    %c0_7 = arith.constant 0 : index
    %9 = vector.load %arg5[%c0_6, %c0_7] : memref<512x256xbf16, #tpu.memory_space<vmem>>, vector<512x256xbf16>
    tpu.vector_store %arg5[%c0_6, %c0_7], %8 {strides = array<i32>} : memref<512x256xbf16, #tpu.memory_space<vmem>>, vector<512x256xbf16>,
    return
  }
  func.func @transform_0(%arg0: i32, %arg1: i32) -> (i32, i32) {
    %c0_i32 = arith.constant 0 : i32
    %c0_i32_0 = arith.constant 0 : i32
    return %arg0, %c0_i32 : i32, i32
  }
  func.func @transform_1(%arg0: i32, %arg1: i32) -> (i32, i32) {
    %c0_i32 = arith.constant 0 : i32
    %c0_i32_0 = arith.constant 0 : i32
    return %c0_i32, %arg1 : i32, i32
  }
  func.func @transform_2(%arg0: i32, %arg1: i32) -> (i32, i32) {
    %c0_i32 = arith.constant 0 : i32
    %c0_i32_0 = arith.constant 0 : i32
    return %c0_i32, %arg1 : i32, i32
  }
  func.func @transform_3(%arg0: i32, %arg1: i32) -> (i32, i32) {
    %c0_i32 = arith.constant 0 : i32
    return %arg0, %arg1 : i32, i32
  }
}

</mosaic_0001>

<bundles_post_ra>
// kernel: conv_bn_relu.1
= control target key start
LH: loop header
LB: loop body
LE: loop exit
PB: predicated region body
PF: predicated region fallthrough
CT: control target
= control target key end

     0   :  { %s7613_s0 = inlined_call_operand.vmem [shape: bf16[512,576], index: 0, kind: input, shape index: {}]   ;;  %s7614_s1 = inlined_call_operand.vmem [shape: bf16[576,256], index: 1, kind: input, shape index: {}]   ;;  %s7615_s2 = inlined_call_operand.vmem [shape: f32[1,256], index: 2, kind: input, shape index: {}]   ;;  %s7616_s3 = inlined_call_operand.hbm [shape: bf16[512,256], index: 3, kind: output, shape index: {}]  }
   0x1   :  { %v4205_v0 = vld [vmem:[%s7614_s1 + $0x70] sm:$0xf]  ;;  %v4674_v1 = vld [vmem:[%s7614_s1 + $0x74] sm:$0xf0]  ;;  %v4197_v5 = vld [vmem:[%s7614_s1 + $0x60] sm:$0xf] }
   0x2   :  { %v4269_v2 = vld [vmem:[%s7614_s1 + $0xf0] sm:$0xf]  ;;  %v4206_v3 = vor.u32 %v4674_v1, %v4205_v0  ;;  %v4690_v4 = vld [vmem:[%s7614_s1 + $0xf4] sm:$0xf0]  ;;  %v4672_v6 = vld [vmem:[%s7614_s1 + $0x64] sm:$0xf0] }
   0x3   :  { %v4270_v7 = vor.u32 %v4690_v4, %v4269_v2  ;;  %v4261_v8 = vld [vmem:[%s7614_s1 + $0xe0] sm:$0xf]  ;;  %v4688_v9 = vld [vmem:[%s7614_s1 + $0xe4] sm:$0xf0]  ;;  %v4198_v10 = vor.u32 %v4672_v6, %v4197_v5  ;;  %v4189_v12 = vld [vmem:[%s7614_s1 + $0x50] sm:$0xf] }
   0x4   :  { %4731 = vmatpush.bf16.msra.mxu2 %v4206_v3  ;;  %1543 = vmatpush.bf16.msra.mxu0 %v4206_v3  ;;  %v4262_v11 = vor.u32 %v4688_v9, %v4261_v8  ;;  %v4670_v13 = vld [vmem:[%s7614_s1 + $0x54] sm:$0xf0]  ;;  %v4253_v14 = vld [vmem:[%s7614_s1 + $0xd0] sm:$0xf]  ;;  %v4181_v18 = vld [vmem:[%s7614_s1 + $0x40] sm:$0xf] }
   0x5   :  { %4739 = vmatpush.bf16.msra.mxu3 %v4270_v7  ;;  %1712 = vmatpush.bf16.msra.mxu1 %v4270_v7  ;;  %v4686_v15 = vld [vmem:[%s7614_s1 + $0xd4] sm:$0xf0]  ;;  %v4190_v16 = vor.u32 %v4670_v13, %v4189_v12  ;;  %v4668_v19 = vld [vmem:[%s7614_s1 + $0x44] sm:$0xf0]  ;;  %v4245_v20 = vld [vmem:[%s7614_s1 + $0xc0] sm:$0xf] }
   0x6   :  { %v4254_v17 = vor.u32 %v4686_v15, %v4253_v14  ;;  %v4684_v21 = vld [vmem:[%s7614_s1 + $0xc4] sm:$0xf0]  ;;  %v4182_v22 = vor.u32 %v4668_v19, %v4181_v18  ;;  %v4173_v24 = vld [vmem:[%s7614_s1 + $0x30] sm:$0xf]  ;;  %v4666_v25 = vld [vmem:[%s7614_s1 + $0x34] sm:$0xf0] }
   0x7   :  { %v4246_v23 = vor.u32 %v4684_v21, %v4245_v20  ;;  %v4237_v26 = vld [vmem:[%s7614_s1 + $0xb0] sm:$0xf]  ;;  %v4682_v27 = vld [vmem:[%s7614_s1 + $0xb4] sm:$0xf0]  ;;  %v4174_v28 = vor.u32 %v4666_v25, %v4173_v24  ;;  %v4165_v30 = vld [vmem:[%s7614_s1 + $0x20] sm:$0xf] }
   0x8   :  { %4732 = vmatpush.bf16.msra.mxu2 %v4198_v10  ;;  %1544 = vmatpush.bf16.msra.mxu0 %v4198_v10  ;;  %v4238_v29 = vor.u32 %v4682_v27, %v4237_v26  ;;  %v4664_v31 = vld [vmem:[%s7614_s1 + $0x24] sm:$0xf0]  ;;  %v4229_v32 = vld [vmem:[%s7614_s1 + $0xa0] sm:$0xf] }
   0x9   :  { %4740 = vmatpush.bf16.msra.mxu3 %v4262_v11  ;;  %1713 = vmatpush.bf16.msra.mxu1 %v4262_v11  ;;  %v4680_v33 = vld [vmem:[%s7614_s1 + $0xa4] sm:$0xf0] }
   0xc   :  { %4733 = vmatpush.bf16.msra.mxu2 %v4190_v16  ;;  %1545 = vmatpush.bf16.msra.mxu0 %v4190_v16 }
   0xd   :  { %4741 = vmatpush.bf16.msra.mxu3 %v4254_v17  ;;  %1714 = vmatpush.bf16.msra.mxu1 %v4254_v17 }
  0x10   :  { %4734 = vmatpush.bf16.msra.mxu2 %v4182_v22  ;;  %1546 = vmatpush.bf16.msra.mxu0 %v4182_v22 }
  0x11   :  { %4742 = vmatpush.bf16.msra.mxu3 %v4246_v23  ;;  %1715 = vmatpush.bf16.msra.mxu1 %v4246_v23 }
  0x12   :  { %8 = vsyncpa [#allocation3], 0  ;;  %v4166_v34 = vor.u32 %v4664_v31, %v4165_v30  ;;  %v4230_v35 = vor.u32 %v4680_v33, %v4229_v32  ;;  %v4157_v36 = vld [vmem:[%s7614_s1 + $0x10] sm:$0xf]  ;;  %v4662_v37 = vld [vmem:[%s7614_s1 + $0x14] sm:$0xf0] }
  0x13   :  { %v4221_v38 = vld [vmem:[%s7614_s1 + $0x90] sm:$0xf]  ;;  %v4678_v39 = vld [vmem:[%s7614_s1 + $0x94] sm:$0xf0]  ;;  %v4158_v40 = vor.u32 %v4662_v37, %v4157_v36  ;;  %v4149_v41 = vld [vmem:[%s7614_s1] sm:$0xf] }
  0x14   :  { %4735 = vmatpush.bf16.msra.mxu2 %v4174_v28  ;;  %1547 = vmatpush.bf16.msra.mxu0 %v4174_v28  ;;  %v4222_v42 = vor.u32 %v4678_v39, %v4221_v38  ;;  %v4660_v43 = vld [vmem:[%s7614_s1 + $0x4] sm:$0xf0]  ;;  %v4213_v44 = vld [vmem:[%s7614_s1 + $0x80] sm:$0xf]  ;;  %v4333_v47 = vld [vmem:[%s7614_s1 + $0x170] sm:$0xf] }
  0x15   :  { %4743 = vmatpush.bf16.msra.mxu3 %v4238_v29  ;;  %1716 = vmatpush.bf16.msra.mxu1 %v4238_v29  ;;  %v4676_v45 = vld [vmem:[%s7614_s1 + $0x84] sm:$0xf0]  ;;  %v3829_v46 = vld [vmem:[%s7613_s0 + $0x280] sm:$0xf]  ;;  %v4706_v48 = vld [vmem:[%s7614_s1 + $0x174] sm:$0xf0]  ;;  %v4150_v52 = vor.u32 %v4660_v43, %v4149_v41 }
  0x16   :  { %v4581_v49 = vld [vmem:[%s7613_s0 + $0x290] sm:$0xf0]  ;;  %v4397_v50 = vld [vmem:[%s7614_s1 + $0x1f0] sm:$0xf]  ;;  %v4722_v51 = vld [vmem:[%s7614_s1 + $0x1f4] sm:$0xf0]  ;;  %v4214_v56 = vor.u32 %v4676_v45, %v4213_v44  ;;  %v4334_v58 = vor.u32 %v4706_v48, %v4333_v47 }
  0x17   :  { %v4579_v53 = vld [vmem:[%s7613_s0 + $0x284] sm:$0xf]  ;;  %v3509_v54 = vld [vmem:[%s7613_s0] sm:$0xf]  ;;  %v4501_v55 = vld [vmem:[%s7613_s0 + $0x10] sm:$0xf0]  ;;  %v4398_v61 = vor.u32 %v4722_v51, %v4397_v50  ;;  %v4938_v0 = vor.u32 %v4581_v49, %v3829_v46 }
  0x18   :  { %4736 = vmatpush.bf16.msra.mxu2 %v4166_v34  ;;  %1548 = vmatpush.bf16.msra.mxu0 %v4166_v34  ;;  %v3831_v57 = vld [vmem:[%s7613_s0 + $0x294] sm:$0xf0]  ;;  %v4429_v59 = vld [vmem:[%s7614_s1 + $0x230] sm:$0xf]  ;;  %v4499_v62 = vld [vmem:[%s7613_s0 + $0x4] sm:$0xf]  ;;  %v4940_v1 = vor.u32 %v4501_v55, %v3509_v54 }
  0x19   :  { %4744 = vmatpush.bf16.msra.mxu3 %v4230_v35  ;;  %1717 = vmatpush.bf16.msra.mxu1 %v4230_v35  ;;  %v4730_v60 = vld [vmem:[%s7614_s1 + $0x234] sm:$0xf0]  ;;  %v4673_v2 = vld [vmem:[%s7614_s1 + $0x74] sm:$0xf]  ;;  %v4207_v3 = vld [vmem:[%s7614_s1 + $0x78] sm:$0xf0]  ;;  %v4948_v4 = vor.u32 %v4579_v53, %v3831_v57 }
  0x1a   :  { %v3511_v63 = vld [vmem:[%s7613_s0 + $0x14] sm:$0xf0]  ;;  %v4430_v5 = vor.u32 %v4730_v60, %v4429_v59  ;;  %v4210_v7 = vor.u32 %v4673_v2, %v4207_v3  ;;  %v4325_v8 = vld [vmem:[%s7614_s1 + $0x160] sm:$0xf]  ;;  %v4704_v9 = vld [vmem:[%s7614_s1 + $0x164] sm:$0xf0] }
  0x1b   :  { %7727 = vst [vmem:[#allocation5_spill] sm:$0xff] %v4948_v4  ;;  %v4950_v6 = vor.u32 %v4499_v62, %v3511_v63  ;;  %v4389_v10 = vld [vmem:[%s7614_s1 + $0x1e0] sm:$0xf]  ;;  %v4326_v11 = vor.u32 %v4704_v9, %v4325_v8  ;;  %v4720_v12 = vld [vmem:[%s7614_s1 + $0x1e4] sm:$0xf0]  ;;  %vm1446_vm0 = vcmask 523264  }
  0x1c   :  { %4737 = vmatpush.bf16.msra.mxu2 %v4158_v40  ;;  %1549 = vmatpush.bf16.msra.mxu0 %v4158_v40  ;;  %v4390_v13 = vor.u32 %v4720_v12, %v4389_v10  ;;  %v4671_v14 = vld [vmem:[%s7614_s1 + $0x64] sm:$0xf]  ;;  %v4199_v15 = vld [vmem:[%s7614_s1 + $0x68] sm:$0xf0]  ;;  %v3849_v17 = vld [vmem:[%s7613_s0 + $0x2a8] sm:$0xf] }
  0x1d   :  { %4745 = vmatpush.bf16.msra.mxu3 %v4222_v42  ;;  %1718 = vmatpush.bf16.msra.mxu1 %v4222_v42  ;;  %7728 = vst [vmem:[#allocation6_spill] sm:$0xff] %v4950_v6  ;;  %v4202_v16 = vor.u32 %v4671_v14, %v4199_v15  ;;  %v4586_v18 = vld [vmem:[%s7613_s0 + $0x2b8] sm:$0xf0]  ;;  %v3529_v19 = vld [vmem:[%s7613_s0 + $0x28] sm:$0xf]  ;;  %s3495_s26 = sshll.u32 %s7616_s3, 4  ;;  %s3496_s26 = int_to_ptr.hbm [resolvable:$true] %s3495_s26 }
  0x1e   :  { %v4506_v20 = vld [vmem:[%s7613_s0 + $0x38] sm:$0xf0]  ;;  %v4584_v21 = vld [vmem:[%s7613_s0 + $0x2ac] sm:$0xf]  ;;  %v3851_v22 = vld [vmem:[%s7613_s0 + $0x2bc] sm:$0xf0]  ;;  %v4998_v25 = vor.u32 %v4586_v18, %v3849_v17 }
  0x1f   :  { %v4504_v23 = vld [vmem:[%s7613_s0 + $0x2c] sm:$0xf]  ;;  %v3531_v24 = vld [vmem:[%s7613_s0 + $0x3c] sm:$0xf0]  ;;  %v5000_v26 = vor.u32 %v4506_v20, %v3529_v19  ;;  %v5002_v27 = vor.u32 %v4584_v21, %v3851_v22  ;;  %v3869_v29 = vld [vmem:[%s7613_s0 + $0x2d0] sm:$0xf] }
  0x20   :  { %4738 = vmatpush.bf16.msra.mxu2 %v4150_v52  ;;  %1550 = vmatpush.bf16.msra.mxu0 %v4150_v52  ;;  %v5004_v28 = vor.u32 %v4504_v23, %v3531_v24  ;;  %v4591_v30 = vld [vmem:[%s7613_s0 + $0x2e0] sm:$0xf0]  ;;  %v3549_v31 = vld [vmem:[%s7613_s0 + $0x50] sm:$0xf]  ;;  %v4589_v33 = vld [vmem:[%s7613_s0 + $0x2d4] sm:$0xf] }
  0x21   :  { %4746 = vmatpush.bf16.msra.mxu3 %v4214_v56  ;;  %1719 = vmatpush.bf16.msra.mxu1 %v4214_v56  ;;  %7729 = vst [vmem:[#allocation7_spill] sm:$0xff] %v5002_v27  ;;  %v4511_v32 = vld [vmem:[%s7613_s0 + $0x60] sm:$0xf0]  ;;  %v3871_v34 = vld [vmem:[%s7613_s0 + $0x2e4] sm:$0xf0]  ;;  %v5034_v37 = vor.u32 %v4591_v30, %v3869_v29  ;;  %s4778_s27 = smov 128  }
  0x22   :  { %7730 = vst [vmem:[#allocation8_spill] sm:$0xff] %v5004_v28  ;;  %v4509_v35 = vld [vmem:[%s7613_s0 + $0x54] sm:$0xf]  ;;  %v3551_v36 = vld [vmem:[%s7613_s0 + $0x64] sm:$0xf0]  ;;  %v5036_v38 = vor.u32 %v4511_v32, %v3549_v31  ;;  %v5038_v39 = vor.u32 %v4589_v33, %v3871_v34  ;;  %s4779_s28 = smov 8  }
  0x23   :  { %1631 = vmatmul.bf16.vlgmr.msra.gmra.mxu2 %v4938_v0  ;;  %1551 = vmatmul.bf16.vlgmr.msra.gmra.mxu0 %v4940_v1  ;;  %v5040_v40 = vor.u32 %v4509_v35, %v3551_v36  ;;  %v4317_v41 = vld [vmem:[%s7614_s1 + $0x150] sm:$0xf]  ;;  %v4702_v42 = vld [vmem:[%s7614_s1 + $0x154] sm:$0xf0]  ;;  %v4421_v47 = vld [vmem:[%s7614_s1 + $0x220] sm:$0xf] }
  0x24   :  { %1881 = vmatpush.bf16.msrb.mxu2 %v4334_v58  ;;  %1800 = vmatmul.bf16.vlgmr.msra.gmra.mxu3 %v4948_v4  ;;  %7731 = vst [vmem:[#allocation9_spill] sm:$0xff] %v5038_v39  ;;  %v4381_v43 = vld [vmem:[%s7614_s1 + $0x1d0] sm:$0xf]  ;;  %v4318_v44 = vor.u32 %v4702_v42, %v4317_v41  ;;  %v4718_v45 = vld [vmem:[%s7614_s1 + $0x1d4] sm:$0xf0] }
  0x25   :  { %2050 = vmatpush.bf16.msrb.mxu3 %v4398_v61  ;;  %2223 = vmatpush.bf16.msrb.mxu0 %v4430_v5  ;;  %7732 = vst [vmem:[#allocation10_spill] sm:$0xff] %v5040_v40  ;;  %v4382_v46 = vor.u32 %v4718_v45, %v4381_v43  ;;  %v4728_v48 = vld [vmem:[%s7614_s1 + $0x224] sm:$0xf0]  ;;  %v4669_v49 = vld [vmem:[%s7614_s1 + $0x54] sm:$0xf] }
  0x26   :  { %1720 = vmatmul.bf16.vlgmr.msra.gmra.mxu1 %v4950_v6  ;;  %v4422_v50 = vor.u32 %v4728_v48, %v4421_v47  ;;  %v4191_v51 = vld [vmem:[%s7614_s1 + $0x58] sm:$0xf0]  ;;  %v3889_v53 = vld [vmem:[%s7613_s0 + $0x2f8] sm:$0xf]  ;;  %v4596_v54 = vld [vmem:[%s7613_s0 + $0x308] sm:$0xf0] }
  0x27   :  { %2388 = vmatpush.bf16.msrb.mxu1 %v4210_v7  ;;  %v4194_v52 = vor.u32 %v4669_v49, %v4191_v51  ;;  %v3569_v55 = vld [vmem:[%s7613_s0 + $0x78] sm:$0xf]  ;;  %v4516_v56 = vld [vmem:[%s7613_s0 + $0x88] sm:$0xf0]  ;;  %v4594_v57 = vld [vmem:[%s7613_s0 + $0x2fc] sm:$0xf]  ;;  %v5094_v61 = vor.u32 %v4596_v54, %v3889_v53 }
  0x28   :  { %1882 = vmatpush.bf16.msrb.mxu2 %v4326_v11  ;;  %v3891_v58 = vld [vmem:[%s7613_s0 + $0x30c] sm:$0xf0]  ;;  %v4514_v59 = vld [vmem:[%s7613_s0 + $0x7c] sm:$0xf]  ;;  %v5096_v62 = vor.u32 %v4516_v56, %v3569_v55  ;;  %v3909_v3 = vld [vmem:[%s7613_s0 + $0x320] sm:$0xf] }
  0x29   :  { %2051 = vmatpush.bf16.msrb.mxu3 %v4390_v13  ;;  %2224 = vmatpush.bf16.msrb.mxu0 %v4422_v50  ;;  %v3571_v60 = vld [vmem:[%s7613_s0 + $0x8c] sm:$0xf0]  ;;  %v5098_v63 = vor.u32 %v4594_v57, %v3891_v58  ;;  %v4601_v5 = vld [vmem:[%s7613_s0 + $0x330] sm:$0xf0]  ;;  %v3589_v7 = vld [vmem:[%s7613_s0 + $0xa0] sm:$0xf] }
  0x2a   :  { %v5100_v2 = vor.u32 %v4514_v59, %v3571_v60  ;;  %v4521_v8 = vld [vmem:[%s7613_s0 + $0xb0] sm:$0xf0]  ;;  %v4599_v9 = vld [vmem:[%s7613_s0 + $0x324] sm:$0xf]  ;;  %v3911_v10 = vld [vmem:[%s7613_s0 + $0x334] sm:$0xf0]  ;;  %v5130_v13 = vor.u32 %v4601_v5, %v3909_v3 }
  0x2b   :  { %2389 = vmatpush.bf16.msrb.mxu1 %v4202_v16  ;;  %7733 = vst [vmem:[#allocation11_spill] sm:$0xff] %v5098_v63  ;;  %v4519_v11 = vld [vmem:[%s7613_s0 + $0xa4] sm:$0xf]  ;;  %v3591_v12 = vld [vmem:[%s7613_s0 + $0xb4] sm:$0xf0]  ;;  %v5132_v14 = vor.u32 %v4521_v8, %v3589_v7  ;;  %v5134_v15 = vor.u32 %v4599_v9, %v3911_v10 }
  0x2c   :  { %1883 = vmatpush.bf16.msrb.mxu2 %v4318_v44  ;;  %7734 = vst [vmem:[#allocation12_spill] sm:$0xff] %v5100_v2  ;;  %v5136_v16 = vor.u32 %v4519_v11, %v3591_v12  ;;  %v4309_v17 = vld [vmem:[%s7614_s1 + $0x140] sm:$0xf]  ;;  %v4700_v18 = vld [vmem:[%s7614_s1 + $0x144] sm:$0xf0] }
  0x2d   :  { %2052 = vmatpush.bf16.msrb.mxu3 %v4382_v46  ;;  %7735 = vst [vmem:[#allocation13_spill] sm:$0xff] %v5134_v15  ;;  %v4373_v19 = vld [vmem:[%s7614_s1 + $0x1c0] sm:$0xf]  ;;  %v4310_v20 = vor.u32 %v4700_v18, %v4309_v17  ;;  %v4716_v21 = vld [vmem:[%s7614_s1 + $0x1c4] sm:$0xf0] }
  0x2e   :  { %7736 = vst [vmem:[#allocation14_spill] sm:$0xff] %v5136_v16  ;;  %v4374_v22 = vor.u32 %v4716_v21, %v4373_v19  ;;  %v4667_v23 = vld [vmem:[%s7614_s1 + $0x44] sm:$0xf]  ;;  %v4183_v24 = vld [vmem:[%s7614_s1 + $0x48] sm:$0xf0] }
  0x2f   :  { %2390 = vmatpush.bf16.msrb.mxu1 %v4194_v52  ;;  %v4186_v29 = vor.u32 %v4667_v23, %v4183_v24  ;;  %v3929_v30 = vld [vmem:[%s7613_s0 + $0x348] sm:$0xf]  ;;  %v4606_v31 = vld [vmem:[%s7613_s0 + $0x358] sm:$0xf0]  ;;  %v4604_v34 = vld [vmem:[%s7613_s0 + $0x34c] sm:$0xf] }
  0x30   :  { %1884 = vmatpush.bf16.msrb.mxu2 %v4310_v20  ;;  %v3609_v32 = vld [vmem:[%s7613_s0 + $0xc8] sm:$0xf]  ;;  %v4526_v33 = vld [vmem:[%s7613_s0 + $0xd8] sm:$0xf0]  ;;  %v3931_v35 = vld [vmem:[%s7613_s0 + $0x35c] sm:$0xf0]  ;;  %v5184_v42 = vor.u32 %v4606_v31, %v3929_v30 }
  0x31   :  { %2053 = vmatpush.bf16.msrb.mxu3 %v4374_v22  ;;  %v4524_v36 = vld [vmem:[%s7613_s0 + $0xcc] sm:$0xf]  ;;  %v3611_v41 = vld [vmem:[%s7613_s0 + $0xdc] sm:$0xf0]  ;;  %v5186_v43 = vor.u32 %v4526_v33, %v3609_v32  ;;  %v5188_v44 = vor.u32 %v4604_v34, %v3931_v35  ;;  %v3949_v46 = vld [vmem:[%s7613_s0 + $0x370] sm:$0xf] }
  0x32   :  { %v5190_v45 = vor.u32 %v4524_v36, %v3611_v41  ;;  %v4611_v47 = vld [vmem:[%s7613_s0 + $0x380] sm:$0xf0]  ;;  %v3629_v48 = vld [vmem:[%s7613_s0 + $0xf0] sm:$0xf]  ;;  %v4609_v50 = vld [vmem:[%s7613_s0 + $0x374] sm:$0xf] }
  0x33   :  { %1636 = vmatmul.bf16.gmra.mxu2 %v4998_v25  ;;  %1556 = vmatmul.bf16.gmra.mxu0 %v5000_v26  ;;  %7737 = vst [vmem:[#allocation15_spill] sm:$0xff] %v5188_v44  ;;  %v4531_v49 = vld [vmem:[%s7613_s0 + $0x100] sm:$0xf0]  ;;  %v3951_v51 = vld [vmem:[%s7613_s0 + $0x384] sm:$0xf0]  ;;  %v5220_v54 = vor.u32 %v4611_v47, %v3949_v46 }
  0x34   :  { %1805 = vmatmul.bf16.gmra.mxu3 %v5002_v27  ;;  %2391 = vmatpush.bf16.msrb.mxu1 %v4186_v29  ;;  %7738 = vst [vmem:[#allocation16_spill] sm:$0xff] %v5190_v45  ;;  %v4529_v52 = vld [vmem:[%s7613_s0 + $0xf4] sm:$0xf]  ;;  %v3631_v53 = vld [vmem:[%s7613_s0 + $0x104] sm:$0xf0]  ;;  %v5222_v55 = vor.u32 %v4531_v49, %v3629_v48  ;;  %v5224_v56 = vor.u32 %v4609_v50, %v3951_v51 }
  0x35   :  { %7739 = vst [vmem:[#allocation17_spill] sm:$0xff] %v5220_v54  ;;  %v5226_v57 = vor.u32 %v4529_v52, %v3631_v53  ;;  %v4301_v58 = vld [vmem:[%s7614_s1 + $0x130] sm:$0xf]  ;;  %v4698_v59 = vld [vmem:[%s7614_s1 + $0x134] sm:$0xf0] }
  0x36   :  { %1725 = vmatmul.bf16.gmra.mxu1 %v5004_v28  ;;  %7740 = vst [vmem:[#allocation18_spill] sm:$0xff] %v5224_v56  ;;  %v4365_v60 = vld [vmem:[%s7614_s1 + $0x1b0] sm:$0xf]  ;;  %v4302_v3 = vor.u32 %v4698_v59, %v4301_v58  ;;  %v4714_v5 = vld [vmem:[%s7614_s1 + $0x1b4] sm:$0xf0] }
  0x37   :  { %7741 = vst [vmem:[#allocation19_spill] sm:$0xff] %v5226_v57  ;;  %v4366_v7 = vor.u32 %v4714_v5, %v4365_v60  ;;  %v3969_v8 = vld [vmem:[%s7613_s0 + $0x398] sm:$0xf]  ;;  %v4413_v9 = vld [vmem:[%s7614_s1 + $0x210] sm:$0xf] }
  0x38   :  { %1885 = vmatpush.bf16.msrb.mxu2 %v4302_v3  ;;  %v4726_v10 = vld [vmem:[%s7614_s1 + $0x214] sm:$0xf0]  ;;  %v4616_v11 = vld [vmem:[%s7613_s0 + $0x3a8] sm:$0xf0]  ;;  %v4614_v19 = vld [vmem:[%s7613_s0 + $0x39c] sm:$0xf] }
  0x39   :  { %2054 = vmatpush.bf16.msrb.mxu3 %v4366_v7  ;;  %v3649_v12 = vld [vmem:[%s7613_s0 + $0x118] sm:$0xf]  ;;  %v4536_v17 = vld [vmem:[%s7613_s0 + $0x128] sm:$0xf0]  ;;  %v4414_v18 = vor.u32 %v4726_v10, %v4413_v9  ;;  %v3971_v20 = vld [vmem:[%s7613_s0 + $0x3ac] sm:$0xf0]  ;;  %v5274_v23 = vor.u32 %v4616_v11, %v3969_v8 }
  0x3a   :  { %v4534_v21 = vld [vmem:[%s7613_s0 + $0x11c] sm:$0xf]  ;;  %v3651_v22 = vld [vmem:[%s7613_s0 + $0x12c] sm:$0xf0]  ;;  %v5276_v24 = vor.u32 %v4536_v17, %v3649_v12  ;;  %v5278_v29 = vor.u32 %v4614_v19, %v3971_v20  ;;  %v4665_v31 = vld [vmem:[%s7614_s1 + $0x34] sm:$0xf] }
  0x3b   :  { %2225 = vmatpush.bf16.msrb.mxu0 %v4414_v18  ;;  %7742 = vst [vmem:[#allocation20_spill] sm:$0xff] %v5274_v23  ;;  %v5280_v30 = vor.u32 %v4534_v21, %v3651_v22  ;;  %v4175_v32 = vld [vmem:[%s7614_s1 + $0x38] sm:$0xf0]  ;;  %v280_v34 = vld [vmem:[%s7615_s2] sm:$0x3] }
  0x3c   :  { %7743 = vst [vmem:[#allocation21_spill] sm:$0xff] %v5278_v29  ;;  %v4178_v33 = vor.u32 %v4665_v31, %v4175_v32  ;;  %v3989_v35 = vld [vmem:[%s7613_s0 + $0x3c0] sm:$0xf]  ;;  %v4621_v36 = vld [vmem:[%s7613_s0 + $0x3d0] sm:$0xf0]  ;;  %v5319_v51 = vperm.slane %v280_v34, 0 }
  0x3d   :  { %7744 = vst [vmem:[#allocation22_spill] sm:$0xff] %v5280_v30  ;;  %v3669_v41 = vld [vmem:[%s7613_s0 + $0x140] sm:$0xf]  ;;  %v4541_v46 = vld [vmem:[%s7613_s0 + $0x150] sm:$0xf0]  ;;  %v5321_v52 = vor.u32 %v4621_v36, %v3989_v35 }
  0x3e   :  { %2392 = vmatpush.bf16.msrb.mxu1 %v4178_v33  ;;  %v4619_v47 = vld [vmem:[%s7613_s0 + $0x3c4] sm:$0xf]  ;;  %v3991_v48 = vld [vmem:[%s7613_s0 + $0x3d4] sm:$0xf0]  ;;  %v5323_v53 = vor.u32 %v4541_v46, %v3669_v41  ;;  %v4293_v8 = vld [vmem:[%s7614_s1 + $0x120] sm:$0xf] }
  0x3f   :  { %v4539_v49 = vld [vmem:[%s7613_s0 + $0x144] sm:$0xf]  ;;  %v3671_v50 = vld [vmem:[%s7613_s0 + $0x154] sm:$0xf0]  ;;  %7745 = vst [vmem:[#allocation23_spill] sm:$0xff] %v5321_v52  ;;  %v5325_v59 = vor.u32 %v4619_v47, %v3991_v48 }
  0x40   :  { %v5328_v3 = vor.u32 %v4539_v49, %v3671_v50  ;;  %v4696_v9 = vld [vmem:[%s7614_s1 + $0x124] sm:$0xf0]  ;;  %v4357_v10 = vld [vmem:[%s7614_s1 + $0x1a0] sm:$0xf]  ;;  %v4626_v35 = vld [vmem:[%s7613_s0 + $0x3f8] sm:$0xf0] }
  0x41   :  { %7746 = vst [vmem:[#allocation24_spill] sm:$0xff] %v5325_v59  ;;  %v4294_v11 = vor.u32 %v4696_v9, %v4293_v8  ;;  %v4712_v12 = vld [vmem:[%s7614_s1 + $0x1a4] sm:$0xf0]  ;;  %v4546_v41 = vld [vmem:[%s7613_s0 + $0x178] sm:$0xf0] }
  0x42   :  { %7747 = vst [vmem:[#allocation25_spill] sm:$0xff] %v5328_v3  ;;  %v4358_v18 = vor.u32 %v4712_v12, %v4357_v10  ;;  %v4009_v34 = vld [vmem:[%s7613_s0 + $0x3e8] sm:$0xf]  ;;  %v4624_v46 = vld [vmem:[%s7613_s0 + $0x3ec] sm:$0xf] }
  0x43   :  { %1641 = vmatmul.bf16.gmra.mxu2 %v5034_v37  ;;  %1561 = vmatmul.bf16.gmra.mxu0 %v5036_v38  ;;  %v3689_v36 = vld [vmem:[%s7613_s0 + $0x168] sm:$0xf]  ;;  %v4011_v47 = vld [vmem:[%s7613_s0 + $0x3fc] sm:$0xf0]  ;;  %v4544_v49 = vld [vmem:[%s7613_s0 + $0x16c] sm:$0xf] }
  0x44   :  { %1810 = vmatmul.bf16.gmra.mxu3 %v5038_v39  ;;  %1886 = vmatpush.bf16.msrb.mxu2 %v4294_v11  ;;  %v3691_v50 = vld [vmem:[%s7613_s0 + $0x17c] sm:$0xf0]  ;;  %v5381_v8 = vor.u32 %v4546_v41, %v3689_v36  ;;  %v5383_v10 = vor.u32 %v4624_v46, %v4011_v47 }
  0x45   :  { %2055 = vmatpush.bf16.msrb.mxu3 %v4358_v18  ;;  %v4663_v18 = vld [vmem:[%s7614_s1 + $0x24] sm:$0xf] }
  0x46   :  { %1730 = vmatmul.bf16.gmra.mxu1 %v5040_v40  ;;  %7750 = vst [vmem:[#allocation28_spill] sm:$0xff] %v5383_v10 }
  0x53   :  { %1646 = vmatmul.bf16.gmra.mxu2 %v5094_v61  ;;  %1566 = vmatmul.bf16.gmra.mxu0 %v5096_v62 }
  0x54   :  { %1815 = vmatmul.bf16.gmra.mxu3 %v5098_v63 }
  0x56   :  { %1735 = vmatmul.bf16.gmra.mxu1 %v5100_v2 }
  0x63   :  { %1651 = vmatmul.bf16.gmra.mxu2 %v5130_v13  ;;  %1571 = vmatmul.bf16.gmra.mxu0 %v5132_v14 }
  0x64   :  { %1820 = vmatmul.bf16.gmra.mxu3 %v5134_v15 }
  0x66   :  { %1740 = vmatmul.bf16.gmra.mxu1 %v5136_v16 }
  0x73   :  { %1656 = vmatmul.bf16.gmra.mxu2 %v5184_v42  ;;  %1576 = vmatmul.bf16.gmra.mxu0 %v5186_v43 }
  0x74   :  { %1825 = vmatmul.bf16.gmra.mxu3 %v5188_v44 }
  0x76   :  { %1745 = vmatmul.bf16.gmra.mxu1 %v5190_v45 }
  0x83   :  { %1661 = vmatmul.bf16.gmra.mxu2 %v5220_v54  ;;  %1581 = vmatmul.bf16.gmra.mxu0 %v5222_v55 }
  0x84   :  { %1830 = vmatmul.bf16.gmra.mxu3 %v5224_v56 }
  0x86   :  { %1750 = vmatmul.bf16.gmra.mxu1 %v5226_v57 }
  0x93   :  { %1666 = vmatmul.bf16.gmra.mxu2 %v5274_v23  ;;  %1586 = vmatmul.bf16.gmra.mxu0 %v5276_v24 }
  0x94   :  { %1835 = vmatmul.bf16.gmra.mxu3 %v5278_v29 }
  0x96   :  { %1755 = vmatmul.bf16.gmra.mxu1 %v5280_v30 }
  0xa0   :  { %v1552_v58 = vpop.f32.mrf.mxu0 }
  0xa1   :  { %v1553_v60 = vadd.f32 %v1552_v58, %v5319_v51 }
  0xa3   :  { %v1721_v5 = vpop.f32.mrf.mxu1  ;;  %1671 = vmatmul.bf16.gmra.mxu2 %v5321_v52  ;;  %1591 = vmatmul.bf16.gmra.mxu0 %v5323_v53 }
  0xa4   :  { %v5331_v7 = vadd.f32 %v1721_v5, %v1553_v60  ;;  %1840 = vmatmul.bf16.gmra.mxu3 %v5325_v59  ;;  %v5379_v5 = vor.u32 %v4626_v35, %v4009_v34 }
  0xa6   :  { %1760 = vmatmul.bf16.gmra.mxu1 %v5328_v3  ;;  %v1632_v17 = vpop.f32.mrf.mxu2  ;;  %7749 = vst [vmem:[#allocation27_spill] sm:$0xff] %v5379_v5 }
  0xa7   :  { %v1633_v19 = vadd.f32 %v1632_v17, %v5319_v51  ;;  %v1801_v20 = vpop.f32.mrf.mxu3  ;;  %v5388_v17 = vor.u32 %v4544_v49, %v3691_v50  ;;  %v4029_v49 = vld [vmem:[%s7613_s0 + $0x410] sm:$0xf]  ;;  %v4631_v50 = vld [vmem:[%s7613_s0 + $0x420] sm:$0xf0] }
  0xa8   :  { %v1554_v21 = vpop.f32.mrf.mxu0 }
  0xa9   :  { %v5349_v22 = vadd.f32 %v1801_v20, %v1633_v19  ;;  %v1555_v31 = vadd.f32 %v1554_v21, %v5319_v51  ;;  %7752 = vst [vmem:[#allocation30_spill] sm:$0xff] %v5388_v17  ;;  %v4167_v19 = vld [vmem:[%s7614_s1 + $0x28] sm:$0xf0] }
  0xaa   :  { %v4170_v21 = vor.u32 %v4663_v18, %v4167_v19  ;;  %v4549_v19 = vld [vmem:[%s7613_s0 + $0x194] sm:$0xf] }
  0xab   :  { %7748 = vst [vmem:[#allocation26_spill] sm:$0xff] %v5349_v22  ;;  %v1723_v32 = vpop.f32.mrf.mxu1 }
  0xac   :  { %v5352_v33 = vadd.f32 %v1723_v32, %v1555_v31  ;;  %2393 = vmatpush.bf16.msrb.mxu1 %v4170_v21 }
  0xae   :  { %v1634_v48 = vpop.f32.mrf.mxu2 }
  0xaf   :  { %v1635_v58 = vadd.f32 %v1634_v48, %v5319_v51  ;;  %v1803_v60 = vpop.f32.mrf.mxu3 }
  0xb0   :  { %v1557_v9 = vpop.f32.mrf.mxu0 }
  0xb1   :  { %v5385_v11 = vadd.f32 %v1803_v60, %v1635_v58  ;;  %v1558_v12 = vadd.f32 %v1557_v9, %v5319_v51  ;;  %v3709_v58 = vld [vmem:[%s7613_s0 + $0x190] sm:$0xf]  ;;  %v4551_v60 = vld [vmem:[%s7613_s0 + $0x1a0] sm:$0xf0]  ;;  %v4629_v9 = vld [vmem:[%s7613_s0 + $0x414] sm:$0xf] }
  0xb3   :  { %7751 = vst [vmem:[#allocation29_spill] sm:$0xff] %v5385_v11  ;;  %v1726_v20 = vpop.f32.mrf.mxu1  ;;  %1676 = vmatmul.bf16.gmra.mxu2 %v5379_v5  ;;  %1596 = vmatmul.bf16.gmra.mxu0 %v5381_v8 }
  0xb4   :  { %v5397_v31 = vadd.f32 %v1726_v20, %v1558_v12  ;;  %1845 = vmatmul.bf16.gmra.mxu3 %v5383_v10  ;;  %v4031_v12 = vld [vmem:[%s7613_s0 + $0x424] sm:$0xf0] }
  0xb5   :  { %v3711_v20 = vld [vmem:[%s7613_s0 + $0x1a4] sm:$0xf0] }
  0xb6   :  { %1765 = vmatmul.bf16.gmra.mxu1 %v5388_v17  ;;  %v1637_v32 = vpop.f32.mrf.mxu2  ;;  %v5442_v59 = vor.u32 %v4549_v19, %v3711_v20 }
  0xb7   :  { %v1638_v34 = vadd.f32 %v1637_v32, %v5319_v51  ;;  %v1806_v35 = vpop.f32.mrf.mxu3 }
  0xb8   :  { %v1559_v36 = vpop.f32.mrf.mxu0  ;;  %7757 = vst [vmem:[#allocation35_spill] sm:$0xff] %v5442_v59 }
  0xb9   :  { %v5403_v41 = vadd.f32 %v1806_v35, %v1638_v34  ;;  %v1560_v46 = vadd.f32 %v1559_v36, %v5319_v51  ;;  %v5433_v34 = vor.u32 %v4631_v50, %v4029_v49  ;;  %v5435_v35 = vor.u32 %v4551_v60, %v3709_v58  ;;  %v4285_v49 = vld [vmem:[%s7614_s1 + $0x110] sm:$0xf]  ;;  %v4694_v50 = vld [vmem:[%s7614_s1 + $0x114] sm:$0xf0] }
  0xba   :  { %v4349_v58 = vld [vmem:[%s7614_s1 + $0x190] sm:$0xf] }
  0xbb   :  { %7753 = vst [vmem:[#allocation31_spill] sm:$0xff] %v5403_v41  ;;  %v1728_v47 = vpop.f32.mrf.mxu1 }
  0xbc   :  { %v5406_v48 = vadd.f32 %v1728_v47, %v1560_v46  ;;  %7754 = vst [vmem:[#allocation32_spill] sm:$0xff] %v5433_v34  ;;  %v5437_v46 = vor.u32 %v4629_v9, %v4031_v12 }
  0xbe   :  { %v1639_v18 = vpop.f32.mrf.mxu2  ;;  %7755 = vst [vmem:[#allocation33_spill] sm:$0xff] %v5437_v46 }
  0xbf   :  { %v1640_v21 = vadd.f32 %v1639_v18, %v5319_v51  ;;  %v1808_v32 = vpop.f32.mrf.mxu3 }
  0xc0   :  { %v1562_v36 = vpop.f32.mrf.mxu0 }
  0xc1   :  { %v5439_v47 = vadd.f32 %v1808_v32, %v1640_v21  ;;  %v1563_v10 = vadd.f32 %v1562_v36, %v5319_v51 }
  0xc3   :  { %7756 = vst [vmem:[#allocation34_spill] sm:$0xff] %v5439_v47  ;;  %v1731_v29 = vpop.f32.mrf.mxu1  ;;  %1681 = vmatmul.bf16.gmra.mxu2 %v5433_v34  ;;  %1601 = vmatmul.bf16.gmra.mxu0 %v5435_v35 }
  0xc4   :  { %v5445_v56 = vadd.f32 %v1731_v29, %v1563_v10  ;;  %1850 = vmatmul.bf16.gmra.mxu3 %v5437_v46  ;;  %v4286_v29 = vor.u32 %v4694_v50, %v4285_v49  ;;  %v4710_v10 = vld [vmem:[%s7614_s1 + $0x194] sm:$0xf0]  ;;  %v4405_v50 = vld [vmem:[%s7614_s1 + $0x200] sm:$0xf] }
  0xc5   :  { %v4350_v9 = vor.u32 %v4710_v10, %v4349_v58  ;;  %v4049_v49 = vld [vmem:[%s7613_s0 + $0x438] sm:$0xf]  ;;  %v4724_v58 = vld [vmem:[%s7614_s1 + $0x204] sm:$0xf0] }
  0xc6   :  { %1770 = vmatmul.bf16.gmra.mxu1 %v5442_v59  ;;  %v1642_v60 = vpop.f32.mrf.mxu2  ;;  %1887 = vmatpush.bf16.msrb.mxu2 %v4286_v29  ;;  %v4636_v29 = vld [vmem:[%s7613_s0 + $0x448] sm:$0xf0]  ;;  %v3729_v10 = vld [vmem:[%s7613_s0 + $0x1b8] sm:$0xf] }
  0xc7   :  { %v1643_v12 = vadd.f32 %v1642_v60, %v5319_v51  ;;  %v1811_v18 = vpop.f32.mrf.mxu3  ;;  %2056 = vmatpush.bf16.msrb.mxu3 %v4350_v9  ;;  %v4556_v60 = vld [vmem:[%s7613_s0 + $0x1c8] sm:$0xf0]  ;;  %v4406_v9 = vor.u32 %v4724_v58, %v4405_v50  ;;  %v5499_v46 = vor.u32 %v4636_v29, %v4049_v49  ;;  %v4159_v49 = vld [vmem:[%s7614_s1 + $0x18] sm:$0xf0] }
  0xc8   :  { %v1564_v19 = vpop.f32.mrf.mxu0  ;;  %v5501_v44 = vor.u32 %v4556_v60, %v3729_v10 }
  0xc9   :  { %v5463_v20 = vadd.f32 %v1811_v18, %v1643_v12  ;;  %v1565_v21 = vadd.f32 %v1564_v19, %v5319_v51  ;;  %v4634_v12 = vld [vmem:[%s7613_s0 + $0x43c] sm:$0xf]  ;;  %v4051_v18 = vld [vmem:[%s7613_s0 + $0x44c] sm:$0xf0]  ;;  %2226 = vmatpush.bf16.msrb.mxu0 %v4406_v9  ;;  %7759 = vst [vmem:[#allocation37_spill] sm:$0xff] %v5499_v46 }
  0xca   :  { %v5503_v63 = vor.u32 %v4634_v12, %v4051_v18  ;;  %v4661_v9 = vld [vmem:[%s7614_s1 + $0x14] sm:$0xf] }
  0xcb   :  { %7758 = vst [vmem:[#allocation36_spill] sm:$0xff] %v5463_v20  ;;  %v1733_v32 = vpop.f32.mrf.mxu1  ;;  %v4162_v10 = vor.u32 %v4661_v9, %v4159_v49  ;;  %v4641_v9 = vld [vmem:[%s7613_s0 + $0x470] sm:$0xf0]  ;;  %v3749_v49 = vld [vmem:[%s7613_s0 + $0x1e0] sm:$0xf] }
  0xcc   :  { %v5466_v36 = vadd.f32 %v1733_v32, %v1565_v21  ;;  %v4554_v21 = vld [vmem:[%s7613_s0 + $0x1bc] sm:$0xf]  ;;  %v3731_v32 = vld [vmem:[%s7613_s0 + $0x1cc] sm:$0xf0]  ;;  %7760 = vst [vmem:[#allocation38_spill] sm:$0xff] %v5503_v63 }
  0xcd   :  { %v5508_v4 = vor.u32 %v4554_v21, %v3731_v32  ;;  %2394 = vmatpush.bf16.msrb.mxu1 %v4162_v10  ;;  %v4639_v10 = vld [vmem:[%s7613_s0 + $0x464] sm:$0xf] }
  0xce   :  { %v1644_v19 = vpop.f32.mrf.mxu2 }
  0xcf   :  { %v1645_v50 = vadd.f32 %v1644_v19, %v5319_v51  ;;  %v1813_v58 = vpop.f32.mrf.mxu3  ;;  %7762 = vst [vmem:[#allocation40_spill] sm:$0xff] %v5508_v4 }
  0xd0   :  { %v1567_v15 = vpop.f32.mrf.mxu0 }
  0xd1   :  { %v5505_v39 = vadd.f32 %v1813_v58, %v1645_v50  ;;  %v1568_v27 = vadd.f32 %v1567_v15, %v5319_v51 }
  0xd3   :  { %7761 = vst [vmem:[#allocation39_spill] sm:$0xff] %v5505_v39  ;;  %v1736_v29 = vpop.f32.mrf.mxu1  ;;  %1686 = vmatmul.bf16.gmra.mxu2 %v5499_v46  ;;  %1606 = vmatmul.bf16.gmra.mxu0 %v5501_v44 }
  0xd4   :  { %v5517_v60 = vadd.f32 %v1736_v29, %v1568_v27  ;;  %1855 = vmatmul.bf16.gmra.mxu3 %v5503_v63  ;;  %v4069_v27 = vld [vmem:[%s7613_s0 + $0x460] sm:$0xf]  ;;  %v4561_v29 = vld [vmem:[%s7613_s0 + $0x1f0] sm:$0xf0] }
  0xd5   :  { %v5553_v63 = vor.u32 %v4641_v9, %v4069_v27  ;;  %v4277_v27 = vld [vmem:[%s7614_s1 + $0x100] sm:$0xf]  ;;  %v4692_v9 = vld [vmem:[%s7614_s1 + $0x104] sm:$0xf0] }
  0xd6   :  { %1775 = vmatmul.bf16.gmra.mxu1 %v5508_v4  ;;  %v1647_v15 = vpop.f32.mrf.mxu2  ;;  %v5555_v4 = vor.u32 %v4561_v29, %v3749_v49 }
  0xd7   :  { %v1648_v12 = vadd.f32 %v1647_v15, %v5319_v51  ;;  %v1816_v18 = vpop.f32.mrf.mxu3  ;;  %v4071_v15 = vld [vmem:[%s7613_s0 + $0x474] sm:$0xf0]  ;;  %7764 = vst [vmem:[#allocation42_spill] sm:$0xff] %v5553_v63 }
  0xd8   :  { %v1569_v19 = vpop.f32.mrf.mxu0  ;;  %v5557_v17 = vor.u32 %v4639_v10, %v4071_v15 }
  0xd9   :  { %v5523_v21 = vadd.f32 %v1816_v18, %v1648_v12  ;;  %v1570_v32 = vadd.f32 %v1569_v19, %v5319_v51  ;;  %v4559_v18 = vld [vmem:[%s7613_s0 + $0x1e4] sm:$0xf]  ;;  %v3751_v19 = vld [vmem:[%s7613_s0 + $0x1f4] sm:$0xf0] }
  0xda   :  { %7765 = vst [vmem:[#allocation43_spill] sm:$0xff] %v5557_v17  ;;  %v5562_v57 = vor.u32 %v4559_v18, %v3751_v19 }
  0xdb   :  { %7763 = vst [vmem:[#allocation41_spill] sm:$0xff] %v5523_v21  ;;  %v1738_v50 = vpop.f32.mrf.mxu1 }
  0xdc   :  { %v5526_v58 = vadd.f32 %v1738_v50, %v1570_v32  ;;  %7767 = vst [vmem:[#allocation45_spill] sm:$0xff] %v5562_v57 }
  0xde   :  { %v1649_v12 = vpop.f32.mrf.mxu2 }
  0xdf   :  { %v1650_v32 = vadd.f32 %v1649_v12, %v5319_v51  ;;  %v1818_v50 = vpop.f32.mrf.mxu3 }
  0xe0   :  { %v1572_v59 = vpop.f32.mrf.mxu0 }
  0xe1   :  { %v5559_v3 = vadd.f32 %v1818_v50, %v1650_v32  ;;  %v1573_v30 = vadd.f32 %v1572_v59, %v5319_v51  ;;  %v4341_v59 = vld [vmem:[%s7614_s1 + $0x180] sm:$0xf] }
  0xe3   :  { %7766 = vst [vmem:[#allocation44_spill] sm:$0xff] %v5559_v3  ;;  %v1741_v45 = vpop.f32.mrf.mxu1  ;;  %1691 = vmatmul.bf16.gmra.mxu2 %v5553_v63  ;;  %1611 = vmatmul.bf16.gmra.mxu0 %v5555_v4 }
  0xe4   :  { %v5565_v16 = vadd.f32 %v1741_v45, %v1573_v30  ;;  %1860 = vmatmul.bf16.gmra.mxu3 %v5557_v17  ;;  %v4278_v45 = vor.u32 %v4692_v9, %v4277_v27  ;;  %v4708_v30 = vld [vmem:[%s7614_s1 + $0x184] sm:$0xf0]  ;;  %v4646_v9 = vld [vmem:[%s7613_s0 + $0x498] sm:$0xf0] }
  0xe5   :  { %v4342_v29 = vor.u32 %v4708_v30, %v4341_v59  ;;  %v4089_v27 = vld [vmem:[%s7613_s0 + $0x488] sm:$0xf]  ;;  %v4644_v30 = vld [vmem:[%s7613_s0 + $0x48c] sm:$0xf] }
  0xe6   :  { %1780 = vmatmul.bf16.gmra.mxu1 %v5562_v57  ;;  %v1652_v49 = vpop.f32.mrf.mxu2  ;;  %1888 = vmatpush.bf16.msrb.mxu2 %v4278_v45  ;;  %v3769_v59 = vld [vmem:[%s7613_s0 + $0x208] sm:$0xf]  ;;  %v4566_v45 = vld [vmem:[%s7613_s0 + $0x218] sm:$0xf0] }
  0xe7   :  { %v1653_v10 = vadd.f32 %v1652_v49, %v5319_v51  ;;  %v1821_v15 = vpop.f32.mrf.mxu3  ;;  %2057 = vmatpush.bf16.msrb.mxu3 %v4342_v29  ;;  %v4091_v49 = vld [vmem:[%s7613_s0 + $0x49c] sm:$0xf0]  ;;  %v5615_v17 = vor.u32 %v4566_v45, %v3769_v59 }
  0xe8   :  { %v1574_v12 = vpop.f32.mrf.mxu0  ;;  %v5617_v2 = vor.u32 %v4644_v30, %v4091_v49 }
  0xe9   :  { %v5583_v18 = vadd.f32 %v1821_v15, %v1653_v10  ;;  %v1575_v19 = vadd.f32 %v1574_v12, %v5319_v51  ;;  %v4564_v10 = vld [vmem:[%s7613_s0 + $0x20c] sm:$0xf]  ;;  %v3771_v15 = vld [vmem:[%s7613_s0 + $0x21c] sm:$0xf0] }
  0xea   :  { %7770 = vst [vmem:[#allocation48_spill] sm:$0xff] %v5617_v2  ;;  %v5622_v6 = vor.u32 %v4564_v10, %v3771_v15 }
  0xeb   :  { %7768 = vst [vmem:[#allocation46_spill] sm:$0xff] %v5583_v18  ;;  %v1743_v32 = vpop.f32.mrf.mxu1  ;;  %v4659_v18 = vld [vmem:[%s7614_s1 + $0x4] sm:$0xf] }
  0xec   :  { %v5586_v50 = vadd.f32 %v1743_v32, %v1575_v19  ;;  %v5613_v32 = vor.u32 %v4646_v9, %v4089_v27  ;;  %7772 = vst [vmem:[#allocation50_spill] sm:$0xff] %v5622_v6  ;;  %v4151_v27 = vld [vmem:[%s7614_s1 + $0x8] sm:$0xf0] }
  0xed   :  { %v4154_v59 = vor.u32 %v4659_v18, %v4151_v27  ;;  %v3789_v27 = vld [vmem:[%s7613_s0 + $0x230] sm:$0xf] }
  0xee   :  { %v1654_v29 = vpop.f32.mrf.mxu2  ;;  %7769 = vst [vmem:[#allocation47_spill] sm:$0xff] %v5613_v32 }
  0xef   :  { %v1655_v12 = vadd.f32 %v1654_v29, %v5319_v51  ;;  %v1823_v19 = vpop.f32.mrf.mxu3  ;;  %2395 = vmatpush.bf16.msrb.mxu1 %v4154_v59  ;;  %v4649_v59 = vld [vmem:[%s7613_s0 + $0x4b4] sm:$0xf] }
  0xf0   :  { %v1577_v57 = vpop.f32.mrf.mxu0 }
  0xf1   :  { %v5619_v40 = vadd.f32 %v1823_v19, %v1655_v12  ;;  %v1578_v28 = vadd.f32 %v1577_v57, %v5319_v51  ;;  %v4651_v19 = vld [vmem:[%s7613_s0 + $0x4c0] sm:$0xf0] }
  0xf3   :  { %7771 = vst [vmem:[#allocation49_spill] sm:$0xff] %v5619_v40  ;;  %v1746_v9 = vpop.f32.mrf.mxu1  ;;  %1696 = vmatmul.bf16.gmra.mxu2 %v5613_v32  ;;  %1616 = vmatmul.bf16.gmra.mxu0 %v5615_v17 }
  0xf4   :  { %v5631_v45 = vadd.f32 %v1746_v9, %v1578_v28  ;;  %1865 = vmatmul.bf16.gmra.mxu3 %v5617_v2  ;;  %v4109_v28 = vld [vmem:[%s7613_s0 + $0x4b0] sm:$0xf]  ;;  %v4571_v9 = vld [vmem:[%s7613_s0 + $0x240] sm:$0xf0] }
  0xf5   :  { %v5667_v2 = vor.u32 %v4651_v19, %v4109_v28  ;;  %v4689_v28 = vld [vmem:[%s7614_s1 + $0xf4] sm:$0xf]  ;;  %v4271_v19 = vld [vmem:[%s7614_s1 + $0xf8] sm:$0xf0] }
  0xf6   :  { %1785 = vmatmul.bf16.gmra.mxu1 %v5622_v6  ;;  %v1657_v57 = vpop.f32.mrf.mxu2  ;;  %v5669_v6 = vor.u32 %v4571_v9, %v3789_v27 }
  0xf7   :  { %v1658_v30 = vadd.f32 %v1657_v57, %v5319_v51  ;;  %v1826_v49 = vpop.f32.mrf.mxu3  ;;  %v4111_v57 = vld [vmem:[%s7613_s0 + $0x4c4] sm:$0xf0]  ;;  %7774 = vst [vmem:[#allocation52_spill] sm:$0xff] %v5667_v2 }
  0xf8   :  { %v1579_v29 = vpop.f32.mrf.mxu0  ;;  %v5671_v32 = vor.u32 %v4649_v59, %v4111_v57 }
  0xf9   :  { %v5637_v10 = vadd.f32 %v1826_v49, %v1658_v30  ;;  %v1580_v18 = vadd.f32 %v1579_v29, %v5319_v51  ;;  %v4569_v49 = vld [vmem:[%s7613_s0 + $0x234] sm:$0xf]  ;;  %v3791_v29 = vld [vmem:[%s7613_s0 + $0x244] sm:$0xf0] }
  0xfa   :  { %7775 = vst [vmem:[#allocation53_spill] sm:$0xff] %v5671_v32  ;;  %v5676_v3 = vor.u32 %v4569_v49, %v3791_v29 }
  0xfb   :  { %7773 = vst [vmem:[#allocation51_spill] sm:$0xff] %v5637_v10  ;;  %v1748_v15 = vpop.f32.mrf.mxu1 }
  0xfc   :  { %v5640_v12 = vadd.f32 %v1748_v15, %v1580_v18  ;;  %7777 = vst [vmem:[#allocation55_spill] sm:$0xff] %v5676_v3 }
  0xfe   :  { %v1659_v30 = vpop.f32.mrf.mxu2 }
  0xff   :  { %v1660_v18 = vadd.f32 %v1659_v30, %v5319_v51  ;;  %v1828_v15 = vpop.f32.mrf.mxu3 }
 0x100   :  { %v1582_v10 = vpop.f32.mrf.mxu0 }
 0x101   :  { %v5673_v40 = vadd.f32 %v1828_v15, %v1660_v18  ;;  %v1583_v63 = vadd.f32 %v1582_v10, %v5319_v51  ;;  %v4274_v10 = vor.u32 %v4689_v28, %v4271_v19  ;;  %v4129_v28 = vld [vmem:[%s7613_s0 + $0x4d8] sm:$0xf]  ;;  %v4721_v19 = vld [vmem:[%s7614_s1 + $0x1f4] sm:$0xf] }
 0x103   :  { %7776 = vst [vmem:[#allocation54_spill] sm:$0xff] %v5673_v40  ;;  %v1751_v21 = vpop.f32.mrf.mxu1  ;;  %1701 = vmatmul.bf16.gmra.mxu2 %v5667_v2  ;;  %1621 = vmatmul.bf16.gmra.mxu0 %v5669_v6 }
 0x104   :  { %v5679_v46 = vadd.f32 %v1751_v21, %v1583_v63  ;;  %1870 = vmatmul.bf16.gmra.mxu3 %v5671_v32  ;;  %v4705_v63 = vld [vmem:[%s7614_s1 + $0x174] sm:$0xf]  ;;  %v4335_v21 = vld [vmem:[%s7614_s1 + $0x178] sm:$0xf0]  ;;  %2557 = vmatpush.bf16.msra.mxu2 %v4274_v10 }
 0x105   :  { %v4338_v9 = vor.u32 %v4705_v63, %v4335_v21  ;;  %v4399_v10 = vld [vmem:[%s7614_s1 + $0x1f8] sm:$0xf0]  ;;  %v4656_v63 = vld [vmem:[%s7613_s0 + $0x4e8] sm:$0xf0]  ;;  %v3809_v21 = vld [vmem:[%s7613_s0 + $0x258] sm:$0xf] }
 0x106   :  { %1790 = vmatmul.bf16.gmra.mxu1 %v5676_v3  ;;  %v1662_v27 = vpop.f32.mrf.mxu2  ;;  %v5733_v32 = vor.u32 %v4656_v63, %v4129_v28  ;;  %v4431_v28 = vld [vmem:[%s7614_s1 + $0x238] sm:$0xf0] }
 0x107   :  { %v1663_v59 = vadd.f32 %v1662_v27, %v5319_v51  ;;  %v1831_v57 = vpop.f32.mrf.mxu3  ;;  %2726 = vmatpush.bf16.msra.mxu3 %v4338_v9  ;;  %v4576_v27 = vld [vmem:[%s7613_s0 + $0x268] sm:$0xf0]  ;;  %v4402_v9 = vor.u32 %v4721_v19, %v4399_v10 }
 0x108   :  { %v1584_v30 = vpop.f32.mrf.mxu0  ;;  %7779 = vst [vmem:[#allocation57_spill] sm:$0xff] %v5733_v32  ;;  %v5735_v3 = vor.u32 %v4576_v27, %v3809_v21 }
 0x109   :  { %v5697_v49 = vadd.f32 %v1831_v57, %v1663_v59  ;;  %v1585_v29 = vadd.f32 %v1584_v30, %v5319_v51  ;;  %v4654_v59 = vld [vmem:[%s7613_s0 + $0x4dc] sm:$0xf]  ;;  %v4131_v57 = vld [vmem:[%s7613_s0 + $0x4ec] sm:$0xf0]  ;;  %2895 = vmatpush.bf16.msra.mxu0 %v4402_v9  ;;  %v4729_v9 = vld [vmem:[%s7614_s1 + $0x234] sm:$0xf] }
 0x10a   :  { %v5737_v2 = vor.u32 %v4654_v59, %v4131_v57  ;;  %v4434_v21 = vor.u32 %v4729_v9, %v4431_v28  ;;  %v4502_v9 = vld [vmem:[%s7613_s0 + $0x18] sm:$0xf0]  ;;  %v3525_v28 = vld [vmem:[%s7613_s0 + $0x10] sm:$0xf] }
 0x10b   :  { %7778 = vst [vmem:[#allocation56_spill] sm:$0xff] %v5697_v49  ;;  %v1753_v18 = vpop.f32.mrf.mxu1 }
 0x10c   :  { %v5700_v15 = vadd.f32 %v1753_v18, %v1585_v29  ;;  %v4574_v29 = vld [vmem:[%s7613_s0 + $0x25c] sm:$0xf]  ;;  %v3811_v18 = vld [vmem:[%s7613_s0 + $0x26c] sm:$0xf0]  ;;  %7780 = vst [vmem:[#allocation58_spill] sm:$0xff] %v5737_v2  ;;  %3068 = vmatpush.bf16.msra.mxu1 %v4434_v21 }
 0x10d   :  { %v5742_v20 = vor.u32 %v4574_v29, %v3811_v18  ;;  %v4500_v21 = vld [vmem:[%s7613_s0 + $0xc] sm:$0xf] }
 0x10e   :  { %v1664_v30 = vpop.f32.mrf.mxu2 }
 0x10f   :  { %v1665_v19 = vadd.f32 %v1664_v30, %v5319_v51  ;;  %v1833_v10 = vpop.f32.mrf.mxu3  ;;  %7782 = vst [vmem:[#allocation60_spill] sm:$0xff] %v5742_v20 }
 0x110   :  { %v1587_v49 = vpop.f32.mrf.mxu0 }
 0x111   :  { %v5739_v40 = vadd.f32 %v1833_v10, %v1665_v19  ;;  %v1588_v39 = vadd.f32 %v1587_v49, %v5319_v51 }
 0x113   :  { %7781 = vst [vmem:[#allocation59_spill] sm:$0xff] %v5739_v40  ;;  %v1756_v63 = vpop.f32.mrf.mxu1  ;;  %1706 = vmatmul.bf16.gmra.mxu2 %v5733_v32  ;;  %1626 = vmatmul.bf16.gmra.mxu0 %v5735_v3 }
 0x114   :  { %v5751_v27 = vadd.f32 %v1756_v63, %v1588_v39  ;;  %1875 = vmatmul.bf16.gmra.mxu3 %v5737_v2  ;;  %v3517_v39 = vld [vmem:[%s7613_s0 + $0x8] sm:$0xf]  ;;  %v4503_v63 = vld [vmem:[%s7613_s0 + $0x20] sm:$0xf0] }
 0x116   :  { %1795 = vmatmul.bf16.gmra.mxu1 %v5742_v20  ;;  %v1667_v49 = vpop.f32.mrf.mxu2 }
 0x117   :  { %v1668_v59 = vadd.f32 %v1667_v49, %v5319_v51  ;;  %v1836_v57 = vpop.f32.mrf.mxu3  ;;  %v3519_v49 = vld [vmem:[%s7613_s0 + $0x1c] sm:$0xf0] }
 0x118   :  { %v1589_v30 = vpop.f32.mrf.mxu0  ;;  %v5785_v20 = vor.u32 %v4500_v21, %v3519_v49 }
 0x119   :  { %v5757_v29 = vadd.f32 %v1836_v57, %v1668_v59  ;;  %v1590_v18 = vadd.f32 %v1589_v30, %v5319_v51 }
 0x11a   :  { %7786 = vst [vmem:[#allocation64_spill] sm:$0xff] %v5785_v20 }
 0x11b   :  { %7783 = vst [vmem:[#allocation61_spill] sm:$0xff] %v5757_v29  ;;  %v1758_v19 = vpop.f32.mrf.mxu1 }
 0x11c   :  { %v5760_v10 = vadd.f32 %v1758_v19, %v1590_v18  ;;  %v5781_v18 = vor.u32 %v4502_v9, %v3517_v39  ;;  %v5783_v19 = vor.u32 %v4503_v63, %v3525_v28 }
 0x11e   :  { %v1669_v59 = vpop.f32.mrf.mxu2  ;;  %7784 = vst [vmem:[#allocation62_spill] sm:$0xff] %v5781_v18 }
 0x11f   :  { %v1670_v57 = vadd.f32 %v1669_v59, %v5319_v51  ;;  %v1838_v30 = vpop.f32.mrf.mxu3  ;;  %7785 = vst [vmem:[#allocation63_spill] sm:$0xff] %v5783_v19 }
 0x120   :  { %v1592_v2 = vpop.f32.mrf.mxu0 }
 0x121   :  { %v5787_v29 = vadd.f32 %v1838_v30, %v1670_v57  ;;  %v1593_v32 = vadd.f32 %v1592_v2, %v5319_v51  ;;  %v4508_v57 = vld [vmem:[%s7613_s0 + $0x48] sm:$0xf0]  ;;  %v4505_v30 = vld [vmem:[%s7613_s0 + $0x34] sm:$0xf] }
 0x123   :  { %7787 = vst [vmem:[#allocation65_spill] sm:$0xff] %v5787_v29  ;;  %v1761_v40 = vpop.f32.mrf.mxu1  ;;  %1889 = vmatmul.bf16.vlgmr.msrb.gmra.mxu2 %v5781_v18  ;;  %4435 = vmatmul.msk.bf16.vlgmr.msrb.gmra.mxu0 %vm1446_vm0, %v5783_v19 }
 0x124   :  { %v5791_v34 = vadd.f32 %v1761_v40, %v1593_v32  ;;  %2058 = vmatmul.bf16.vlgmr.msrb.gmra.mxu3 %v5785_v20  ;;  %v3537_v40 = vld [vmem:[%s7613_s0 + $0x30] sm:$0xf]  ;;  %v3545_v32 = vld [vmem:[%s7613_s0 + $0x38] sm:$0xf] }
 0x126   :  { %2396 = vmatmul.bf16.vlgmr.msrb.gmra.mxu1 %v4940_v1  ;;  %v1672_v39 = vpop.f32.mrf.mxu2  ;;  %v4507_v1 = vld [vmem:[%s7613_s0 + $0x40] sm:$0xf0] }
 0x127   :  { %v1673_v9 = vadd.f32 %v1672_v39, %v5319_v51  ;;  %v1841_v28 = vpop.f32.mrf.mxu3  ;;  %v3539_v39 = vld [vmem:[%s7613_s0 + $0x44] sm:$0xf0] }
 0x128   :  { %v1594_v63 = vpop.f32.mrf.mxu0  ;;  %v5826_v19 = vor.u32 %v4505_v30, %v3539_v39 }
 0x129   :  { %v5798_v21 = vadd.f32 %v1841_v28, %v1673_v9  ;;  %v1595_v2 = vadd.f32 %v1594_v63, %v5319_v51 }
 0x12a   :  { %7791 = vst [vmem:[#allocation69_spill] sm:$0xff] %v5826_v19 }
 0x12b   :  { %7788 = vst [vmem:[#allocation66_spill] sm:$0xff] %v5798_v21  ;;  %v1763_v49 = vpop.f32.mrf.mxu1 }
 0x12c   :  { %v5801_v59 = vadd.f32 %v1763_v49, %v1595_v2  ;;  %v5822_v2 = vor.u32 %v4507_v1, %v3537_v40  ;;  %v5824_v49 = vor.u32 %v4508_v57, %v3545_v32 }
 0x12e   :  { %v1674_v9 = vpop.f32.mrf.mxu2  ;;  %7789 = vst [vmem:[#allocation67_spill] sm:$0xff] %v5822_v2 }
 0x12f   :  { %v1675_v28 = vadd.f32 %v1674_v9, %v5319_v51  ;;  %v1843_v63 = vpop.f32.mrf.mxu3  ;;  %7790 = vst [vmem:[#allocation68_spill] sm:$0xff] %v5824_v49 }
 0x130   :  { %v1597_v21 = vpop.f32.mrf.mxu0 }
 0x131   :  { %v5828_v18 = vadd.f32 %v1843_v63, %v1675_v28  ;;  %v1598_v20 = vadd.f32 %v1597_v21, %v5319_v51  ;;  %v4513_v28 = vld [vmem:[%s7613_s0 + $0x70] sm:$0xf0]  ;;  %v4510_v63 = vld [vmem:[%s7613_s0 + $0x5c] sm:$0xf] }
 0x133   :  { %7792 = vst [vmem:[#allocation70_spill] sm:$0xff] %v5828_v18  ;;  %v1766_v29 = vpop.f32.mrf.mxu1  ;;  %1894 = vmatmul.bf16.gmra.mxu2 %v5822_v2  ;;  %4436 = vmatmul.msk.bf16.gmra.mxu0 %vm1446_vm0, %v5824_v49 }
 0x134   :  { %v5832_v47 = vadd.f32 %v1766_v29, %v1598_v20  ;;  %2063 = vmatmul.bf16.gmra.mxu3 %v5826_v19  ;;  %v3557_v20 = vld [vmem:[%s7613_s0 + $0x58] sm:$0xf]  ;;  %v3565_v29 = vld [vmem:[%s7613_s0 + $0x60] sm:$0xf] }
 0x136   :  { %2401 = vmatmul.bf16.gmra.mxu1 %v5000_v26  ;;  %v1677_v40 = vpop.f32.mrf.mxu2  ;;  %v4512_v26 = vld [vmem:[%s7613_s0 + $0x68] sm:$0xf0] }
 0x137   :  { %v1678_v1 = vadd.f32 %v1677_v40, %v5319_v51  ;;  %v1846_v32 = vpop.f32.mrf.mxu3  ;;  %v3559_v40 = vld [vmem:[%s7613_s0 + $0x6c] sm:$0xf0] }
 0x138   :  { %v1599_v57 = vpop.f32.mrf.mxu0  ;;  %v5867_v49 = vor.u32 %v4510_v63, %v3559_v40 }
 0x139   :  { %v5839_v30 = vadd.f32 %v1846_v32, %v1678_v1  ;;  %v1600_v21 = vadd.f32 %v1599_v57, %v5319_v51 }
 0x13a   :  { %7796 = vst [vmem:[#allocation74_spill] sm:$0xff] %v5867_v49 }
 0x13b   :  { %7793 = vst [vmem:[#allocation71_spill] sm:$0xff] %v5839_v30  ;;  %v1768_v39 = vpop.f32.mrf.mxu1 }
 0x13c   :  { %v5842_v9 = vadd.f32 %v1768_v39, %v1600_v21  ;;  %v5863_v21 = vor.u32 %v4512_v26, %v3557_v20  ;;  %v5865_v39 = vor.u32 %v4513_v28, %v3565_v29  ;;  %v4687_v20 = vld [vmem:[%s7614_s1 + $0xe4] sm:$0xf]  ;;  %v4263_v26 = vld [vmem:[%s7614_s1 + $0xe8] sm:$0xf0] }
 0x13e   :  { %v1679_v1 = vpop.f32.mrf.mxu2  ;;  %7794 = vst [vmem:[#allocation72_spill] sm:$0xff] %v5863_v21 }
 0x13f   :  { %v1680_v32 = vadd.f32 %v1679_v1, %v5319_v51  ;;  %v1848_v57 = vpop.f32.mrf.mxu3  ;;  %7795 = vst [vmem:[#allocation73_spill] sm:$0xff] %v5865_v39 }
 0x140   :  { %v1602_v30 = vpop.f32.mrf.mxu0 }
 0x141   :  { %v5869_v2 = vadd.f32 %v1848_v57, %v1680_v32  ;;  %v1603_v19 = vadd.f32 %v1602_v30, %v5319_v51  ;;  %v4703_v30 = vld [vmem:[%s7614_s1 + $0x164] sm:$0xf] }
 0x143   :  { %7797 = vst [vmem:[#allocation75_spill] sm:$0xff] %v5869_v2  ;;  %v1771_v18 = vpop.f32.mrf.mxu1  ;;  %1899 = vmatmul.bf16.gmra.mxu2 %v5863_v21  ;;  %4437 = vmatmul.msk.bf16.gmra.mxu0 %vm1446_vm0, %v5865_v39 }
 0x144   :  { %v5873_v41 = vadd.f32 %v1771_v18, %v1603_v19  ;;  %2068 = vmatmul.bf16.gmra.mxu3 %v5867_v49  ;;  %v4266_v18 = vor.u32 %v4687_v20, %v4263_v26  ;;  %v4327_v19 = vld [vmem:[%s7614_s1 + $0x168] sm:$0xf0]  ;;  %v4719_v20 = vld [vmem:[%s7614_s1 + $0x1e4] sm:$0xf] }
 0x145   :  { %v4330_v28 = vor.u32 %v4703_v30, %v4327_v19  ;;  %v4391_v26 = vld [vmem:[%s7614_s1 + $0x1e8] sm:$0xf0]  ;;  %v4517_v30 = vld [vmem:[%s7613_s0 + $0x90] sm:$0xf0] }
 0x146   :  { %2406 = vmatmul.bf16.gmra.mxu1 %v5036_v38  ;;  %v1682_v29 = vpop.f32.mrf.mxu2  ;;  %2558 = vmatpush.bf16.msra.mxu2 %v4266_v18  ;;  %v3577_v38 = vld [vmem:[%s7613_s0 + $0x80] sm:$0xf]  ;;  %v4518_v18 = vld [vmem:[%s7613_s0 + $0x98] sm:$0xf0]  ;;  %v4394_v19 = vor.u32 %v4719_v20, %v4391_v26 }
 0x147   :  { %v1683_v63 = vadd.f32 %v1682_v29, %v5319_v51  ;;  %v1851_v40 = vpop.f32.mrf.mxu3  ;;  %2727 = vmatpush.bf16.msra.mxu3 %v4330_v28  ;;  %v4515_v29 = vld [vmem:[%s7613_s0 + $0x84] sm:$0xf]  ;;  %v3579_v28 = vld [vmem:[%s7613_s0 + $0x94] sm:$0xf0] }
 0x148   :  { %v1604_v1 = vpop.f32.mrf.mxu0  ;;  %2896 = vmatpush.bf16.msra.mxu0 %v4394_v19  ;;  %v5926_v2 = vor.u32 %v4515_v29, %v3579_v28 }
 0x149   :  { %v5892_v32 = vadd.f32 %v1851_v40, %v1683_v63  ;;  %v1605_v57 = vadd.f32 %v1604_v1, %v5319_v51 }
 0x14a   :  { %7801 = vst [vmem:[#allocation79_spill] sm:$0xff] %v5926_v2 }
 0x14b   :  { %7798 = vst [vmem:[#allocation76_spill] sm:$0xff] %v5892_v32  ;;  %v1773_v39 = vpop.f32.mrf.mxu1 }
 0x14c   :  { %v5895_v21 = vadd.f32 %v1773_v39, %v1605_v57  ;;  %v3585_v39 = vld [vmem:[%s7613_s0 + $0x88] sm:$0xf]  ;;  %v5922_v57 = vor.u32 %v4517_v30, %v3577_v38 }
 0x14d   :  { %v5924_v32 = vor.u32 %v4518_v18, %v3585_v39 }
 0x14e   :  { %v1684_v63 = vpop.f32.mrf.mxu2  ;;  %7799 = vst [vmem:[#allocation77_spill] sm:$0xff] %v5922_v57 }
 0x14f   :  { %v1685_v40 = vadd.f32 %v1684_v63, %v5319_v51  ;;  %v1853_v1 = vpop.f32.mrf.mxu3  ;;  %7800 = vst [vmem:[#allocation78_spill] sm:$0xff] %v5924_v32  ;;  %v3605_v63 = vld [vmem:[%s7613_s0 + $0xb0] sm:$0xf] }
 0x150   :  { %v1607_v49 = vpop.f32.mrf.mxu0 }
 0x151   :  { %v5928_v20 = vadd.f32 %v1853_v1, %v1685_v40  ;;  %v1608_v26 = vadd.f32 %v1607_v49, %v5319_v51  ;;  %v4523_v40 = vld [vmem:[%s7613_s0 + $0xc0] sm:$0xf0]  ;;  %v4520_v1 = vld [vmem:[%s7613_s0 + $0xac] sm:$0xf] }
 0x153   :  { %7802 = vst [vmem:[#allocation80_spill] sm:$0xff] %v5928_v20  ;;  %v1776_v5 = vpop.f32.mrf.mxu1  ;;  %1904 = vmatmul.bf16.gmra.mxu2 %v5922_v57  ;;  %4438 = vmatmul.msk.bf16.gmra.mxu0 %vm1446_vm0, %v5924_v32 }
 0x154   :  { %v5932_v11 = vadd.f32 %v1776_v5, %v1608_v26  ;;  %2073 = vmatmul.bf16.gmra.mxu3 %v5926_v2  ;;  %v3597_v5 = vld [vmem:[%s7613_s0 + $0xa8] sm:$0xf]  ;;  %v3599_v26 = vld [vmem:[%s7613_s0 + $0xbc] sm:$0xf0] }
 0x156   :  { %2411 = vmatmul.bf16.gmra.mxu1 %v5096_v62  ;;  %v1687_v38 = vpop.f32.mrf.mxu2  ;;  %v4522_v62 = vld [vmem:[%s7613_s0 + $0xb8] sm:$0xf0] }
 0x157   :  { %v1688_v30 = vadd.f32 %v1687_v38, %v5319_v51  ;;  %v1856_v39 = vpop.f32.mrf.mxu3 }
 0x158   :  { %v1609_v18 = vpop.f32.mrf.mxu0 }
 0x159   :  { %v5939_v19 = vadd.f32 %v1856_v39, %v1688_v30  ;;  %v1610_v49 = vadd.f32 %v1609_v18, %v5319_v51  ;;  %v5963_v18 = vor.u32 %v4522_v62, %v3597_v5 }
 0x15b   :  { %7803 = vst [vmem:[#allocation81_spill] sm:$0xff] %v5939_v19  ;;  %v1778_v29 = vpop.f32.mrf.mxu1  ;;  %v5967_v19 = vor.u32 %v4520_v1, %v3599_v26 }
 0x15c   :  { %v5942_v28 = vadd.f32 %v1778_v29, %v1610_v49  ;;  %7804 = vst [vmem:[#allocation82_spill] sm:$0xff] %v5963_v18  ;;  %v5965_v49 = vor.u32 %v4523_v40, %v3605_v63 }
 0x15d   :  { %7806 = vst [vmem:[#allocation84_spill] sm:$0xff] %v5967_v19 }
 0x15e   :  { %v1689_v38 = vpop.f32.mrf.mxu2  ;;  %7805 = vst [vmem:[#allocation83_spill] sm:$0xff] %v5965_v49 }
 0x15f   :  { %v1690_v30 = vadd.f32 %v1689_v38, %v5319_v51  ;;  %v1858_v39 = vpop.f32.mrf.mxu3 }
 0x160   :  { %v1612_v29 = vpop.f32.mrf.mxu0 }
 0x161   :  { %v5969_v32 = vadd.f32 %v1858_v39, %v1690_v30  ;;  %v1613_v57 = vadd.f32 %v1612_v29, %v5319_v51  ;;  %v4528_v39 = vld [vmem:[%s7613_s0 + $0xe8] sm:$0xf0]  ;;  %v4525_v29 = vld [vmem:[%s7613_s0 + $0xd4] sm:$0xf] }
 0x163   :  { %7807 = vst [vmem:[#allocation85_spill] sm:$0xff] %v5969_v32  ;;  %v1781_v2 = vpop.f32.mrf.mxu1  ;;  %1909 = vmatmul.bf16.gmra.mxu2 %v5963_v18  ;;  %4439 = vmatmul.msk.bf16.gmra.mxu0 %vm1446_vm0, %v5965_v49 }
 0x164   :  { %v5973_v20 = vadd.f32 %v1781_v2, %v1613_v57  ;;  %2078 = vmatmul.bf16.gmra.mxu3 %v5967_v19  ;;  %v3617_v2 = vld [vmem:[%s7613_s0 + $0xd0] sm:$0xf]  ;;  %v3625_v57 = vld [vmem:[%s7613_s0 + $0xd8] sm:$0xf] }
 0x166   :  { %2416 = vmatmul.bf16.gmra.mxu1 %v5132_v14  ;;  %v1692_v5 = vpop.f32.mrf.mxu2  ;;  %v4527_v14 = vld [vmem:[%s7613_s0 + $0xe0] sm:$0xf0] }
 0x167   :  { %v1693_v62 = vadd.f32 %v1692_v5, %v5319_v51  ;;  %v1861_v63 = vpop.f32.mrf.mxu3  ;;  %v3619_v5 = vld [vmem:[%s7613_s0 + $0xe4] sm:$0xf0] }
 0x168   :  { %v1614_v40 = vpop.f32.mrf.mxu0  ;;  %v6008_v49 = vor.u32 %v4525_v29, %v3619_v5 }
 0x169   :  { %v5980_v1 = vadd.f32 %v1861_v63, %v1693_v62  ;;  %v1615_v26 = vadd.f32 %v1614_v40, %v5319_v51 }
 0x16a   :  { %7811 = vst [vmem:[#allocation89_spill] sm:$0xff] %v6008_v49 }
 0x16b   :  { %7808 = vst [vmem:[#allocation86_spill] sm:$0xff] %v5980_v1  ;;  %v1783_v38 = vpop.f32.mrf.mxu1 }
 0x16c   :  { %v5983_v30 = vadd.f32 %v1783_v38, %v1615_v26  ;;  %v6004_v26 = vor.u32 %v4527_v14, %v3617_v2  ;;  %v6006_v38 = vor.u32 %v4528_v39, %v3625_v57 }
 0x16e   :  { %v1694_v62 = vpop.f32.mrf.mxu2  ;;  %7809 = vst [vmem:[#allocation87_spill] sm:$0xff] %v6004_v26 }
 0x16f   :  { %v1695_v63 = vadd.f32 %v1694_v62, %v5319_v51  ;;  %v1863_v40 = vpop.f32.mrf.mxu3  ;;  %7810 = vst [vmem:[#allocation88_spill] sm:$0xff] %v6006_v38 }
 0x170   :  { %v1617_v1 = vpop.f32.mrf.mxu0 }
 0x171   :  { %v6010_v18 = vadd.f32 %v1863_v40, %v1695_v63  ;;  %v1618_v19 = vadd.f32 %v1617_v1, %v5319_v51  ;;  %v4533_v63 = vld [vmem:[%s7613_s0 + $0x110] sm:$0xf0]  ;;  %v4530_v40 = vld [vmem:[%s7613_s0 + $0xfc] sm:$0xf] }
 0x173   :  { %7812 = vst [vmem:[#allocation90_spill] sm:$0xff] %v6010_v18  ;;  %v1786_v32 = vpop.f32.mrf.mxu1  ;;  %1914 = vmatmul.bf16.gmra.mxu2 %v6004_v26  ;;  %4440 = vmatmul.msk.bf16.gmra.mxu0 %vm1446_vm0, %v6006_v38 }
 0x174   :  { %v6014_v22 = vadd.f32 %v1786_v32, %v1618_v19  ;;  %2083 = vmatmul.bf16.gmra.mxu3 %v6008_v49  ;;  %v3637_v32 = vld [vmem:[%s7613_s0 + $0xf8] sm:$0xf]  ;;  %v3645_v19 = vld [vmem:[%s7613_s0 + $0x100] sm:$0xf] }
 0x176   :  { %2421 = vmatmul.bf16.gmra.mxu1 %v5186_v43  ;;  %v1697_v2 = vpop.f32.mrf.mxu2  ;;  %v4532_v43 = vld [vmem:[%s7613_s0 + $0x108] sm:$0xf0] }
 0x177   :  { %v1698_v14 = vadd.f32 %v1697_v2, %v5319_v51  ;;  %v1866_v57 = vpop.f32.mrf.mxu3  ;;  %v3639_v2 = vld [vmem:[%s7613_s0 + $0x10c] sm:$0xf0] }
 0x178   :  { %v1619_v39 = vpop.f32.mrf.mxu0  ;;  %v6049_v38 = vor.u32 %v4530_v40, %v3639_v2 }
 0x179   :  { %v6021_v29 = vadd.f32 %v1866_v57, %v1698_v14  ;;  %v1620_v1 = vadd.f32 %v1619_v39, %v5319_v51 }
 0x17a   :  { %7816 = vst [vmem:[#allocation94_spill] sm:$0xff] %v6049_v38 }
 0x17b   :  { %7813 = vst [vmem:[#allocation91_spill] sm:$0xff] %v6021_v29  ;;  %v1788_v5 = vpop.f32.mrf.mxu1 }
 0x17c   :  { %v6024_v62 = vadd.f32 %v1788_v5, %v1620_v1  ;;  %v6045_v1 = vor.u32 %v4532_v43, %v3637_v32  ;;  %v6047_v5 = vor.u32 %v4533_v63, %v3645_v19  ;;  %v4685_v32 = vld [vmem:[%s7614_s1 + $0xd4] sm:$0xf]  ;;  %v4255_v43 = vld [vmem:[%s7614_s1 + $0xd8] sm:$0xf0] }
 0x17e   :  { %v1699_v14 = vpop.f32.mrf.mxu2  ;;  %7814 = vst [vmem:[#allocation92_spill] sm:$0xff] %v6045_v1 }
 0x17f   :  { %v1700_v57 = vadd.f32 %v1699_v14, %v5319_v51  ;;  %v1868_v39 = vpop.f32.mrf.mxu3  ;;  %7815 = vst [vmem:[#allocation93_spill] sm:$0xff] %v6047_v5 }
 0x180   :  { %v1622_v29 = vpop.f32.mrf.mxu0 }
 0x181   :  { %v6051_v26 = vadd.f32 %v1868_v39, %v1700_v57  ;;  %v1623_v49 = vadd.f32 %v1622_v29, %v5319_v51  ;;  %v4258_v29 = vor.u32 %v4685_v32, %v4255_v43  ;;  %v3657_v43 = vld [vmem:[%s7613_s0 + $0x120] sm:$0xf] }
 0x183   :  { %7817 = vst [vmem:[#allocation95_spill] sm:$0xff] %v6051_v26  ;;  %v1791_v18 = vpop.f32.mrf.mxu1  ;;  %1919 = vmatmul.bf16.gmra.mxu2 %v6045_v1  ;;  %4441 = vmatmul.msk.bf16.gmra.mxu0 %vm1446_vm0, %v6047_v5 }
 0x184   :  { %v6055_v52 = vadd.f32 %v1791_v18, %v1623_v49  ;;  %2088 = vmatmul.bf16.gmra.mxu3 %v6049_v38  ;;  %v4701_v18 = vld [vmem:[%s7614_s1 + $0x154] sm:$0xf]  ;;  %v4319_v49 = vld [vmem:[%s7614_s1 + $0x158] sm:$0xf0]  ;;  %2559 = vmatpush.bf16.msra.mxu2 %v4258_v29  ;;  %v4535_v29 = vld [vmem:[%s7613_s0 + $0x124] sm:$0xf] }
 0x185   :  { %v4322_v63 = vor.u32 %v4701_v18, %v4319_v49  ;;  %v4537_v18 = vld [vmem:[%s7613_s0 + $0x130] sm:$0xf0]  ;;  %v3665_v49 = vld [vmem:[%s7613_s0 + $0x128] sm:$0xf] }
 0x186   :  { %7818 = vst [vmem:[#allocation96_spill] sm:$0xff] %v6055_v52  ;;  %2426 = vmatmul.bf16.gmra.mxu1 %v5222_v55  ;;  %v1702_v19 = vpop.f32.mrf.mxu2  ;;  %v6104_v5 = vor.u32 %v4537_v18, %v3657_v43  ;;  %v4727_v43 = vld [vmem:[%s7614_s1 + $0x224] sm:$0xf] }
 0x187   :  { %v1703_v40 = vadd.f32 %v1702_v19, %v5319_v51  ;;  %v1871_v2 = vpop.f32.mrf.mxu3  ;;  %2728 = vmatpush.bf16.msra.mxu3 %v4322_v63  ;;  %v4538_v19 = vld [vmem:[%s7613_s0 + $0x138] sm:$0xf0]  ;;  %v3659_v63 = vld [vmem:[%s7613_s0 + $0x134] sm:$0xf0] }
 0x188   :  { %v1624_v14 = vpop.f32.mrf.mxu0  ;;  %v6106_v1 = vor.u32 %v4538_v19, %v3665_v49  ;;  %v6108_v26 = vor.u32 %v4535_v29, %v3659_v63 }
 0x189   :  { %v6074_v57 = vadd.f32 %v1871_v2, %v1703_v40  ;;  %v1625_v55 = vadd.f32 %v1624_v14, %v5319_v51  ;;  %v4717_v40 = vld [vmem:[%s7614_s1 + $0x1d4] sm:$0xf]  ;;  %v4383_v2 = vld [vmem:[%s7614_s1 + $0x1d8] sm:$0xf0] }
 0x18b   :  { %7819 = vst [vmem:[#allocation97_spill] sm:$0xff] %v6074_v57  ;;  %v1793_v39 = vpop.f32.mrf.mxu1 }
 0x18c   :  { %v6077_v32 = vadd.f32 %v1793_v39, %v1625_v55  ;;  %v4386_v55 = vor.u32 %v4717_v40, %v4383_v2  ;;  %v3677_v40 = vld [vmem:[%s7613_s0 + $0x148] sm:$0xf]  ;;  %v4542_v2 = vld [vmem:[%s7613_s0 + $0x158] sm:$0xf0] }
 0x18e   :  { %7820 = vst [vmem:[#allocation98_spill] sm:$0xff] %v6077_v32  ;;  %v1704_v14 = vpop.f32.mrf.mxu2  ;;  %2897 = vmatpush.bf16.msra.mxu0 %v4386_v55  ;;  %v4543_v55 = vld [vmem:[%s7613_s0 + $0x160] sm:$0xf0] }
 0x18f   :  { %v1705_v39 = vadd.f32 %v1704_v14, %v5319_v51  ;;  %v1873_v57 = vpop.f32.mrf.mxu3  ;;  %v3685_v14 = vld [vmem:[%s7613_s0 + $0x150] sm:$0xf] }
 0x190   :  { %v1627_v38 = vpop.f32.mrf.mxu0 }
 0x191   :  { %v6110_v23 = vadd.f32 %v1873_v57, %v1705_v39  ;;  %v1628_v32 = vadd.f32 %v1627_v38, %v5319_v51  ;;  %v4423_v38 = vld [vmem:[%s7614_s1 + $0x228] sm:$0xf0] }
 0x192   :  { %v4426_v18 = vor.u32 %v4727_v43, %v4423_v38  ;;  %v4540_v39 = vld [vmem:[%s7613_s0 + $0x14c] sm:$0xf]  ;;  %v3679_v43 = vld [vmem:[%s7613_s0 + $0x15c] sm:$0xf0] }
 0x193   :  { %v1796_v52 = vpop.f32.mrf.mxu1  ;;  %1924 = vmatmul.bf16.gmra.mxu2 %v6104_v5  ;;  %4442 = vmatmul.msk.bf16.gmra.mxu0 %vm1446_vm0, %v6106_v1 }
 0x194   :  { %v6114_v54 = vadd.f32 %v1796_v52, %v1628_v32  ;;  %2093 = vmatmul.bf16.gmra.mxu3 %v6108_v26  ;;  %3069 = vmatpush.bf16.msra.mxu1 %v4426_v18 }
 0x196   :  { %2431 = vmatmul.bf16.gmra.mxu1 %v5276_v24  ;;  %v1707_v57 = vpop.f32.mrf.mxu2 }
 0x197   :  { %v1708_v52 = vadd.f32 %v1707_v57, %v5319_v51  ;;  %v1876_v32 = vpop.f32.mrf.mxu3 }
 0x198   :  { %v1629_v29 = vpop.f32.mrf.mxu0 }
 0x199   :  { %v6127_v49 = vadd.f32 %v1876_v32, %v1708_v52  ;;  %v1630_v19 = vadd.f32 %v1629_v29, %v5319_v51  ;;  %v6151_v52 = vor.u32 %v4542_v2, %v3677_v40  ;;  %v6153_v32 = vor.u32 %v4543_v55, %v3685_v14 }
 0x19b   :  { %7821 = vst [vmem:[#allocation99_spill] sm:$0xff] %v6127_v49  ;;  %v1798_v24 = vpop.f32.mrf.mxu1 }
 0x19c   :  { %v6130_v63 = vadd.f32 %v1798_v24, %v1630_v19  ;;  %7822 = vst [vmem:[#allocation100_spill] sm:$0xff] %v6151_v52  ;;  %v6155_v19 = vor.u32 %v4540_v39, %v3679_v43 }
 0x19d   :  { %7823 = vst [vmem:[#allocation101_spill] sm:$0xff] %v6153_v32 }
 0x19e   :  { %v1709_v38 = vpop.f32.mrf.mxu2  ;;  %7824 = vst [vmem:[#allocation102_spill] sm:$0xff] %v6155_v19 }
 0x19f   :  { %v1710_v57 = vadd.f32 %v1709_v38, %v5319_v51  ;;  %v1878_v18 = vpop.f32.mrf.mxu3  ;;  %v3697_v38 = vld [vmem:[%s7613_s0 + $0x170] sm:$0xf] }
 0x1a0   :  { %v2228_v29 = vpop.f32.mrf.mxu0 }
 0x1a1   :  { %v6157_v24 = vadd.f32 %v1878_v18, %v1710_v57  ;;  %v4547_v57 = vld [vmem:[%s7613_s0 + $0x180] sm:$0xf0]  ;;  %v4545_v18 = vld [vmem:[%s7613_s0 + $0x174] sm:$0xf] }
 0x1a3   :  { %v6159_v49 = vpop.f32.mrf.mxu1  ;;  %1929 = vmatmul.bf16.gmra.mxu2 %v6151_v52  ;;  %4443 = vmatmul.msk.bf16.gmra.mxu0 %vm1446_vm0, %v6153_v32 }
 0x1a4   :  { %7825 = vst [vmem:[#allocation103_spill] sm:$0xff] %v6159_v49  ;;  %2098 = vmatmul.bf16.gmra.mxu3 %v6155_v19 }
 0x1a6   :  { %2436 = vmatmul.bf16.gmra.mxu1 %v5323_v53  ;;  %v1890_v51 = vpop.f32.mrf.mxu2  ;;  %v3705_v53 = vld [vmem:[%s7613_s0 + $0x178] sm:$0xf] }
 0x1a7   :  { %v1891_v40 = vadd.f32 %v1890_v51, %v5331_v7  ;;  %v2059_v2 = vpop.f32.mrf.mxu3  ;;  %v4548_v7 = vld [vmem:[%s7613_s0 + $0x188] sm:$0xf0] }
 0x1a8   :  { %v2230_v14 = vpop.f32.mrf.mxu0 }
 0x1a9   :  { %v2060_v55 = vadd.f32 %v2059_v2, %v1891_v40 }
 0x1ab   :  { %v6167_v39 = vpop.f32.mrf.mxu1  ;;  %v6169_v43 = vadd.f32 %v2228_v29, %v2060_v55  ;;  %v3699_v29 = vld [vmem:[%s7613_s0 + $0x184] sm:$0xf0]  ;;  %v6190_v55 = vor.u32 %v4547_v57, %v3697_v38 }
 0x1ac   :  { %7826 = vst [vmem:[#allocation104_spill] sm:$0xff] %v6167_v39  ;;  %v6194_v32 = vor.u32 %v4545_v18, %v3699_v29 }
 0x1ad   :  { %7827 = vst [vmem:[#allocation105_spill] sm:$0xff] %v6169_v43  ;;  %v6192_v43 = vor.u32 %v4548_v7, %v3705_v53 }
 0x1ae   :  { %v1892_v51 = vpop.f32.mrf.mxu2 }
 0x1af   :  { %v1893_v40 = vadd.f32 %v1892_v51, %v5352_v33  ;;  %v2061_v2 = vpop.f32.mrf.mxu3  ;;  %7828 = vst [vmem:[#allocation106_spill] sm:$0xff] %v6192_v43  ;;  %v3719_v51 = vld [vmem:[%s7613_s0 + $0x1ac] sm:$0xf0] }
 0x1b0   :  { %v2233_v39 = vpop.f32.mrf.mxu0 }
 0x1b1   :  { %v2062_v49 = vadd.f32 %v2061_v2, %v1893_v40 }
 0x1b3   :  { %v6196_v52 = vpop.f32.mrf.mxu1  ;;  %v6198_v19 = vadd.f32 %v2230_v14, %v2062_v49  ;;  %1934 = vmatmul.bf16.gmra.mxu2 %v6190_v55  ;;  %4444 = vmatmul.msk.bf16.gmra.mxu0 %vm1446_vm0, %v6192_v43  ;;  %v3717_v49 = vld [vmem:[%s7613_s0 + $0x198] sm:$0xf]  ;;  %v4552_v14 = vld [vmem:[%s7613_s0 + $0x1a8] sm:$0xf0] }
 0x1b4   :  { %2103 = vmatmul.bf16.gmra.mxu3 %v6194_v32 }
 0x1b5   :  { %7829 = vst [vmem:[#allocation107_spill] sm:$0xff] %v6198_v19 }
 0x1b6   :  { %2441 = vmatmul.bf16.gmra.mxu1 %v5381_v8  ;;  %v1895_v33 = vpop.f32.mrf.mxu2  ;;  %v3725_v8 = vld [vmem:[%s7613_s0 + $0x1a0] sm:$0xf] }
 0x1b7   :  { %v1896_v38 = vadd.f32 %v1895_v33, %v5397_v31  ;;  %v2064_v57 = vpop.f32.mrf.mxu3  ;;  %v4553_v31 = vld [vmem:[%s7613_s0 + $0x1b0] sm:$0xf0] }
 0x1b8   :  { %v2235_v53 = vpop.f32.mrf.mxu0 }
 0x1b9   :  { %v2065_v7 = vadd.f32 %v2064_v57, %v1896_v38  ;;  %v6229_v38 = vor.u32 %v4552_v14, %v3717_v49  ;;  %v6231_v57 = vor.u32 %v4553_v31, %v3725_v8  ;;  %v4247_v49 = vld [vmem:[%s7614_s1 + $0xc8] sm:$0xf0] }
 0x1ba   :  { %v4311_v8 = vld [vmem:[%s7614_s1 + $0x148] sm:$0xf0] }
 0x1bb   :  { %v6206_v18 = vpop.f32.mrf.mxu1  ;;  %v6208_v29 = vadd.f32 %v2233_v39, %v2065_v7  ;;  %v4550_v39 = vld [vmem:[%s7613_s0 + $0x19c] sm:$0xf]  ;;  %7832 = vst [vmem:[#allocation110_spill] sm:$0xff] %v6229_v38 }
 0x1bc   :  { %7830 = vst [vmem:[#allocation108_spill] sm:$0xff] %v6206_v18 }
 0x1bd   :  { %7831 = vst [vmem:[#allocation109_spill] sm:$0xff] %v6208_v29  ;;  %v6233_v29 = vor.u32 %v4550_v39, %v3719_v51 }
 0x1be   :  { %v1897_v40 = vpop.f32.mrf.mxu2  ;;  %7833 = vst [vmem:[#allocation111_spill] sm:$0xff] %v6231_v57 }
 0x1bf   :  { %v1898_v2 = vadd.f32 %v1897_v40, %v5406_v48  ;;  %v2066_v33 = vpop.f32.mrf.mxu3  ;;  %7834 = vst [vmem:[#allocation112_spill] sm:$0xff] %v6233_v29  ;;  %v4683_v48 = vld [vmem:[%s7614_s1 + $0xc4] sm:$0xf] }
 0x1c0   :  { %v2238_v7 = vpop.f32.mrf.mxu0 }
 0x1c1   :  { %v2067_v18 = vadd.f32 %v2066_v33, %v1898_v2 }
 0x1c3   :  { %v6235_v19 = vpop.f32.mrf.mxu1  ;;  %v6237_v43 = vadd.f32 %v2235_v53, %v2067_v18  ;;  %1939 = vmatmul.bf16.gmra.mxu2 %v6229_v38  ;;  %4445 = vmatmul.msk.bf16.gmra.mxu0 %vm1446_vm0, %v6231_v57  ;;  %v4250_v53 = vor.u32 %v4683_v48, %v4247_v49  ;;  %v4699_v18 = vld [vmem:[%s7614_s1 + $0x144] sm:$0xf]  ;;  %v3737_v48 = vld [vmem:[%s7613_s0 + $0x1c0] sm:$0xf]  ;;  %v4557_v49 = vld [vmem:[%s7613_s0 + $0x1d0] sm:$0xf0] }
 0x1c4   :  { %7835 = vst [vmem:[#allocation113_spill] sm:$0xff] %v6235_v19  ;;  %2108 = vmatmul.bf16.gmra.mxu3 %v6233_v29  ;;  %v4314_v39 = vor.u32 %v4699_v18, %v4311_v8  ;;  %v4715_v18 = vld [vmem:[%s7614_s1 + $0x1c4] sm:$0xf]  ;;  %v4375_v8 = vld [vmem:[%s7614_s1 + $0x1c8] sm:$0xf0] }
 0x1c5   :  { %7836 = vst [vmem:[#allocation114_spill] sm:$0xff] %v6237_v43  ;;  %2560 = vmatpush.bf16.msra.mxu2 %v4250_v53  ;;  %v3739_v53 = vld [vmem:[%s7613_s0 + $0x1d4] sm:$0xf0] }
 0x1c6   :  { %2446 = vmatmul.bf16.gmra.mxu1 %v5435_v35  ;;  %v1900_v14 = vpop.f32.mrf.mxu2  ;;  %2729 = vmatpush.bf16.msra.mxu3 %v4314_v39 }
 0x1c7   :  { %v1901_v35 = vadd.f32 %v1900_v14, %v5445_v56  ;;  %v2069_v31 = vpop.f32.mrf.mxu3  ;;  %v4555_v56 = vld [vmem:[%s7613_s0 + $0x1c4] sm:$0xf]  ;;  %v3745_v14 = vld [vmem:[%s7613_s0 + $0x1c8] sm:$0xf] }
 0x1c8   :  { %v2240_v51 = vpop.f32.mrf.mxu0  ;;  %v6290_v57 = vor.u32 %v4555_v56, %v3739_v53 }
 0x1c9   :  { %v2070_v40 = vadd.f32 %v2069_v31, %v1901_v35  ;;  %v4378_v31 = vor.u32 %v4715_v18, %v4375_v8  ;;  %v3759_v18 = vld [vmem:[%s7613_s0 + $0x1fc] sm:$0xf0] }
 0x1cb   :  { %v6257_v2 = vpop.f32.mrf.mxu1  ;;  %v6259_v33 = vadd.f32 %v2238_v7, %v2070_v40  ;;  %v4558_v7 = vld [vmem:[%s7613_s0 + $0x1d8] sm:$0xf0]  ;;  %2898 = vmatpush.bf16.msra.mxu0 %v4378_v31 }
 0x1cc   :  { %7837 = vst [vmem:[#allocation115_spill] sm:$0xff] %v6257_v2  ;;  %v6288_v2 = vor.u32 %v4558_v7, %v3745_v14 }
 0x1cd   :  { %7838 = vst [vmem:[#allocation116_spill] sm:$0xff] %v6259_v33  ;;  %v6286_v33 = vor.u32 %v4557_v49, %v3737_v48 }
 0x1ce   :  { %v1902_v35 = vpop.f32.mrf.mxu2 }
 0x1cf   :  { %v1903_v39 = vadd.f32 %v1902_v35, %v5466_v36  ;;  %v2071_v40 = vpop.f32.mrf.mxu3 }
 0x1d0   :  { %v2243_v43 = vpop.f32.mrf.mxu0 }
 0x1d1   :  { %v2072_v19 = vadd.f32 %v2071_v40, %v1903_v39 }
 0x1d3   :  { %v6292_v38 = vpop.f32.mrf.mxu1  ;;  %v6294_v29 = vadd.f32 %v2240_v51, %v2072_v19  ;;  %1944 = vmatmul.bf16.gmra.mxu2 %v6286_v33  ;;  %4446 = vmatmul.msk.bf16.gmra.mxu0 %vm1446_vm0, %v6288_v2  ;;  %v3757_v19 = vld [vmem:[%s7613_s0 + $0x1e8] sm:$0xf]  ;;  %v4562_v51 = vld [vmem:[%s7613_s0 + $0x1f8] sm:$0xf0] }
 0x1d4   :  { %2113 = vmatmul.bf16.gmra.mxu3 %v6290_v57  ;;  %v6325_v39 = vor.u32 %v4562_v51, %v3757_v19 }
 0x1d6   :  { %2451 = vmatmul.bf16.gmra.mxu1 %v5501_v44  ;;  %v1905_v36 = vpop.f32.mrf.mxu2  ;;  %v3765_v44 = vld [vmem:[%s7613_s0 + $0x1f0] sm:$0xf] }
 0x1d7   :  { %v1906_v48 = vadd.f32 %v1905_v36, %v5517_v60  ;;  %v2074_v49 = vpop.f32.mrf.mxu3  ;;  %v4563_v60 = vld [vmem:[%s7613_s0 + $0x200] sm:$0xf0] }
 0x1d8   :  { %v2245_v56 = vpop.f32.mrf.mxu0  ;;  %v6327_v40 = vor.u32 %v4563_v60, %v3765_v44 }
 0x1d9   :  { %v2075_v14 = vadd.f32 %v2074_v49, %v1906_v48 }
 0x1da   :  { %7840 = vst [vmem:[#allocation118_spill] sm:$0xff] %v6327_v40 }
 0x1db   :  { %v6302_v7 = vpop.f32.mrf.mxu1  ;;  %v6304_v53 = vadd.f32 %v2243_v43, %v2075_v14  ;;  %v4560_v43 = vld [vmem:[%s7613_s0 + $0x1ec] sm:$0xf] }
 0x1dc   :  { %v6329_v48 = vor.u32 %v4560_v43, %v3759_v18 }
 0x1dd   :  { %7839 = vst [vmem:[#allocation117_spill] sm:$0xff] %v6304_v53 }
 0x1de   :  { %v1907_v8 = vpop.f32.mrf.mxu2 }
 0x1df   :  { %v1908_v35 = vadd.f32 %v1907_v8, %v5526_v58  ;;  %v2076_v31 = vpop.f32.mrf.mxu3  ;;  %v4567_v8 = vld [vmem:[%s7613_s0 + $0x220] sm:$0xf0] }
 0x1e0   :  { %v2248_v36 = vpop.f32.mrf.mxu0 }
 0x1e1   :  { %v2077_v49 = vadd.f32 %v2076_v31, %v1908_v35  ;;  %v4565_v35 = vld [vmem:[%s7613_s0 + $0x214] sm:$0xf]  ;;  %v3779_v31 = vld [vmem:[%s7613_s0 + $0x224] sm:$0xf0] }
 0x1e3   :  { %v6331_v14 = vpop.f32.mrf.mxu1  ;;  %v6333_v53 = vadd.f32 %v2245_v56, %v2077_v49  ;;  %1949 = vmatmul.bf16.gmra.mxu2 %v6325_v39  ;;  %4447 = vmatmul.msk.bf16.gmra.mxu0 %vm1446_vm0, %v6327_v40  ;;  %v3777_v56 = vld [vmem:[%s7613_s0 + $0x210] sm:$0xf] }
 0x1e4   :  { %2118 = vmatmul.bf16.gmra.mxu3 %v6329_v48 }
 0x1e5   :  { %7841 = vst [vmem:[#allocation119_spill] sm:$0xff] %v6333_v53 }
 0x1e6   :  { %2456 = vmatmul.bf16.gmra.mxu1 %v5555_v4  ;;  %v1910_v58 = vpop.f32.mrf.mxu2  ;;  %v3785_v4 = vld [vmem:[%s7613_s0 + $0x218] sm:$0xf] }
 0x1e7   :  { %v1911_v19 = vadd.f32 %v1910_v58, %v5565_v16  ;;  %v2079_v51 = vpop.f32.mrf.mxu3  ;;  %v4568_v16 = vld [vmem:[%s7613_s0 + $0x228] sm:$0xf0] }
 0x1e8   :  { %v2250_v44 = vpop.f32.mrf.mxu0 }
 0x1e9   :  { %v2080_v60 = vadd.f32 %v2079_v51, %v1911_v19  ;;  %v6364_v19 = vor.u32 %v4567_v8, %v3777_v56  ;;  %v6366_v51 = vor.u32 %v4568_v16, %v3785_v4 }
 0x1eb   :  { %v6341_v43 = vpop.f32.mrf.mxu1  ;;  %v6343_v18 = vadd.f32 %v2248_v36, %v2080_v60  ;;  %7844 = vst [vmem:[#allocation122_spill] sm:$0xff] %v6366_v51 }
 0x1ec   :  { %7842 = vst [vmem:[#allocation120_spill] sm:$0xff] %v6341_v43 }
 0x1ed   :  { %7843 = vst [vmem:[#allocation121_spill] sm:$0xff] %v6343_v18  ;;  %v6368_v18 = vor.u32 %v4565_v35, %v3779_v31 }
 0x1ee   :  { %v1912_v36 = vpop.f32.mrf.mxu2 }
 0x1ef   :  { %v1913_v49 = vadd.f32 %v1912_v36, %v5586_v50  ;;  %v2081_v58 = vpop.f32.mrf.mxu3  ;;  %v4570_v36 = vld [vmem:[%s7613_s0 + $0x23c] sm:$0xf] }
 0x1f0   :  { %v2253_v60 = vpop.f32.mrf.mxu0 }
 0x1f1   :  { %v2082_v43 = vadd.f32 %v2081_v58, %v1913_v49  ;;  %v3799_v49 = vld [vmem:[%s7613_s0 + $0x24c] sm:$0xf0] }
 0x1f3   :  { %v6370_v53 = vpop.f32.mrf.mxu1  ;;  %v6372_v40 = vadd.f32 %v2250_v44, %v2082_v43  ;;  %1954 = vmatmul.bf16.gmra.mxu2 %v6364_v19  ;;  %4448 = vmatmul.msk.bf16.gmra.mxu0 %vm1446_vm0, %v6366_v51  ;;  %v3797_v44 = vld [vmem:[%s7613_s0 + $0x238] sm:$0xf]  ;;  %v4572_v43 = vld [vmem:[%s7613_s0 + $0x248] sm:$0xf0] }
 0x1f4   :  { %2123 = vmatmul.bf16.gmra.mxu3 %v6368_v18 }
 0x1f5   :  { %7845 = vst [vmem:[#allocation123_spill] sm:$0xff] %v6372_v40 }
 0x1f6   :  { %2461 = vmatmul.bf16.gmra.mxu1 %v5615_v17  ;;  %v1915_v50 = vpop.f32.mrf.mxu2  ;;  %v3805_v17 = vld [vmem:[%s7613_s0 + $0x240] sm:$0xf] }
 0x1f7   :  { %v1916_v56 = vadd.f32 %v1915_v50, %v5631_v45  ;;  %v2084_v8 = vpop.f32.mrf.mxu3  ;;  %v4573_v45 = vld [vmem:[%s7613_s0 + $0x250] sm:$0xf0] }
 0x1f8   :  { %v2255_v4 = vpop.f32.mrf.mxu0 }
 0x1f9   :  { %v2085_v16 = vadd.f32 %v2084_v8, %v1916_v56  ;;  %v6403_v56 = vor.u32 %v4572_v43, %v3797_v44  ;;  %v6405_v8 = vor.u32 %v4573_v45, %v3805_v17  ;;  %v4239_v44 = vld [vmem:[%s7614_s1 + $0xb8] sm:$0xf0] }
 0x1fa   :  { %v4303_v17 = vld [vmem:[%s7614_s1 + $0x138] sm:$0xf0] }
 0x1fb   :  { %v6380_v35 = vpop.f32.mrf.mxu1  ;;  %v6382_v31 = vadd.f32 %v2253_v60, %v2085_v16  ;;  %7848 = vst [vmem:[#allocation126_spill] sm:$0xff] %v6403_v56 }
 0x1fc   :  { %7846 = vst [vmem:[#allocation124_spill] sm:$0xff] %v6380_v35 }
 0x1fd   :  { %7847 = vst [vmem:[#allocation125_spill] sm:$0xff] %v6382_v31  ;;  %v6407_v31 = vor.u32 %v4570_v36, %v3799_v49 }
 0x1fe   :  { %v1917_v58 = vpop.f32.mrf.mxu2  ;;  %7849 = vst [vmem:[#allocation127_spill] sm:$0xff] %v6405_v8 }
 0x1ff   :  { %v1918_v60 = vadd.f32 %v1917_v58, %v5640_v12  ;;  %v2086_v50 = vpop.f32.mrf.mxu3  ;;  %7850 = vst [vmem:[#allocation128_spill] sm:$0xff] %v6407_v31  ;;  %v4681_v12 = vld [vmem:[%s7614_s1 + $0xb4] sm:$0xf] }
 0x200   :  { %v2258_v16 = vpop.f32.mrf.mxu0 }
 0x201   :  { %v2087_v35 = vadd.f32 %v2086_v50, %v1918_v60 }
 0x203   :  { %v6409_v40 = vpop.f32.mrf.mxu1  ;;  %v6411_v51 = vadd.f32 %v2255_v4, %v2087_v35  ;;  %1959 = vmatmul.bf16.gmra.mxu2 %v6403_v56  ;;  %4449 = vmatmul.msk.bf16.gmra.mxu0 %vm1446_vm0, %v6405_v8  ;;  %v4242_v4 = vor.u32 %v4681_v12, %v4239_v44  ;;  %v4697_v35 = vld [vmem:[%s7614_s1 + $0x134] sm:$0xf]  ;;  %v3817_v12 = vld [vmem:[%s7613_s0 + $0x260] sm:$0xf] }
 0x204   :  { %7851 = vst [vmem:[#allocation129_spill] sm:$0xff] %v6409_v40  ;;  %2128 = vmatmul.bf16.gmra.mxu3 %v6407_v31  ;;  %v4306_v36 = vor.u32 %v4697_v35, %v4303_v17  ;;  %v4577_v44 = vld [vmem:[%s7613_s0 + $0x270] sm:$0xf0]  ;;  %v4367_v17 = vld [vmem:[%s7614_s1 + $0x1b8] sm:$0xf0] }
 0x205   :  { %7852 = vst [vmem:[#allocation130_spill] sm:$0xff] %v6411_v51  ;;  %2561 = vmatpush.bf16.msra.mxu2 %v4242_v4  ;;  %v3819_v4 = vld [vmem:[%s7613_s0 + $0x274] sm:$0xf0]  ;;  %v4713_v35 = vld [vmem:[%s7614_s1 + $0x1b4] sm:$0xf] }
 0x206   :  { %2466 = vmatmul.bf16.gmra.mxu1 %v5669_v6  ;;  %v1920_v43 = vpop.f32.mrf.mxu2  ;;  %2730 = vmatpush.bf16.msra.mxu3 %v4306_v36 }
 0x207   :  { %v1921_v6 = vadd.f32 %v1920_v43, %v5679_v46  ;;  %v2089_v45 = vpop.f32.mrf.mxu3  ;;  %v4575_v46 = vld [vmem:[%s7613_s0 + $0x264] sm:$0xf]  ;;  %v3825_v43 = vld [vmem:[%s7613_s0 + $0x268] sm:$0xf] }
 0x208   :  { %v2260_v49 = vpop.f32.mrf.mxu0  ;;  %v6464_v8 = vor.u32 %v4575_v46, %v3819_v4 }
 0x209   :  { %v2090_v58 = vadd.f32 %v2089_v45, %v1921_v6  ;;  %v4370_v45 = vor.u32 %v4713_v35, %v4367_v17  ;;  %v4582_v17 = vld [vmem:[%s7613_s0 + $0x298] sm:$0xf0] }
 0x20b   :  { %v6431_v60 = vpop.f32.mrf.mxu1  ;;  %v6433_v50 = vadd.f32 %v2258_v16, %v2090_v58  ;;  %v4578_v16 = vld [vmem:[%s7613_s0 + $0x278] sm:$0xf0]  ;;  %2899 = vmatpush.bf16.msra.mxu0 %v4370_v45  ;;  %v3839_v45 = vld [vmem:[%s7613_s0 + $0x29c] sm:$0xf0] }
 0x20c   :  { %7853 = vst [vmem:[#allocation131_spill] sm:$0xff] %v6431_v60  ;;  %v6462_v60 = vor.u32 %v4578_v16, %v3825_v43 }
 0x20d   :  { %7854 = vst [vmem:[#allocation132_spill] sm:$0xff] %v6433_v50  ;;  %v6460_v50 = vor.u32 %v4577_v44, %v3817_v12  ;;  %v4415_v12 = vld [vmem:[%s7614_s1 + $0x218] sm:$0xf0] }
 0x20e   :  { %v1922_v6 = vpop.f32.mrf.mxu2 }
 0x20f   :  { %v1923_v36 = vadd.f32 %v1922_v6, %v5700_v15  ;;  %v2091_v58 = vpop.f32.mrf.mxu3  ;;  %v4725_v15 = vld [vmem:[%s7614_s1 + $0x214] sm:$0xf]  ;;  %v4583_v6 = vld [vmem:[%s7613_s0 + $0x2a0] sm:$0xf0] }
 0x210   :  { %v2263_v51 = vpop.f32.mrf.mxu0 }
 0x211   :  { %v2092_v40 = vadd.f32 %v2091_v58, %v1923_v36 }
 0x213   :  { %v6466_v56 = vpop.f32.mrf.mxu1  ;;  %v6468_v31 = vadd.f32 %v2260_v49, %v2092_v40  ;;  %1964 = vmatmul.bf16.gmra.mxu2 %v6460_v50  ;;  %4450 = vmatmul.msk.bf16.gmra.mxu0 %vm1446_vm0, %v6462_v60  ;;  %v4418_v40 = vor.u32 %v4725_v15, %v4415_v12 }
 0x214   :  { %2133 = vmatmul.bf16.gmra.mxu3 %v6464_v8 }
 0x215   :  { %3070 = vmatpush.bf16.msra.mxu1 %v4418_v40 }
 0x216   :  { %2471 = vmatmul.bf16.gmra.mxu1 %v5735_v3  ;;  %v1925_v44 = vpop.f32.mrf.mxu2  ;;  %v3837_v3 = vld [vmem:[%s7613_s0 + $0x288] sm:$0xf] }
 0x217   :  { %v1926_v49 = vadd.f32 %v1925_v44, %v5751_v27  ;;  %v2094_v46 = vpop.f32.mrf.mxu3  ;;  %v3845_v27 = vld [vmem:[%s7613_s0 + $0x290] sm:$0xf]  ;;  %v6505_v12 = vor.u32 %v4582_v17, %v3837_v3 }
 0x218   :  { %v2265_v43 = vpop.f32.mrf.mxu0  ;;  %v6507_v44 = vor.u32 %v4583_v6, %v3845_v27 }
 0x219   :  { %v2095_v16 = vadd.f32 %v2094_v46, %v1926_v49 }
 0x21a   :  { %7856 = vst [vmem:[#allocation134_spill] sm:$0xff] %v6507_v44 }
 0x21b   :  { %v6482_v4 = vpop.f32.mrf.mxu1  ;;  %v6484_v35 = vadd.f32 %v2263_v51, %v2095_v16  ;;  %v4580_v51 = vld [vmem:[%s7613_s0 + $0x28c] sm:$0xf] }
 0x21c   :  { %v6509_v49 = vor.u32 %v4580_v51, %v3839_v45 }
 0x21d   :  { %7855 = vst [vmem:[#allocation133_spill] sm:$0xff] %v6484_v35 }
 0x21e   :  { %v1927_v36 = vpop.f32.mrf.mxu2 }
 0x21f   :  { %v1928_v58 = vadd.f32 %v1927_v36, %v5760_v10  ;;  %v2096_v15 = vpop.f32.mrf.mxu3  ;;  %v4587_v36 = vld [vmem:[%s7613_s0 + $0x2c0] sm:$0xf0] }
 0x220   :  { %v2268_v40 = vpop.f32.mrf.mxu0 }
 0x221   :  { %v2097_v46 = vadd.f32 %v2096_v15, %v1928_v58  ;;  %v4585_v58 = vld [vmem:[%s7613_s0 + $0x2b4] sm:$0xf]  ;;  %v3859_v15 = vld [vmem:[%s7613_s0 + $0x2c4] sm:$0xf0] }
 0x223   :  { %v6511_v16 = vpop.f32.mrf.mxu1  ;;  %v6513_v35 = vadd.f32 %v2265_v43, %v2097_v46  ;;  %1969 = vmatmul.bf16.gmra.mxu2 %v6505_v12  ;;  %4451 = vmatmul.msk.bf16.gmra.mxu0 %vm1446_vm0, %v6507_v44  ;;  %v3857_v43 = vld [vmem:[%s7613_s0 + $0x2b0] sm:$0xf] }
 0x224   :  { %2138 = vmatmul.bf16.gmra.mxu3 %v6509_v49 }
 0x225   :  { %7857 = vst [vmem:[#allocation135_spill] sm:$0xff] %v6513_v35 }
 0x226   :  { %2476 = vmatmul.bf16.gmra.mxu1 %v4938_v0  ;;  %v1930_v10 = vpop.f32.mrf.mxu2  ;;  %v3865_v0 = vld [vmem:[%s7613_s0 + $0x2b8] sm:$0xf] }
 0x227   :  { %v1931_v3 = vadd.f32 %v1930_v10, %v5791_v34  ;;  %v2099_v17 = vpop.f32.mrf.mxu3  ;;  %v4588_v34 = vld [vmem:[%s7613_s0 + $0x2c8] sm:$0xf0] }
 0x228   :  { %v2270_v27 = vpop.f32.mrf.mxu0 }
 0x229   :  { %v2100_v6 = vadd.f32 %v2099_v17, %v1931_v3  ;;  %v6544_v3 = vor.u32 %v4587_v36, %v3857_v43  ;;  %v6546_v17 = vor.u32 %v4588_v34, %v3865_v0 }
 0x22b   :  { %v6521_v51 = vpop.f32.mrf.mxu1  ;;  %v6523_v45 = vadd.f32 %v2268_v40, %v2100_v6  ;;  %7860 = vst [vmem:[#allocation138_spill] sm:$0xff] %v6546_v17 }
 0x22c   :  { %7858 = vst [vmem:[#allocation136_spill] sm:$0xff] %v6521_v51 }
 0x22d   :  { %7859 = vst [vmem:[#allocation137_spill] sm:$0xff] %v6523_v45  ;;  %v6548_v45 = vor.u32 %v4585_v58, %v3859_v15 }
 0x22e   :  { %v1932_v40 = vpop.f32.mrf.mxu2 }
 0x22f   :  { %v1933_v46 = vadd.f32 %v1932_v40, %v5801_v59  ;;  %v2101_v10 = vpop.f32.mrf.mxu3  ;;  %v4590_v40 = vld [vmem:[%s7613_s0 + $0x2dc] sm:$0xf] }
 0x230   :  { %v2273_v6 = vpop.f32.mrf.mxu0 }
 0x231   :  { %v2102_v51 = vadd.f32 %v2101_v10, %v1933_v46  ;;  %v3879_v46 = vld [vmem:[%s7613_s0 + $0x2ec] sm:$0xf0] }
 0x233   :  { %v6550_v35 = vpop.f32.mrf.mxu1  ;;  %v6552_v44 = vadd.f32 %v2270_v27, %v2102_v51  ;;  %1974 = vmatmul.bf16.gmra.mxu2 %v6544_v3  ;;  %4452 = vmatmul.msk.bf16.gmra.mxu0 %vm1446_vm0, %v6546_v17  ;;  %v3877_v27 = vld [vmem:[%s7613_s0 + $0x2d8] sm:$0xf]  ;;  %v4592_v51 = vld [vmem:[%s7613_s0 + $0x2e8] sm:$0xf0] }
 0x234   :  { %2143 = vmatmul.bf16.gmra.mxu3 %v6548_v45 }
 0x235   :  { %7861 = vst [vmem:[#allocation139_spill] sm:$0xff] %v6552_v44 }
 0x236   :  { %2481 = vmatmul.bf16.gmra.mxu1 %v4998_v25  ;;  %v1935_v59 = vpop.f32.mrf.mxu2  ;;  %v3885_v25 = vld [vmem:[%s7613_s0 + $0x2e0] sm:$0xf] }
 0x237   :  { %v1936_v43 = vadd.f32 %v1935_v59, %v5832_v47  ;;  %v2104_v36 = vpop.f32.mrf.mxu3  ;;  %v4593_v47 = vld [vmem:[%s7613_s0 + $0x2f0] sm:$0xf0] }
 0x238   :  { %v2275_v0 = vpop.f32.mrf.mxu0 }
 0x239   :  { %v2105_v34 = vadd.f32 %v2104_v36, %v1936_v43  ;;  %v6583_v43 = vor.u32 %v4592_v51, %v3877_v27  ;;  %v6585_v36 = vor.u32 %v4593_v47, %v3885_v25  ;;  %v4231_v27 = vld [vmem:[%s7614_s1 + $0xa8] sm:$0xf0] }
 0x23a   :  { %v4295_v25 = vld [vmem:[%s7614_s1 + $0x128] sm:$0xf0] }
 0x23b   :  { %v6560_v58 = vpop.f32.mrf.mxu1  ;;  %v6562_v15 = vadd.f32 %v2273_v6, %v2105_v34  ;;  %7864 = vst [vmem:[#allocation142_spill] sm:$0xff] %v6583_v43 }
 0x23c   :  { %7862 = vst [vmem:[#allocation140_spill] sm:$0xff] %v6560_v58 }
 0x23d   :  { %7863 = vst [vmem:[#allocation141_spill] sm:$0xff] %v6562_v15  ;;  %v6587_v15 = vor.u32 %v4590_v40, %v3879_v46 }
 0x23e   :  { %v1937_v10 = vpop.f32.mrf.mxu2  ;;  %7865 = vst [vmem:[#allocation143_spill] sm:$0xff] %v6585_v36 }
 0x23f   :  { %v1938_v6 = vadd.f32 %v1937_v10, %v5842_v9  ;;  %v2106_v59 = vpop.f32.mrf.mxu3  ;;  %7866 = vst [vmem:[#allocation144_spill] sm:$0xff] %v6587_v15  ;;  %v4679_v9 = vld [vmem:[%s7614_s1 + $0xa4] sm:$0xf] }
 0x240   :  { %v2278_v34 = vpop.f32.mrf.mxu0 }
 0x241   :  { %v2107_v58 = vadd.f32 %v2106_v59, %v1938_v6 }
 0x243   :  { %v6589_v44 = vpop.f32.mrf.mxu1  ;;  %v6591_v17 = vadd.f32 %v2275_v0, %v2107_v58  ;;  %1979 = vmatmul.bf16.gmra.mxu2 %v6583_v43  ;;  %4453 = vmatmul.msk.bf16.gmra.mxu0 %vm1446_vm0, %v6585_v36  ;;  %v4234_v0 = vor.u32 %v4679_v9, %v4231_v27  ;;  %v4695_v58 = vld [vmem:[%s7614_s1 + $0x124] sm:$0xf]  ;;  %v3897_v9 = vld [vmem:[%s7613_s0 + $0x300] sm:$0xf]  ;;  %v4597_v27 = vld [vmem:[%s7613_s0 + $0x310] sm:$0xf0] }
 0x244   :  { %7867 = vst [vmem:[#allocation145_spill] sm:$0xff] %v6589_v44  ;;  %2148 = vmatmul.bf16.gmra.mxu3 %v6587_v15  ;;  %v4298_v40 = vor.u32 %v4695_v58, %v4295_v25  ;;  %v4711_v58 = vld [vmem:[%s7614_s1 + $0x1a4] sm:$0xf]  ;;  %v4359_v25 = vld [vmem:[%s7614_s1 + $0x1a8] sm:$0xf0] }
 0x245   :  { %7868 = vst [vmem:[#allocation146_spill] sm:$0xff] %v6591_v17  ;;  %2562 = vmatpush.bf16.msra.mxu2 %v4234_v0  ;;  %v3899_v0 = vld [vmem:[%s7613_s0 + $0x314] sm:$0xf0] }
 0x246   :  { %2486 = vmatmul.bf16.gmra.mxu1 %v5034_v37  ;;  %v1940_v51 = vpop.f32.mrf.mxu2  ;;  %2731 = vmatpush.bf16.msra.mxu3 %v4298_v40 }
 0x247   :  { %v1941_v37 = vadd.f32 %v1940_v51, %v5873_v41  ;;  %v2109_v47 = vpop.f32.mrf.mxu3  ;;  %v4595_v41 = vld [vmem:[%s7613_s0 + $0x304] sm:$0xf]  ;;  %v3905_v51 = vld [vmem:[%s7613_s0 + $0x308] sm:$0xf] }
 0x248   :  { %v2280_v46 = vpop.f32.mrf.mxu0  ;;  %v6644_v36 = vor.u32 %v4595_v41, %v3899_v0 }
 0x249   :  { %v2110_v10 = vadd.f32 %v2109_v47, %v1941_v37  ;;  %v4362_v47 = vor.u32 %v4711_v58, %v4359_v25  ;;  %v3919_v58 = vld [vmem:[%s7613_s0 + $0x33c] sm:$0xf0] }
 0x24b   :  { %v6611_v6 = vpop.f32.mrf.mxu1  ;;  %v6613_v59 = vadd.f32 %v2278_v34, %v2110_v10  ;;  %v4598_v34 = vld [vmem:[%s7613_s0 + $0x318] sm:$0xf0]  ;;  %2900 = vmatpush.bf16.msra.mxu0 %v4362_v47 }
 0x24c   :  { %7869 = vst [vmem:[#allocation147_spill] sm:$0xff] %v6611_v6  ;;  %v6642_v6 = vor.u32 %v4598_v34, %v3905_v51 }
 0x24d   :  { %7870 = vst [vmem:[#allocation148_spill] sm:$0xff] %v6613_v59  ;;  %v6640_v59 = vor.u32 %v4597_v27, %v3897_v9 }
 0x24e   :  { %v1942_v37 = vpop.f32.mrf.mxu2 }
 0x24f   :  { %v1943_v40 = vadd.f32 %v1942_v37, %v5895_v21  ;;  %v2111_v10 = vpop.f32.mrf.mxu3 }
 0x250   :  { %v2283_v17 = vpop.f32.mrf.mxu0 }
 0x251   :  { %v2112_v44 = vadd.f32 %v2111_v10, %v1943_v40 }
 0x253   :  { %v6646_v43 = vpop.f32.mrf.mxu1  ;;  %v6648_v15 = vadd.f32 %v2280_v46, %v2112_v44  ;;  %1984 = vmatmul.bf16.gmra.mxu2 %v6640_v59  ;;  %4454 = vmatmul.msk.bf16.gmra.mxu0 %vm1446_vm0, %v6642_v6  ;;  %v3917_v44 = vld [vmem:[%s7613_s0 + $0x328] sm:$0xf]  ;;  %v4602_v46 = vld [vmem:[%s7613_s0 + $0x338] sm:$0xf0] }
 0x254   :  { %2153 = vmatmul.bf16.gmra.mxu3 %v6644_v36  ;;  %v6679_v40 = vor.u32 %v4602_v46, %v3917_v44 }
 0x256   :  { %2491 = vmatmul.bf16.gmra.mxu1 %v5094_v61  ;;  %v1945_v21 = vpop.f32.mrf.mxu2  ;;  %v3925_v61 = vld [vmem:[%s7613_s0 + $0x330] sm:$0xf] }
 0x257   :  { %v1946_v9 = vadd.f32 %v1945_v21, %v5932_v11  ;;  %v2114_v27 = vpop.f32.mrf.mxu3  ;;  %v4603_v11 = vld [vmem:[%s7613_s0 + $0x340] sm:$0xf0] }
 0x258   :  { %v2285_v41 = vpop.f32.mrf.mxu0  ;;  %v6681_v10 = vor.u32 %v4603_v11, %v3925_v61 }
 0x259   :  { %v2115_v51 = vadd.f32 %v2114_v27, %v1946_v9 }
 0x25a   :  { %7872 = vst [vmem:[#allocation150_spill] sm:$0xff] %v6681_v10 }
 0x25b   :  { %v6656_v34 = vpop.f32.mrf.mxu1  ;;  %v6658_v0 = vadd.f32 %v2283_v17, %v2115_v51  ;;  %v4600_v17 = vld [vmem:[%s7613_s0 + $0x32c] sm:$0xf] }
 0x25c   :  { %v6683_v9 = vor.u32 %v4600_v17, %v3919_v58 }
 0x25d   :  { %7871 = vst [vmem:[#allocation149_spill] sm:$0xff] %v6658_v0 }
 0x25e   :  { %v1947_v25 = vpop.f32.mrf.mxu2 }
 0x25f   :  { %v1948_v37 = vadd.f32 %v1947_v25, %v5942_v28  ;;  %v2116_v47 = vpop.f32.mrf.mxu3  ;;  %v4607_v25 = vld [vmem:[%s7613_s0 + $0x360] sm:$0xf0] }
 0x260   :  { %v2288_v21 = vpop.f32.mrf.mxu0 }
 0x261   :  { %v2117_v27 = vadd.f32 %v2116_v47, %v1948_v37  ;;  %v4605_v37 = vld [vmem:[%s7613_s0 + $0x354] sm:$0xf]  ;;  %v3939_v47 = vld [vmem:[%s7613_s0 + $0x364] sm:$0xf0] }
 0x263   :  { %v6685_v51 = vpop.f32.mrf.mxu1  ;;  %v6687_v0 = vadd.f32 %v2285_v41, %v2117_v27  ;;  %1989 = vmatmul.bf16.gmra.mxu2 %v6679_v40  ;;  %4455 = vmatmul.msk.bf16.gmra.mxu0 %vm1446_vm0, %v6681_v10  ;;  %v3937_v41 = vld [vmem:[%s7613_s0 + $0x350] sm:$0xf] }
 0x264   :  { %2158 = vmatmul.bf16.gmra.mxu3 %v6683_v9 }
 0x265   :  { %7873 = vst [vmem:[#allocation151_spill] sm:$0xff] %v6687_v0 }
 0x266   :  { %2496 = vmatmul.bf16.gmra.mxu1 %v5130_v13  ;;  %v1950_v28 = vpop.f32.mrf.mxu2  ;;  %v3945_v13 = vld [vmem:[%s7613_s0 + $0x358] sm:$0xf] }
 0x267   :  { %v1951_v44 = vadd.f32 %v1950_v28, %v5973_v20  ;;  %v2119_v46 = vpop.f32.mrf.mxu3  ;;  %v4608_v20 = vld [vmem:[%s7613_s0 + $0x368] sm:$0xf0] }
 0x268   :  { %v2290_v61 = vpop.f32.mrf.mxu0 }
 0x269   :  { %v2120_v11 = vadd.f32 %v2119_v46, %v1951_v44  ;;  %v6718_v44 = vor.u32 %v4607_v25, %v3937_v41  ;;  %v6720_v46 = vor.u32 %v4608_v20, %v3945_v13 }
 0x26b   :  { %v6695_v17 = vpop.f32.mrf.mxu1  ;;  %v6697_v58 = vadd.f32 %v2288_v21, %v2120_v11  ;;  %7876 = vst [vmem:[#allocation154_spill] sm:$0xff] %v6718_v44 }
 0x26c   :  { %7874 = vst [vmem:[#allocation152_spill] sm:$0xff] %v6695_v17 }
 0x26d   :  { %7875 = vst [vmem:[#allocation153_spill] sm:$0xff] %v6697_v58  ;;  %v6722_v58 = vor.u32 %v4605_v37, %v3939_v47 }
 0x26e   :  { %v1952_v21 = vpop.f32.mrf.mxu2  ;;  %7877 = vst [vmem:[#allocation155_spill] sm:$0xff] %v6720_v46 }
 0x26f   :  { %v1953_v27 = vadd.f32 %v1952_v21, %v5983_v30  ;;  %v2121_v28 = vpop.f32.mrf.mxu3  ;;  %7878 = vst [vmem:[#allocation156_spill] sm:$0xff] %v6722_v58  ;;  %v4610_v21 = vld [vmem:[%s7613_s0 + $0x37c] sm:$0xf] }
 0x270   :  { %v2293_v11 = vpop.f32.mrf.mxu0 }
 0x271   :  { %v2122_v17 = vadd.f32 %v2121_v28, %v1953_v27  ;;  %v3959_v27 = vld [vmem:[%s7613_s0 + $0x38c] sm:$0xf0] }
 0x273   :  { %v6724_v0 = vpop.f32.mrf.mxu1  ;;  %v6726_v10 = vadd.f32 %v2290_v61, %v2122_v17  ;;  %1994 = vmatmul.bf16.gmra.mxu2 %v6718_v44  ;;  %4456 = vmatmul.msk.bf16.gmra.mxu0 %vm1446_vm0, %v6720_v46  ;;  %v3957_v61 = vld [vmem:[%s7613_s0 + $0x378] sm:$0xf]  ;;  %v4612_v17 = vld [vmem:[%s7613_s0 + $0x388] sm:$0xf0] }
 0x274   :  { %7879 = vst [vmem:[#allocation157_spill] sm:$0xff] %v6724_v0  ;;  %2163 = vmatmul.bf16.gmra.mxu3 %v6722_v58 }
 0x275   :  { %7880 = vst [vmem:[#allocation158_spill] sm:$0xff] %v6726_v10 }
 0x276   :  { %2501 = vmatmul.bf16.gmra.mxu1 %v5184_v42  ;;  %v1955_v30 = vpop.f32.mrf.mxu2  ;;  %v3965_v42 = vld [vmem:[%s7613_s0 + $0x380] sm:$0xf] }
 0x277   :  { %v1956_v41 = vadd.f32 %v1955_v30, %v6014_v22  ;;  %v2124_v25 = vpop.f32.mrf.mxu3  ;;  %v4613_v22 = vld [vmem:[%s7613_s0 + $0x390] sm:$0xf0] }
 0x278   :  { %v2295_v13 = vpop.f32.mrf.mxu0 }
 0x279   :  { %v2125_v20 = vadd.f32 %v2124_v25, %v1956_v41  ;;  %v6757_v41 = vor.u32 %v4612_v17, %v3957_v61  ;;  %v6759_v25 = vor.u32 %v4613_v22, %v3965_v42  ;;  %v4677_v61 = vld [vmem:[%s7614_s1 + $0x94] sm:$0xf]  ;;  %v4223_v17 = vld [vmem:[%s7614_s1 + $0x98] sm:$0xf0] }
 0x27a   :  { %v4287_v22 = vld [vmem:[%s7614_s1 + $0x118] sm:$0xf0] }
 0x27b   :  { %v6734_v37 = vpop.f32.mrf.mxu1  ;;  %v6736_v47 = vadd.f32 %v2293_v11, %v2125_v20  ;;  %7883 = vst [vmem:[#allocation161_spill] sm:$0xff] %v6757_v41 }
 0x27c   :  { %7881 = vst [vmem:[#allocation159_spill] sm:$0xff] %v6734_v37 }
 0x27d   :  { %7882 = vst [vmem:[#allocation160_spill] sm:$0xff] %v6736_v47  ;;  %v6761_v47 = vor.u32 %v4610_v21, %v3959_v27  ;;  %v7889_v21 = vld [vmem:[#allocation96_spill] sm:$0xff] }
 0x27e   :  { %v1957_v28 = vpop.f32.mrf.mxu2  ;;  %7884 = vst [vmem:[#allocation162_spill] sm:$0xff] %v6759_v25 }
 0x27f   :  { %v1958_v11 = vadd.f32 %v1957_v28, %v6024_v62  ;;  %v2126_v30 = vpop.f32.mrf.mxu3  ;;  %7885 = vst [vmem:[#allocation163_spill] sm:$0xff] %v6761_v47  ;;  %v7888_v62 = vld [vmem:[#allocation17_spill] sm:$0xff] }
 0x280   :  { %v2298_v20 = vpop.f32.mrf.mxu0 }
 0x281   :  { %v2127_v37 = vadd.f32 %v2126_v30, %v1958_v11 }
 0x283   :  { %v6763_v10 = vpop.f32.mrf.mxu1  ;;  %v6765_v46 = vadd.f32 %v2295_v13, %v2127_v37  ;;  %1999 = vmatmul.bf16.gmra.mxu2 %v6757_v41  ;;  %4457 = vmatmul.msk.bf16.gmra.mxu0 %vm1446_vm0, %v6759_v25  ;;  %v4226_v13 = vor.u32 %v4677_v61, %v4223_v17  ;;  %v4693_v37 = vld [vmem:[%s7614_s1 + $0x114] sm:$0xf]  ;;  %v3977_v61 = vld [vmem:[%s7613_s0 + $0x3a0] sm:$0xf] }
 0x284   :  { %7886 = vst [vmem:[#allocation164_spill] sm:$0xff] %v6763_v10  ;;  %2168 = vmatmul.bf16.gmra.mxu3 %v6761_v47  ;;  %v4290_v11 = vor.u32 %v4693_v37, %v4287_v22  ;;  %v4617_v17 = vld [vmem:[%s7613_s0 + $0x3b0] sm:$0xf0]  ;;  %v3979_v37 = vld [vmem:[%s7613_s0 + $0x3b4] sm:$0xf0] }
 0x285   :  { %7887 = vst [vmem:[#allocation165_spill] sm:$0xff] %v6765_v46  ;;  %2563 = vmatpush.bf16.msra.mxu2 %v4226_v13  ;;  %v3985_v13 = vld [vmem:[%s7613_s0 + $0x3a8] sm:$0xf]  ;;  %v4709_v22 = vld [vmem:[%s7614_s1 + $0x194] sm:$0xf] }
 0x286   :  { %2506 = vmatmul.bf16.gmra.mxu1 %v7888_v62  ;;  %v1960_v42 = vpop.f32.mrf.mxu2  ;;  %2732 = vmatpush.bf16.msra.mxu3 %v4290_v11  ;;  %v7892_v11 = vld [vmem:[#allocation98_spill] sm:$0xff] }
 0x287   :  { %v1961_v27 = vadd.f32 %v1960_v42, %v7889_v21  ;;  %v2129_v28 = vpop.f32.mrf.mxu3  ;;  %v4615_v42 = vld [vmem:[%s7613_s0 + $0x3a4] sm:$0xf]  ;;  %v4351_v21 = vld [vmem:[%s7614_s1 + $0x198] sm:$0xf0] }
 0x288   :  { %v2300_v30 = vpop.f32.mrf.mxu0  ;;  %v6818_v47 = vor.u32 %v4615_v42, %v3979_v37 }
 0x289   :  { %v2130_v62 = vadd.f32 %v2129_v28, %v1961_v27  ;;  %v4354_v28 = vor.u32 %v4709_v22, %v4351_v21 }
 0x28b   :  { %v6785_v46 = vpop.f32.mrf.mxu1  ;;  %v6787_v25 = vadd.f32 %v2298_v20, %v2130_v62  ;;  %v4618_v20 = vld [vmem:[%s7613_s0 + $0x3b8] sm:$0xf0]  ;;  %2901 = vmatpush.bf16.msra.mxu0 %v4354_v28 }
 0x28c   :  { %7890 = vst [vmem:[#allocation17_spill] sm:$0xff] %v6785_v46  ;;  %v6814_v46 = vor.u32 %v4617_v17, %v3977_v61  ;;  %v6816_v10 = vor.u32 %v4618_v20, %v3985_v13  ;;  %v7896_v61 = vld [vmem:[#allocation20_spill] sm:$0xff]  ;;  %v4723_v17 = vld [vmem:[%s7614_s1 + $0x204] sm:$0xf] }
 0x28d   :  { %7891 = vst [vmem:[#allocation96_spill] sm:$0xff] %v6787_v25  ;;  %v4622_v28 = vld [vmem:[%s7613_s0 + $0x3d8] sm:$0xf0] }
 0x28e   :  { %v1962_v27 = vpop.f32.mrf.mxu2  ;;  %7893 = vst [vmem:[#allocation98_spill] sm:$0xff] %v6816_v10 }
 0x28f   :  { %v1963_v62 = vadd.f32 %v1962_v27, %v7892_v11  ;;  %v2131_v25 = vpop.f32.mrf.mxu3  ;;  %v3997_v27 = vld [vmem:[%s7613_s0 + $0x3c8] sm:$0xf]  ;;  %v4623_v11 = vld [vmem:[%s7613_s0 + $0x3e0] sm:$0xf0] }
 0x290   :  { %v2303_v41 = vpop.f32.mrf.mxu0 }
 0x291   :  { %v2132_v0 = vadd.f32 %v2131_v25, %v1963_v62  ;;  %v4407_v25 = vld [vmem:[%s7614_s1 + $0x208] sm:$0xf0]  ;;  %v3999_v62 = vld [vmem:[%s7613_s0 + $0x3dc] sm:$0xf0] }
 0x293   :  { %v6820_v44 = vpop.f32.mrf.mxu1  ;;  %v6822_v58 = vadd.f32 %v2300_v30, %v2132_v0  ;;  %2004 = vmatmul.bf16.gmra.mxu2 %v6814_v46  ;;  %4458 = vmatmul.msk.bf16.gmra.mxu0 %vm1446_vm0, %v6816_v10  ;;  %v4410_v0 = vor.u32 %v4723_v17, %v4407_v25 }
 0x294   :  { %7894 = vst [vmem:[#allocation166_spill] sm:$0xff] %v6820_v44  ;;  %2173 = vmatmul.bf16.gmra.mxu3 %v6818_v47 }
 0x295   :  { %7895 = vst [vmem:[#allocation167_spill] sm:$0xff] %v6822_v58  ;;  %3071 = vmatpush.bf16.msra.mxu1 %v4410_v0 }
 0x296   :  { %2511 = vmatmul.bf16.gmra.mxu1 %v7896_v61  ;;  %v1965_v42 = vpop.f32.mrf.mxu2 }
 0x297   :  { %v1966_v30 = vadd.f32 %v1965_v42, %v6114_v54  ;;  %v2134_v13 = vpop.f32.mrf.mxu3  ;;  %v4005_v54 = vld [vmem:[%s7613_s0 + $0x3d0] sm:$0xf]  ;;  %v6859_v42 = vor.u32 %v4622_v28, %v3997_v27  ;;  %v7905_v28 = vld [vmem:[#allocation26_spill] sm:$0xff] }
 0x298   :  { %v2305_v20 = vpop.f32.mrf.mxu0  ;;  %v6861_v0 = vor.u32 %v4623_v11, %v4005_v54 }
 0x299   :  { %v2135_v37 = vadd.f32 %v2134_v13, %v1966_v30  ;;  %7899 = vst [vmem:[#allocation169_spill] sm:$0xff] %v6859_v42 }
 0x29a   :  { %7900 = vst [vmem:[#allocation170_spill] sm:$0xff] %v6861_v0 }
 0x29b   :  { %v6836_v22 = vpop.f32.mrf.mxu1  ;;  %v6838_v21 = vadd.f32 %v2303_v41, %v2135_v37  ;;  %v4620_v41 = vld [vmem:[%s7613_s0 + $0x3cc] sm:$0xf] }
 0x29c   :  { %7897 = vst [vmem:[#allocation20_spill] sm:$0xff] %v6836_v22  ;;  %v6863_v13 = vor.u32 %v4620_v41, %v3999_v62 }
 0x29d   :  { %7898 = vst [vmem:[#allocation168_spill] sm:$0xff] %v6838_v21 }
 0x29e   :  { %v1967_v61 = vpop.f32.mrf.mxu2  ;;  %7901 = vst [vmem:[#allocation171_spill] sm:$0xff] %v6863_v13 }
 0x29f   :  { %v1968_v17 = vadd.f32 %v1967_v61, %v6130_v63  ;;  %v2136_v25 = vpop.f32.mrf.mxu3  ;;  %v7904_v63 = vld [vmem:[#allocation23_spill] sm:$0xff] }
 0x2a0   :  { %v2308_v30 = vpop.f32.mrf.mxu0 }
 0x2a1   :  { %v2137_v37 = vadd.f32 %v2136_v25, %v1968_v17  ;;  %v4627_v25 = vld [vmem:[%s7613_s0 + $0x400] sm:$0xf0] }
 0x2a3   :  { %v6865_v21 = vpop.f32.mrf.mxu1  ;;  %v6867_v22 = vadd.f32 %v2305_v20, %v2137_v37  ;;  %2009 = vmatmul.bf16.gmra.mxu2 %v6859_v42  ;;  %4459 = vmatmul.msk.bf16.gmra.mxu0 %vm1446_vm0, %v6861_v0  ;;  %v4017_v20 = vld [vmem:[%s7613_s0 + $0x3f0] sm:$0xf]  ;;  %v4025_v37 = vld [vmem:[%s7613_s0 + $0x3f8] sm:$0xf] }
 0x2a4   :  { %7902 = vst [vmem:[#allocation172_spill] sm:$0xff] %v6865_v21  ;;  %2178 = vmatmul.bf16.gmra.mxu3 %v6863_v13 }
 0x2a5   :  { %7903 = vst [vmem:[#allocation173_spill] sm:$0xff] %v6867_v22 }
 0x2a6   :  { %2516 = vmatmul.bf16.gmra.mxu1 %v7904_v63  ;;  %v1970_v27 = vpop.f32.mrf.mxu2  ;;  %v4628_v63 = vld [vmem:[%s7613_s0 + $0x408] sm:$0xf0] }
 0x2a7   :  { %v1971_v54 = vadd.f32 %v1970_v27, %v7905_v28  ;;  %v2139_v11 = vpop.f32.mrf.mxu3  ;;  %v4019_v27 = vld [vmem:[%s7613_s0 + $0x404] sm:$0xf0] }
 0x2a8   :  { %v2310_v41 = vpop.f32.mrf.mxu0 }
 0x2a9   :  { %v2140_v62 = vadd.f32 %v2139_v11, %v1971_v54  ;;  %v7908_v54 = vld [vmem:[#allocation29_spill] sm:$0xff] }
 0x2ab   :  { %v6875_v61 = vpop.f32.mrf.mxu1  ;;  %v6877_v17 = vadd.f32 %v2308_v30, %v2140_v62  ;;  %v4625_v30 = vld [vmem:[%s7613_s0 + $0x3f4] sm:$0xf] }
 0x2ac   :  { %7906 = vst [vmem:[#allocation23_spill] sm:$0xff] %v6875_v61  ;;  %v6900_v61 = vor.u32 %v4628_v63, %v4025_v37  ;;  %v6902_v0 = vor.u32 %v4625_v30, %v4019_v27 }
 0x2ad   :  { %7907 = vst [vmem:[#allocation26_spill] sm:$0xff] %v6877_v17  ;;  %v6898_v17 = vor.u32 %v4627_v25, %v4017_v20  ;;  %v7915_v25 = vld [vmem:[#allocation31_spill] sm:$0xff] }
 0x2ae   :  { %v1972_v28 = vpop.f32.mrf.mxu2  ;;  %7910 = vst [vmem:[#allocation174_spill] sm:$0xff] %v6900_v61 }
 0x2af   :  { %v1973_v11 = vadd.f32 %v1972_v28, %v7908_v54  ;;  %v2141_v62 = vpop.f32.mrf.mxu3  ;;  %7909 = vst [vmem:[#allocation29_spill] sm:$0xff] %v6898_v17  ;;  %v7914_v28 = vld [vmem:[#allocation27_spill] sm:$0xff] }
 0x2b0   :  { %v2313_v22 = vpop.f32.mrf.mxu0  ;;  %7911 = vst [vmem:[#allocation175_spill] sm:$0xff] %v6902_v0 }
 0x2b1   :  { %v2142_v21 = vadd.f32 %v2141_v62, %v1973_v11  ;;  %v4045_v62 = vld [vmem:[%s7613_s0 + $0x420] sm:$0xf] }
 0x2b3   :  { %v6904_v42 = vpop.f32.mrf.mxu1  ;;  %v6906_v13 = vadd.f32 %v2310_v41, %v2142_v21  ;;  %2014 = vmatmul.bf16.gmra.mxu2 %v6898_v17  ;;  %4460 = vmatmul.msk.bf16.gmra.mxu0 %vm1446_vm0, %v6900_v61  ;;  %v4037_v21 = vld [vmem:[%s7613_s0 + $0x418] sm:$0xf]  ;;  %v4632_v41 = vld [vmem:[%s7613_s0 + $0x428] sm:$0xf0] }
 0x2b4   :  { %7912 = vst [vmem:[#allocation176_spill] sm:$0xff] %v6904_v42  ;;  %2183 = vmatmul.bf16.gmra.mxu3 %v6902_v0 }
 0x2b5   :  { %7913 = vst [vmem:[#allocation177_spill] sm:$0xff] %v6906_v13 }
 0x2b6   :  { %2521 = vmatmul.bf16.gmra.mxu1 %v7914_v28  ;;  %v1975_v20 = vpop.f32.mrf.mxu2  ;;  %v4633_v28 = vld [vmem:[%s7613_s0 + $0x430] sm:$0xf0] }
 0x2b7   :  { %v1976_v37 = vadd.f32 %v1975_v20, %v7915_v25  ;;  %v2144_v63 = vpop.f32.mrf.mxu3  ;;  %v4039_v20 = vld [vmem:[%s7613_s0 + $0x42c] sm:$0xf0] }
 0x2b8   :  { %v2315_v30 = vpop.f32.mrf.mxu0 }
 0x2b9   :  { %v2145_v27 = vadd.f32 %v2144_v63, %v1976_v37  ;;  %v7918_v37 = vld [vmem:[#allocation34_spill] sm:$0xff] }
 0x2bb   :  { %v6914_v54 = vpop.f32.mrf.mxu1  ;;  %v6916_v11 = vadd.f32 %v2313_v22, %v2145_v27  ;;  %v4630_v22 = vld [vmem:[%s7613_s0 + $0x41c] sm:$0xf] }
 0x2bc   :  { %7916 = vst [vmem:[#allocation27_spill] sm:$0xff] %v6914_v54  ;;  %v6939_v54 = vor.u32 %v4633_v28, %v4045_v62  ;;  %v6941_v61 = vor.u32 %v4630_v22, %v4039_v20  ;;  %v4279_v28 = vld [vmem:[%s7614_s1 + $0x108] sm:$0xf0]  ;;  %v7925_v22 = vld [vmem:[#allocation36_spill] sm:$0xff] }
 0x2bd   :  { %7917 = vst [vmem:[#allocation31_spill] sm:$0xff] %v6916_v11  ;;  %v6937_v11 = vor.u32 %v4632_v41, %v4037_v21  ;;  %v4675_v21 = vld [vmem:[%s7614_s1 + $0x84] sm:$0xf]  ;;  %v4215_v41 = vld [vmem:[%s7614_s1 + $0x88] sm:$0xf0] }
 0x2be   :  { %v1977_v25 = vpop.f32.mrf.mxu2  ;;  %7920 = vst [vmem:[#allocation178_spill] sm:$0xff] %v6939_v54 }
 0x2bf   :  { %v1978_v63 = vadd.f32 %v1977_v25, %v7918_v37  ;;  %v2146_v27 = vpop.f32.mrf.mxu3  ;;  %7919 = vst [vmem:[#allocation34_spill] sm:$0xff] %v6937_v11  ;;  %v7924_v25 = vld [vmem:[#allocation32_spill] sm:$0xff] }
 0x2c0   :  { %v2318_v13 = vpop.f32.mrf.mxu0  ;;  %7921 = vst [vmem:[#allocation179_spill] sm:$0xff] %v6941_v61 }
 0x2c1   :  { %v2147_v42 = vadd.f32 %v2146_v27, %v1978_v63 }
 0x2c3   :  { %v6943_v17 = vpop.f32.mrf.mxu1  ;;  %v6945_v0 = vadd.f32 %v2315_v30, %v2147_v42  ;;  %2019 = vmatmul.bf16.gmra.mxu2 %v6937_v11  ;;  %4461 = vmatmul.msk.bf16.gmra.mxu0 %vm1446_vm0, %v6939_v54  ;;  %v4218_v42 = vor.u32 %v4675_v21, %v4215_v41  ;;  %v4691_v30 = vld [vmem:[%s7614_s1 + $0x104] sm:$0xf]  ;;  %v4057_v21 = vld [vmem:[%s7613_s0 + $0x440] sm:$0xf]  ;;  %v4637_v41 = vld [vmem:[%s7613_s0 + $0x450] sm:$0xf0] }
 0x2c4   :  { %7922 = vst [vmem:[#allocation180_spill] sm:$0xff] %v6943_v17  ;;  %2188 = vmatmul.bf16.gmra.mxu3 %v6941_v61  ;;  %v4282_v63 = vor.u32 %v4691_v30, %v4279_v28  ;;  %v4059_v30 = vld [vmem:[%s7613_s0 + $0x454] sm:$0xf0]  ;;  %v4707_v28 = vld [vmem:[%s7614_s1 + $0x184] sm:$0xf] }
 0x2c5   :  { %7923 = vst [vmem:[#allocation181_spill] sm:$0xff] %v6945_v0  ;;  %2564 = vmatpush.bf16.msra.mxu2 %v4218_v42  ;;  %v4065_v42 = vld [vmem:[%s7613_s0 + $0x448] sm:$0xf] }
 0x2c6   :  { %2526 = vmatmul.bf16.gmra.mxu1 %v7924_v25  ;;  %v1980_v62 = vpop.f32.mrf.mxu2  ;;  %2733 = vmatpush.bf16.msra.mxu3 %v4282_v63  ;;  %v7928_v63 = vld [vmem:[#allocation39_spill] sm:$0xff] }
 0x2c7   :  { %v1981_v20 = vadd.f32 %v1980_v62, %v7925_v22  ;;  %v2149_v37 = vpop.f32.mrf.mxu3  ;;  %v4635_v62 = vld [vmem:[%s7613_s0 + $0x444] sm:$0xf]  ;;  %v4343_v22 = vld [vmem:[%s7614_s1 + $0x188] sm:$0xf0] }
 0x2c8   :  { %v2320_v27 = vpop.f32.mrf.mxu0  ;;  %v6998_v61 = vor.u32 %v4635_v62, %v4059_v30 }
 0x2c9   :  { %v2150_v25 = vadd.f32 %v2149_v37, %v1981_v20  ;;  %v4346_v37 = vor.u32 %v4707_v28, %v4343_v22 }
 0x2cb   :  { %v6965_v0 = vpop.f32.mrf.mxu1  ;;  %v6967_v54 = vadd.f32 %v2318_v13, %v2150_v25  ;;  %v4638_v13 = vld [vmem:[%s7613_s0 + $0x458] sm:$0xf0]  ;;  %2902 = vmatpush.bf16.msra.mxu0 %v4346_v37  ;;  %v4643_v37 = vld [vmem:[%s7613_s0 + $0x480] sm:$0xf0] }
 0x2cc   :  { %7926 = vst [vmem:[#allocation32_spill] sm:$0xff] %v6965_v0  ;;  %v6994_v0 = vor.u32 %v4637_v41, %v4057_v21  ;;  %v6996_v17 = vor.u32 %v4638_v13, %v4065_v42  ;;  %v7932_v21 = vld [vmem:[#allocation37_spill] sm:$0xff] }
 0x2cd   :  { %7927 = vst [vmem:[#allocation36_spill] sm:$0xff] %v6967_v54  ;;  %v7933_v42 = vld [vmem:[#allocation41_spill] sm:$0xff] }
 0x2ce   :  { %v1982_v20 = vpop.f32.mrf.mxu2  ;;  %7929 = vst [vmem:[#allocation39_spill] sm:$0xff] %v6996_v17 }
 0x2cf   :  { %v1983_v25 = vadd.f32 %v1982_v20, %v7928_v63  ;;  %v2151_v54 = vpop.f32.mrf.mxu3  ;;  %v4085_v20 = vld [vmem:[%s7613_s0 + $0x470] sm:$0xf]  ;;  %v4079_v63 = vld [vmem:[%s7613_s0 + $0x47c] sm:$0xf0] }
 0x2d0   :  { %v2323_v11 = vpop.f32.mrf.mxu0 }
 0x2d1   :  { %v2152_v58 = vadd.f32 %v2151_v54, %v1983_v25 }
 0x2d3   :  { %v7000_v10 = vpop.f32.mrf.mxu1  ;;  %v7002_v44 = vadd.f32 %v2320_v27, %v2152_v58  ;;  %2024 = vmatmul.bf16.gmra.mxu2 %v6994_v0  ;;  %4462 = vmatmul.msk.bf16.gmra.mxu0 %vm1446_vm0, %v6996_v17  ;;  %v4077_v58 = vld [vmem:[%s7613_s0 + $0x468] sm:$0xf]  ;;  %v4642_v27 = vld [vmem:[%s7613_s0 + $0x478] sm:$0xf0] }
 0x2d4   :  { %7930 = vst [vmem:[#allocation182_spill] sm:$0xff] %v7000_v10  ;;  %2193 = vmatmul.bf16.gmra.mxu3 %v6998_v61 }
 0x2d5   :  { %7931 = vst [vmem:[#allocation183_spill] sm:$0xff] %v7002_v44 }
 0x2d6   :  { %2531 = vmatmul.bf16.gmra.mxu1 %v7932_v21  ;;  %v1985_v41 = vpop.f32.mrf.mxu2  ;;  %v7936_v21 = vld [vmem:[#allocation44_spill] sm:$0xff] }
 0x2d7   :  { %v1986_v13 = vadd.f32 %v1985_v41, %v7933_v42  ;;  %v2154_v62 = vpop.f32.mrf.mxu3 }
 0x2d8   :  { %v2325_v30 = vpop.f32.mrf.mxu0 }
 0x2d9   :  { %v2155_v28 = vadd.f32 %v2154_v62, %v1986_v13  ;;  %v7033_v13 = vor.u32 %v4642_v27, %v4077_v58  ;;  %v7035_v62 = vor.u32 %v4643_v37, %v4085_v20  ;;  %v7943_v27 = vld [vmem:[#allocation46_spill] sm:$0xff] }
 0x2db   :  { %v7010_v54 = vpop.f32.mrf.mxu1  ;;  %v7012_v22 = vadd.f32 %v2323_v11, %v2155_v28  ;;  %v4640_v11 = vld [vmem:[%s7613_s0 + $0x46c] sm:$0xf]  ;;  %7937 = vst [vmem:[#allocation44_spill] sm:$0xff] %v7033_v13 }
 0x2dc   :  { %7934 = vst [vmem:[#allocation37_spill] sm:$0xff] %v7010_v54 }
 0x2dd   :  { %7935 = vst [vmem:[#allocation41_spill] sm:$0xff] %v7012_v22  ;;  %v7037_v22 = vor.u32 %v4640_v11, %v4079_v63 }
 0x2de   :  { %v1987_v25 = vpop.f32.mrf.mxu2  ;;  %7938 = vst [vmem:[#allocation184_spill] sm:$0xff] %v7035_v62 }
 0x2df   :  { %v1988_v41 = vadd.f32 %v1987_v25, %v7936_v21  ;;  %v2156_v42 = vpop.f32.mrf.mxu3  ;;  %7939 = vst [vmem:[#allocation185_spill] sm:$0xff] %v7037_v22  ;;  %v7942_v25 = vld [vmem:[#allocation42_spill] sm:$0xff] }
 0x2e0   :  { %v2328_v28 = vpop.f32.mrf.mxu0 }
 0x2e1   :  { %v2157_v54 = vadd.f32 %v2156_v42, %v1988_v41  ;;  %v4105_v42 = vld [vmem:[%s7613_s0 + $0x498] sm:$0xf] }
 0x2e3   :  { %v7039_v44 = vpop.f32.mrf.mxu1  ;;  %v7041_v17 = vadd.f32 %v2325_v30, %v2157_v54  ;;  %2029 = vmatmul.bf16.gmra.mxu2 %v7033_v13  ;;  %4463 = vmatmul.msk.bf16.gmra.mxu0 %vm1446_vm0, %v7035_v62  ;;  %v4097_v30 = vld [vmem:[%s7613_s0 + $0x490] sm:$0xf]  ;;  %v4647_v54 = vld [vmem:[%s7613_s0 + $0x4a0] sm:$0xf0] }
 0x2e4   :  { %7940 = vst [vmem:[#allocation186_spill] sm:$0xff] %v7039_v44  ;;  %2198 = vmatmul.bf16.gmra.mxu3 %v7037_v22 }
 0x2e5   :  { %7941 = vst [vmem:[#allocation187_spill] sm:$0xff] %v7041_v17 }
 0x2e6   :  { %2536 = vmatmul.bf16.gmra.mxu1 %v7942_v25  ;;  %v1990_v58 = vpop.f32.mrf.mxu2  ;;  %v4648_v25 = vld [vmem:[%s7613_s0 + $0x4a8] sm:$0xf0] }
 0x2e7   :  { %v1991_v20 = vadd.f32 %v1990_v58, %v7943_v27  ;;  %v2159_v37 = vpop.f32.mrf.mxu3  ;;  %v4099_v58 = vld [vmem:[%s7613_s0 + $0x4a4] sm:$0xf0] }
 0x2e8   :  { %v2330_v11 = vpop.f32.mrf.mxu0 }
 0x2e9   :  { %v2160_v63 = vadd.f32 %v2159_v37, %v1991_v20  ;;  %v7946_v20 = vld [vmem:[#allocation49_spill] sm:$0xff] }
 0x2eb   :  { %v7049_v21 = vpop.f32.mrf.mxu1  ;;  %v7051_v41 = vadd.f32 %v2328_v28, %v2160_v63  ;;  %v4645_v28 = vld [vmem:[%s7613_s0 + $0x494] sm:$0xf] }
 0x2ec   :  { %7944 = vst [vmem:[#allocation42_spill] sm:$0xff] %v7049_v21  ;;  %v7074_v21 = vor.u32 %v4648_v25, %v4105_v42  ;;  %v7076_v62 = vor.u32 %v4645_v28, %v4099_v58 }
 0x2ed   :  { %7945 = vst [vmem:[#allocation46_spill] sm:$0xff] %v7051_v41  ;;  %v7072_v41 = vor.u32 %v4647_v54, %v4097_v30  ;;  %v7953_v54 = vld [vmem:[#allocation51_spill] sm:$0xff] }
 0x2ee   :  { %v1992_v27 = vpop.f32.mrf.mxu2  ;;  %7948 = vst [vmem:[#allocation188_spill] sm:$0xff] %v7074_v21 }
 0x2ef   :  { %v1993_v37 = vadd.f32 %v1992_v27, %v7946_v20  ;;  %v2161_v63 = vpop.f32.mrf.mxu3  ;;  %7947 = vst [vmem:[#allocation49_spill] sm:$0xff] %v7072_v41  ;;  %v7952_v27 = vld [vmem:[#allocation47_spill] sm:$0xff] }
 0x2f0   :  { %v2333_v17 = vpop.f32.mrf.mxu0  ;;  %7949 = vst [vmem:[#allocation189_spill] sm:$0xff] %v7076_v62 }
 0x2f1   :  { %v2162_v44 = vadd.f32 %v2161_v63, %v1993_v37  ;;  %v4125_v63 = vld [vmem:[%s7613_s0 + $0x4c0] sm:$0xf] }
 0x2f3   :  { %v7078_v13 = vpop.f32.mrf.mxu1  ;;  %v7080_v22 = vadd.f32 %v2330_v11, %v2162_v44  ;;  %2034 = vmatmul.bf16.gmra.mxu2 %v7072_v41  ;;  %4464 = vmatmul.msk.bf16.gmra.mxu0 %vm1446_vm0, %v7074_v21  ;;  %v4117_v44 = vld [vmem:[%s7613_s0 + $0x4b8] sm:$0xf]  ;;  %v4652_v11 = vld [vmem:[%s7613_s0 + $0x4c8] sm:$0xf0] }
 0x2f4   :  { %7950 = vst [vmem:[#allocation190_spill] sm:$0xff] %v7078_v13  ;;  %2203 = vmatmul.bf16.gmra.mxu3 %v7076_v62 }
 0x2f5   :  { %7951 = vst [vmem:[#allocation191_spill] sm:$0xff] %v7080_v22 }
 0x2f6   :  { %2541 = vmatmul.bf16.gmra.mxu1 %v7952_v27  ;;  %v1995_v30 = vpop.f32.mrf.mxu2  ;;  %v4653_v27 = vld [vmem:[%s7613_s0 + $0x4d0] sm:$0xf0] }
 0x2f7   :  { %v1996_v42 = vadd.f32 %v1995_v30, %v7953_v54  ;;  %v2164_v25 = vpop.f32.mrf.mxu3  ;;  %v4119_v30 = vld [vmem:[%s7613_s0 + $0x4cc] sm:$0xf0] }
 0x2f8   :  { %v2335_v28 = vpop.f32.mrf.mxu0 }
 0x2f9   :  { %v2165_v58 = vadd.f32 %v2164_v25, %v1996_v42  ;;  %v7956_v42 = vld [vmem:[#allocation54_spill] sm:$0xff] }
 0x2fb   :  { %v7088_v20 = vpop.f32.mrf.mxu1  ;;  %v7090_v37 = vadd.f32 %v2333_v17, %v2165_v58  ;;  %v4650_v17 = vld [vmem:[%s7613_s0 + $0x4bc] sm:$0xf] }
 0x2fc   :  { %7954 = vst [vmem:[#allocation47_spill] sm:$0xff] %v7088_v20  ;;  %v7113_v20 = vor.u32 %v4653_v27, %v4125_v63  ;;  %v7115_v21 = vor.u32 %v4650_v17, %v4119_v30 }
 0x2fd   :  { %7955 = vst [vmem:[#allocation51_spill] sm:$0xff] %v7090_v37  ;;  %v7111_v37 = vor.u32 %v4652_v11, %v4117_v44  ;;  %v7963_v11 = vld [vmem:[#allocation56_spill] sm:$0xff] }
 0x2fe   :  { %v1997_v54 = vpop.f32.mrf.mxu2  ;;  %7958 = vst [vmem:[#allocation192_spill] sm:$0xff] %v7113_v20 }
 0x2ff   :  { %v1998_v25 = vadd.f32 %v1997_v54, %v7956_v42  ;;  %v2166_v58 = vpop.f32.mrf.mxu3  ;;  %7957 = vst [vmem:[#allocation54_spill] sm:$0xff] %v7111_v37  ;;  %v7962_v54 = vld [vmem:[#allocation52_spill] sm:$0xff] }
 0x300   :  { %v2338_v22 = vpop.f32.mrf.mxu0  ;;  %7959 = vst [vmem:[#allocation193_spill] sm:$0xff] %v7115_v21 }
 0x301   :  { %v2167_v13 = vadd.f32 %v2166_v58, %v1998_v25  ;;  %v4145_v58 = vld [vmem:[%s7613_s0 + $0x4e8] sm:$0xf] }
 0x303   :  { %v7117_v41 = vpop.f32.mrf.mxu1  ;;  %v7119_v62 = vadd.f32 %v2335_v28, %v2167_v13  ;;  %2039 = vmatmul.bf16.gmra.mxu2 %v7111_v37  ;;  %4465 = vmatmul.msk.bf16.gmra.mxu0 %vm1446_vm0, %v7113_v20  ;;  %v4137_v13 = vld [vmem:[%s7613_s0 + $0x4e0] sm:$0xf]  ;;  %v4657_v28 = vld [vmem:[%s7613_s0 + $0x4f0] sm:$0xf0] }
 0x304   :  { %7960 = vst [vmem:[#allocation194_spill] sm:$0xff] %v7117_v41  ;;  %2208 = vmatmul.bf16.gmra.mxu3 %v7115_v21 }
 0x305   :  { %7961 = vst [vmem:[#allocation195_spill] sm:$0xff] %v7119_v62 }
 0x306   :  { %2546 = vmatmul.bf16.gmra.mxu1 %v7962_v54  ;;  %v2000_v44 = vpop.f32.mrf.mxu2  ;;  %v4658_v54 = vld [vmem:[%s7613_s0 + $0x4f8] sm:$0xf0] }
 0x307   :  { %v2001_v63 = vadd.f32 %v2000_v44, %v7963_v11  ;;  %v2169_v27 = vpop.f32.mrf.mxu3  ;;  %v4139_v44 = vld [vmem:[%s7613_s0 + $0x4f4] sm:$0xf0] }
 0x308   :  { %v2340_v17 = vpop.f32.mrf.mxu0 }
 0x309   :  { %v2170_v30 = vadd.f32 %v2169_v27, %v2001_v63  ;;  %v7966_v63 = vld [vmem:[#allocation59_spill] sm:$0xff] }
 0x30b   :  { %v7127_v42 = vpop.f32.mrf.mxu1  ;;  %v7129_v25 = vadd.f32 %v2338_v22, %v2170_v30  ;;  %v4655_v22 = vld [vmem:[%s7613_s0 + $0x4e4] sm:$0xf] }
 0x30c   :  { %7964 = vst [vmem:[#allocation52_spill] sm:$0xff] %v7127_v42  ;;  %v7152_v42 = vor.u32 %v4658_v54, %v4145_v58  ;;  %v7154_v20 = vor.u32 %v4655_v22, %v4139_v44 }
 0x30d   :  { %7965 = vst [vmem:[#allocation56_spill] sm:$0xff] %v7129_v25  ;;  %v7150_v25 = vor.u32 %v4657_v28, %v4137_v13  ;;  %v7973_v28 = vld [vmem:[#allocation61_spill] sm:$0xff] }
 0x30e   :  { %v2002_v11 = vpop.f32.mrf.mxu2  ;;  %7968 = vst [vmem:[#allocation196_spill] sm:$0xff] %v7152_v42 }
 0x30f   :  { %v2003_v27 = vadd.f32 %v2002_v11, %v7966_v63  ;;  %v2171_v30 = vpop.f32.mrf.mxu3  ;;  %7967 = vst [vmem:[#allocation59_spill] sm:$0xff] %v7150_v25  ;;  %v7972_v11 = vld [vmem:[#allocation57_spill] sm:$0xff] }
 0x310   :  { %v2343_v62 = vpop.f32.mrf.mxu0  ;;  %7969 = vst [vmem:[#allocation197_spill] sm:$0xff] %v7154_v20 }
 0x311   :  { %v2172_v41 = vadd.f32 %v2171_v30, %v2003_v27 }
 0x313   :  { %v7156_v37 = vpop.f32.mrf.mxu1  ;;  %v7158_v21 = vadd.f32 %v2340_v17, %v2172_v41  ;;  %2044 = vmatmul.bf16.gmra.mxu2 %v7150_v25  ;;  %4466 = vmatmul.msk.bf16.gmra.mxu0 %vm1446_vm0, %v7152_v42  ;;  %v7976_v17 = vld [vmem:[#allocation65_spill] sm:$0xff] }
 0x314   :  { %7970 = vst [vmem:[#allocation198_spill] sm:$0xff] %v7156_v37  ;;  %2213 = vmatmul.bf16.gmra.mxu3 %v7154_v20 }
 0x315   :  { %7971 = vst [vmem:[#allocation199_spill] sm:$0xff] %v7158_v21 }
 0x316   :  { %2551 = vmatmul.bf16.gmra.mxu1 %v7972_v11  ;;  %v2005_v13 = vpop.f32.mrf.mxu2  ;;  %v7979_v11 = vld [vmem:[#allocation6_spill] sm:$0xff] }
 0x317   :  { %v2006_v58 = vadd.f32 %v2005_v13, %v7973_v28  ;;  %v2174_v54 = vpop.f32.mrf.mxu3  ;;  %v7980_v13 = vld [vmem:[#allocation64_spill] sm:$0xff]  ;;  %v7981_v28 = vld [vmem:[#allocation62_spill] sm:$0xff] }
 0x318   :  { %v2345_v22 = vpop.f32.mrf.mxu0 }
 0x319   :  { %v2175_v44 = vadd.f32 %v2174_v54, %v2006_v58  ;;  %v7982_v58 = vld [vmem:[#allocation63_spill] sm:$0xff]  ;;  %v7983_v54 = vld [vmem:[#allocation66_spill] sm:$0xff] }
 0x31b   :  { %v7166_v63 = vpop.f32.mrf.mxu1  ;;  %v7168_v27 = vadd.f32 %v2343_v62, %v2175_v44 }
 0x31c   :  { %7974 = vst [vmem:[#allocation57_spill] sm:$0xff] %v7166_v63 }
 0x31d   :  { %7975 = vst [vmem:[#allocation61_spill] sm:$0xff] %v7168_v27 }
 0x31e   :  { %v2007_v41 = vpop.f32.mrf.mxu2 }
 0x31f   :  { %v2008_v30 = vadd.f32 %v2007_v41, %v7976_v17  ;;  %v2176_v21 = vpop.f32.mrf.mxu3 }
 0x320   :  { %v2348_v37 = vpop.f32.mrf.mxu0 }
 0x321   :  { %v2177_v42 = vadd.f32 %v2176_v21, %v2008_v30 }
 0x323   :  { %v7171_v25 = vpop.f32.mrf.mxu1  ;;  %v7173_v20 = vadd.f32 %v2345_v22, %v2177_v42  ;;  %2565 = vmatmul.bf16.vlgmr.msra.gmra.mxu2 %v7979_v11  ;;  %2903 = vmatmul.bf16.vlgmr.msra.gmra.mxu0 %v7980_v13  ;;  %v7986_v22 = vld [vmem:[#allocation70_spill] sm:$0xff] }
 0x324   :  { %7977 = vst [vmem:[#allocation65_spill] sm:$0xff] %v7171_v25  ;;  %2734 = vmatmul.bf16.vlgmr.msra.gmra.mxu3 %v7981_v28 }
 0x325   :  { %7978 = vst [vmem:[#allocation200_spill] sm:$0xff] %v7173_v20 }
 0x326   :  { %4467 = vmatmul.msk.bf16.vlgmr.msra.gmra.mxu1 %vm1446_vm0, %v7982_v58  ;;  %v2010_v62 = vpop.f32.mrf.mxu2  ;;  %v7989_v58 = vld [vmem:[#allocation8_spill] sm:$0xff] }
 0x327   :  { %v2011_v44 = vadd.f32 %v2010_v62, %v7983_v54  ;;  %v2179_v41 = vpop.f32.mrf.mxu3  ;;  %v7990_v62 = vld [vmem:[#allocation69_spill] sm:$0xff]  ;;  %v7991_v54 = vld [vmem:[#allocation67_spill] sm:$0xff] }
 0x328   :  { %v2350_v17 = vpop.f32.mrf.mxu0 }
 0x329   :  { %v2180_v27 = vadd.f32 %v2179_v41, %v2011_v44  ;;  %v7992_v44 = vld [vmem:[#allocation68_spill] sm:$0xff] }
 0x32b   :  { %v7181_v21 = vpop.f32.mrf.mxu1  ;;  %v7183_v30 = vadd.f32 %v2348_v37, %v2180_v27  ;;  %v7993_v27 = vld [vmem:[#allocation71_spill] sm:$0xff] }
 0x32c   :  { %7984 = vst [vmem:[#allocation6_spill] sm:$0xff] %v7181_v21 }
 0x32d   :  { %7985 = vst [vmem:[#allocation64_spill] sm:$0xff] %v7183_v30 }
 0x32e   :  { %v2012_v42 = vpop.f32.mrf.mxu2 }
 0x32f   :  { %v2013_v11 = vadd.f32 %v2012_v42, %v7986_v22  ;;  %v2181_v20 = vpop.f32.mrf.mxu3 }
 0x330   :  { %v2353_v13 = vpop.f32.mrf.mxu0 }
 0x331   :  { %v2182_v25 = vadd.f32 %v2181_v20, %v2013_v11 }
 0x333   :  { %v7186_v28 = vpop.f32.mrf.mxu1  ;;  %v7188_v63 = vadd.f32 %v2350_v17, %v2182_v25  ;;  %2570 = vmatmul.bf16.gmra.mxu2 %v7989_v58  ;;  %2908 = vmatmul.bf16.gmra.mxu0 %v7990_v62  ;;  %v7996_v17 = vld [vmem:[#allocation75_spill] sm:$0xff] }
 0x334   :  { %7987 = vst [vmem:[#allocation62_spill] sm:$0xff] %v7186_v28  ;;  %2739 = vmatmul.bf16.gmra.mxu3 %v7991_v54 }
 0x335   :  { %7988 = vst [vmem:[#allocation63_spill] sm:$0xff] %v7188_v63 }
 0x336   :  { %4468 = vmatmul.msk.bf16.gmra.mxu1 %vm1446_vm0, %v7992_v44  ;;  %v2015_v37 = vpop.f32.mrf.mxu2  ;;  %v7999_v44 = vld [vmem:[#allocation10_spill] sm:$0xff] }
 0x337   :  { %v2016_v41 = vadd.f32 %v2015_v37, %v7993_v27  ;;  %v2184_v42 = vpop.f32.mrf.mxu3  ;;  %v8000_v37 = vld [vmem:[#allocation74_spill] sm:$0xff]  ;;  %v8001_v27 = vld [vmem:[#allocation72_spill] sm:$0xff] }
 0x338   :  { %v2355_v22 = vpop.f32.mrf.mxu0 }
 0x339   :  { %v2185_v30 = vadd.f32 %v2184_v42, %v2016_v41  ;;  %v8002_v41 = vld [vmem:[#allocation73_spill] sm:$0xff] }
 0x33b   :  { %v7196_v20 = vpop.f32.mrf.mxu1  ;;  %v7198_v11 = vadd.f32 %v2353_v13, %v2185_v30  ;;  %v8003_v13 = vld [vmem:[#allocation76_spill] sm:$0xff] }
 0x33c   :  { %7994 = vst [vmem:[#allocation66_spill] sm:$0xff] %v7196_v20 }
 0x33d   :  { %7995 = vst [vmem:[#allocation70_spill] sm:$0xff] %v7198_v11 }
 0x33e   :  { %v2017_v25 = vpop.f32.mrf.mxu2 }
 0x33f   :  { %v2018_v58 = vadd.f32 %v2017_v25, %v7996_v17  ;;  %v2186_v63 = vpop.f32.mrf.mxu3 }
 0x340   :  { %v2358_v62 = vpop.f32.mrf.mxu0 }
 0x341   :  { %v2187_v28 = vadd.f32 %v2186_v63, %v2018_v58 }
 0x343   :  { %v7201_v54 = vpop.f32.mrf.mxu1  ;;  %v7203_v21 = vadd.f32 %v2355_v22, %v2187_v28  ;;  %2575 = vmatmul.bf16.gmra.mxu2 %v7999_v44  ;;  %2913 = vmatmul.bf16.gmra.mxu0 %v8000_v37  ;;  %v8006_v22 = vld [vmem:[#allocation80_spill] sm:$0xff] }
 0x344   :  { %7997 = vst [vmem:[#allocation8_spill] sm:$0xff] %v7201_v54  ;;  %2744 = vmatmul.bf16.gmra.mxu3 %v8001_v27 }
 0x345   :  { %7998 = vst [vmem:[#allocation69_spill] sm:$0xff] %v7203_v21 }
 0x346   :  { %4469 = vmatmul.msk.bf16.gmra.mxu1 %vm1446_vm0, %v8002_v41  ;;  %v2020_v30 = vpop.f32.mrf.mxu2  ;;  %v8009_v41 = vld [vmem:[#allocation12_spill] sm:$0xff] }
 0x347   :  { %v2021_v42 = vadd.f32 %v2020_v30, %v8003_v13  ;;  %v2189_v25 = vpop.f32.mrf.mxu3  ;;  %v8010_v30 = vld [vmem:[#allocation79_spill] sm:$0xff]  ;;  %v8011_v13 = vld [vmem:[#allocation77_spill] sm:$0xff] }
 0x348   :  { %v2360_v17 = vpop.f32.mrf.mxu0 }
 0x349   :  { %v2190_v11 = vadd.f32 %v2189_v25, %v2021_v42  ;;  %v8012_v42 = vld [vmem:[#allocation78_spill] sm:$0xff] }
 0x34b   :  { %v7211_v63 = vpop.f32.mrf.mxu1  ;;  %v7213_v58 = vadd.f32 %v2358_v62, %v2190_v11  ;;  %v8013_v62 = vld [vmem:[#allocation81_spill] sm:$0xff] }
 0x34c   :  { %8004 = vst [vmem:[#allocation67_spill] sm:$0xff] %v7211_v63 }
 0x34d   :  { %8005 = vst [vmem:[#allocation68_spill] sm:$0xff] %v7213_v58 }
 0x34e   :  { %v2022_v28 = vpop.f32.mrf.mxu2 }
 0x34f   :  { %v2023_v44 = vadd.f32 %v2022_v28, %v8006_v22  ;;  %v2191_v21 = vpop.f32.mrf.mxu3 }
 0x350   :  { %v2363_v37 = vpop.f32.mrf.mxu0 }
 0x351   :  { %v2192_v54 = vadd.f32 %v2191_v21, %v2023_v44 }
 0x353   :  { %v7216_v27 = vpop.f32.mrf.mxu1  ;;  %v7218_v20 = vadd.f32 %v2360_v17, %v2192_v54  ;;  %2580 = vmatmul.bf16.gmra.mxu2 %v8009_v41  ;;  %2918 = vmatmul.bf16.gmra.mxu0 %v8010_v30  ;;  %v8016_v17 = vld [vmem:[#allocation85_spill] sm:$0xff] }
 0x354   :  { %8007 = vst [vmem:[#allocation71_spill] sm:$0xff] %v7216_v27  ;;  %2749 = vmatmul.bf16.gmra.mxu3 %v8011_v13 }
 0x355   :  { %8008 = vst [vmem:[#allocation75_spill] sm:$0xff] %v7218_v20 }
 0x356   :  { %4470 = vmatmul.msk.bf16.gmra.mxu1 %vm1446_vm0, %v8012_v42  ;;  %v2025_v11 = vpop.f32.mrf.mxu2  ;;  %v8019_v42 = vld [vmem:[#allocation14_spill] sm:$0xff] }
 0x357   :  { %v2026_v25 = vadd.f32 %v2025_v11, %v8013_v62  ;;  %v2194_v28 = vpop.f32.mrf.mxu3  ;;  %v8020_v11 = vld [vmem:[#allocation84_spill] sm:$0xff]  ;;  %v8021_v62 = vld [vmem:[#allocation82_spill] sm:$0xff] }
 0x358   :  { %v2365_v22 = vpop.f32.mrf.mxu0 }
 0x359   :  { %v2195_v58 = vadd.f32 %v2194_v28, %v2026_v25  ;;  %v8022_v25 = vld [vmem:[#allocation83_spill] sm:$0xff] }
 0x35b   :  { %v7226_v21 = vpop.f32.mrf.mxu1  ;;  %v7228_v44 = vadd.f32 %v2363_v37, %v2195_v58  ;;  %v8023_v37 = vld [vmem:[#allocation86_spill] sm:$0xff] }
 0x35c   :  { %8014 = vst [vmem:[#allocation10_spill] sm:$0xff] %v7226_v21 }
 0x35d   :  { %8015 = vst [vmem:[#allocation74_spill] sm:$0xff] %v7228_v44 }
 0x35e   :  { %v2027_v54 = vpop.f32.mrf.mxu2 }
 0x35f   :  { %v2028_v41 = vadd.f32 %v2027_v54, %v8016_v17  ;;  %v2196_v20 = vpop.f32.mrf.mxu3 }
 0x360   :  { %v2368_v30 = vpop.f32.mrf.mxu0 }
 0x361   :  { %v2197_v27 = vadd.f32 %v2196_v20, %v2028_v41 }
 0x363   :  { %v7231_v13 = vpop.f32.mrf.mxu1  ;;  %v7233_v63 = vadd.f32 %v2365_v22, %v2197_v27  ;;  %2585 = vmatmul.bf16.gmra.mxu2 %v8019_v42  ;;  %2923 = vmatmul.bf16.gmra.mxu0 %v8020_v11  ;;  %v8026_v22 = vld [vmem:[#allocation90_spill] sm:$0xff] }
 0x364   :  { %8017 = vst [vmem:[#allocation72_spill] sm:$0xff] %v7231_v13  ;;  %2754 = vmatmul.bf16.gmra.mxu3 %v8021_v62 }
 0x365   :  { %8018 = vst [vmem:[#allocation73_spill] sm:$0xff] %v7233_v63 }
 0x366   :  { %4471 = vmatmul.msk.bf16.gmra.mxu1 %vm1446_vm0, %v8022_v25  ;;  %v2030_v58 = vpop.f32.mrf.mxu2  ;;  %v8029_v25 = vld [vmem:[#allocation16_spill] sm:$0xff] }
 0x367   :  { %v2031_v28 = vadd.f32 %v2030_v58, %v8023_v37  ;;  %v2199_v54 = vpop.f32.mrf.mxu3  ;;  %v8030_v58 = vld [vmem:[#allocation89_spill] sm:$0xff]  ;;  %v8031_v37 = vld [vmem:[#allocation87_spill] sm:$0xff] }
 0x368   :  { %v2370_v17 = vpop.f32.mrf.mxu0 }
 0x369   :  { %v2200_v44 = vadd.f32 %v2199_v54, %v2031_v28  ;;  %v8032_v28 = vld [vmem:[#allocation88_spill] sm:$0xff] }
 0x36b   :  { %v7241_v20 = vpop.f32.mrf.mxu1  ;;  %v7243_v41 = vadd.f32 %v2368_v30, %v2200_v44  ;;  %v8033_v30 = vld [vmem:[#allocation91_spill] sm:$0xff] }
 0x36c   :  { %8024 = vst [vmem:[#allocation76_spill] sm:$0xff] %v7241_v20 }
 0x36d   :  { %8025 = vst [vmem:[#allocation80_spill] sm:$0xff] %v7243_v41 }
 0x36e   :  { %v2032_v27 = vpop.f32.mrf.mxu2 }
 0x36f   :  { %v2033_v42 = vadd.f32 %v2032_v27, %v8026_v22  ;;  %v2201_v63 = vpop.f32.mrf.mxu3 }
 0x370   :  { %v2373_v11 = vpop.f32.mrf.mxu0 }
 0x371   :  { %v2202_v13 = vadd.f32 %v2201_v63, %v2033_v42 }
 0x373   :  { %v7246_v62 = vpop.f32.mrf.mxu1  ;;  %v7248_v21 = vadd.f32 %v2370_v17, %v2202_v13  ;;  %2590 = vmatmul.bf16.gmra.mxu2 %v8029_v25  ;;  %2928 = vmatmul.bf16.gmra.mxu0 %v8030_v58  ;;  %v8036_v17 = vld [vmem:[#allocation95_spill] sm:$0xff] }
 0x374   :  { %8027 = vst [vmem:[#allocation12_spill] sm:$0xff] %v7246_v62  ;;  %2759 = vmatmul.bf16.gmra.mxu3 %v8031_v37 }
 0x375   :  { %8028 = vst [vmem:[#allocation79_spill] sm:$0xff] %v7248_v21 }
 0x376   :  { %4472 = vmatmul.msk.bf16.gmra.mxu1 %vm1446_vm0, %v8032_v28  ;;  %v2035_v44 = vpop.f32.mrf.mxu2  ;;  %v8039_v28 = vld [vmem:[#allocation19_spill] sm:$0xff] }
 0x377   :  { %v2036_v54 = vadd.f32 %v2035_v44, %v8033_v30  ;;  %v2204_v27 = vpop.f32.mrf.mxu3  ;;  %v8040_v44 = vld [vmem:[#allocation94_spill] sm:$0xff]  ;;  %v8041_v30 = vld [vmem:[#allocation92_spill] sm:$0xff] }
 0x378   :  { %v2375_v22 = vpop.f32.mrf.mxu0 }
 0x379   :  { %v2205_v41 = vadd.f32 %v2204_v27, %v2036_v54  ;;  %v8042_v54 = vld [vmem:[#allocation93_spill] sm:$0xff] }
 0x37b   :  { %v7256_v63 = vpop.f32.mrf.mxu1  ;;  %v7258_v42 = vadd.f32 %v2373_v11, %v2205_v41  ;;  %v8043_v11 = vld [vmem:[#allocation97_spill] sm:$0xff] }
 0x37c   :  { %8034 = vst [vmem:[#allocation77_spill] sm:$0xff] %v7256_v63 }
 0x37d   :  { %8035 = vst [vmem:[#allocation78_spill] sm:$0xff] %v7258_v42 }
 0x37e   :  { %v2037_v13 = vpop.f32.mrf.mxu2 }
 0x37f   :  { %v2038_v25 = vadd.f32 %v2037_v13, %v8036_v17  ;;  %v2206_v21 = vpop.f32.mrf.mxu3 }
 0x380   :  { %v2378_v58 = vpop.f32.mrf.mxu0 }
 0x381   :  { %v2207_v62 = vadd.f32 %v2206_v21, %v2038_v25 }
 0x383   :  { %v7261_v37 = vpop.f32.mrf.mxu1  ;;  %v7263_v20 = vadd.f32 %v2375_v22, %v2207_v62  ;;  %2595 = vmatmul.bf16.gmra.mxu2 %v8039_v28  ;;  %2933 = vmatmul.bf16.gmra.mxu0 %v8040_v44 }
 0x384   :  { %8037 = vst [vmem:[#allocation81_spill] sm:$0xff] %v7261_v37  ;;  %2764 = vmatmul.bf16.gmra.mxu3 %v8041_v30 }
 0x385   :  { %8038 = vst [vmem:[#allocation85_spill] sm:$0xff] %v7263_v20 }
 0x386   :  { %4473 = vmatmul.msk.bf16.gmra.mxu1 %vm1446_vm0, %v8042_v54  ;;  %v2040_v41 = vpop.f32.mrf.mxu2  ;;  %v8048_v54 = vld [vmem:[#allocation22_spill] sm:$0xff] }
 0x387   :  { %v2041_v27 = vadd.f32 %v2040_v41, %v8043_v11  ;;  %v2209_v13 = vpop.f32.mrf.mxu3 }
 0x388   :  { %v2380_v17 = vpop.f32.mrf.mxu0 }
 0x389   :  { %v2210_v42 = vadd.f32 %v2209_v13, %v2041_v27 }
 0x38b   :  { %v7271_v21 = vpop.f32.mrf.mxu1  ;;  %v7273_v25 = vadd.f32 %v2378_v58, %v2210_v42  ;;  %v8049_v58 = vld [vmem:[#allocation99_spill] sm:$0xff] }
 0x38c   :  { %8044 = vst [vmem:[#allocation14_spill] sm:$0xff] %v7271_v21 }
 0x38d   :  { %8045 = vst [vmem:[#allocation84_spill] sm:$0xff] %v7273_v25 }
 0x38e   :  { %v2042_v62 = vpop.f32.mrf.mxu2 }
 0x38f   :  { %v2043_v22 = vadd.f32 %v2042_v62, %v6110_v23  ;;  %v2211_v28 = vpop.f32.mrf.mxu3 }
 0x390   :  { %v2383_v44 = vpop.f32.mrf.mxu0 }
 0x391   :  { %v2212_v20 = vadd.f32 %v2211_v28, %v2043_v22 }
 0x393   :  { %v7276_v30 = vpop.f32.mrf.mxu1  ;;  %v7278_v37 = vadd.f32 %v2380_v17, %v2212_v20  ;;  %2600 = vmatmul.bf16.gmra.mxu2 %v8048_v54  ;;  %2938 = vmatmul.bf16.gmra.mxu0 %v6108_v26 }
 0x394   :  { %8046 = vst [vmem:[#allocation82_spill] sm:$0xff] %v7276_v30  ;;  %2769 = vmatmul.bf16.gmra.mxu3 %v6104_v5  ;;  %v4750_v5 = vld [vmem:[%s7615_s2] sm:$0x3]  ;;  %s4777_s2 = smov [#allocation2]  }
 0x395   :  { %8047 = vst [vmem:[#allocation83_spill] sm:$0xff] %v7278_v37  ;;  %v8059_v37 = vld [vmem:[#allocation105_spill] sm:$0xff]  ;;  %s3493_s23 = sshll.u32 %s4777_s2, 4  ;;  %s3494_s23 = int_to_ptr.vmem [resolvable:$true] %s3493_s23 }
 0x396   :  { %4474 = vmatmul.msk.bf16.gmra.mxu1 %vm1446_vm0, %v6106_v1  ;;  %v2045_v42 = vpop.f32.mrf.mxu2  ;;  %v7294_v1 = vperm.slane %v4750_v5, 1 }
 0x397   :  { %v2046_v41 = vadd.f32 %v2045_v42, %v8049_v58  ;;  %v2214_v23 = vpop.f32.mrf.mxu3  ;;  %v8053_v58 = vld [vmem:[#allocation25_spill] sm:$0xff] }
 0x398   :  { %v2385_v11 = vpop.f32.mrf.mxu0 }
 0x399   :  { %v2215_v27 = vadd.f32 %v2214_v23, %v2046_v41  ;;  %v8054_v41 = vld [vmem:[#allocation102_spill] sm:$0xff] }
 0x39b   :  { %v7286_v13 = vpop.f32.mrf.mxu1  ;;  %v7288_v62 = vadd.f32 %v2383_v44, %v2215_v27  ;;  %v8055_v44 = vld [vmem:[#allocation100_spill] sm:$0xff]  ;;  %v8057_v27 = vld [vmem:[#allocation101_spill] sm:$0xff] }
 0x39c   :  { %8050 = vst [vmem:[#allocation86_spill] sm:$0xff] %v7286_v13 }
 0x39d   :  { %8051 = vst [vmem:[#allocation90_spill] sm:$0xff] %v7288_v62 }
 0x39e   :  { %v2047_v20 = vpop.f32.mrf.mxu2 }
 0x39f   :  { %v2048_v17 = vadd.f32 %v2047_v20, %v6157_v24  ;;  %v2216_v22 = vpop.f32.mrf.mxu3  ;;  %v8056_v24 = vld [vmem:[#allocation103_spill] sm:$0xff] }
 0x3a0   :  { %v2904_v26 = vpop.f32.mrf.mxu0  ;;  %v2398_v23 = vadd.f32 %v8056_v24, %v7294_v1 }
 0x3a1   :  { %v2217_v28 = vadd.f32 %v2216_v22, %v2048_v17 }
 0x3a3   :  { %v3073_v54 = vpop.f32.mrf.mxu1  ;;  %v7296_v42 = vadd.f32 %v2385_v11, %v2217_v28  ;;  %2605 = vmatmul.bf16.gmra.mxu2 %v8053_v58  ;;  %2943 = vmatmul.bf16.gmra.mxu0 %v8054_v41  ;;  %v8058_v28 = vld [vmem:[#allocation104_spill] sm:$0xff] }
 0x3a4   :  { %2774 = vmatmul.bf16.gmra.mxu3 %v8055_v44  ;;  %v2400_v58 = vadd.f32 %v8058_v28, %v7294_v1  ;;  %v3233_v44 = vmax.f32 %v8059_v37, 0.0  ;;  %v8061_v37 = vld [vmem:[#allocation106_spill] sm:$0xff] }
 0x3a5   :  { %8052 = vst [vmem:[#allocation16_spill] sm:$0xff] %v7296_v42 }
 0x3a6   :  { %4475 = vmatmul.msk.bf16.gmra.mxu1 %vm1446_vm0, %v8057_v27  ;;  %v2566_v20 = vpop.f32.mrf.mxu2 }
 0x3a7   :  { %v2567_v62 = vadd.f32 %v2566_v20, %v2398_v23  ;;  %v2735_v5 = vpop.f32.mrf.mxu3  ;;  %v8060_v20 = vld [vmem:[#allocation30_spill] sm:$0xff] }
 0x3a8   :  { %v2906_v13 = vpop.f32.mrf.mxu0 }
 0x3a9   :  { %v2736_v17 = vadd.f32 %v2735_v5, %v2567_v62  ;;  %v2403_v62 = vadd.f32 %v6196_v52, %v7294_v1 }
 0x3ab   :  { %v3075_v22 = vpop.f32.mrf.mxu1  ;;  %v2905_v11 = vadd.f32 %v2904_v26, %v2736_v17 }
 0x3ad   :  { %v3074_v42 = vadd.f32 %v3073_v54, %v2905_v11 }
 0x3ae   :  { %v2568_v41 = vpop.f32.mrf.mxu2 }
 0x3af   :  { %v3234_v30 = vmax.f32 %v3074_v42, 0.0  ;;  %v2569_v25 = vadd.f32 %v2568_v41, %v2400_v58  ;;  %v2737_v24 = vpop.f32.mrf.mxu3  ;;  %v8062_v42 = vld [vmem:[#allocation107_spill] sm:$0xff]  ;;  %v8064_v41 = vld [vmem:[#allocation109_spill] sm:$0xff] }
 0x3b0   :  { %v2909_v21 = vpop.f32.mrf.mxu0 }
 0x3b1   :  { %v3361_v63 = vpack.c.bf16 %v3234_v30, %v3233_v44  ;;  %v2738_v27 = vadd.f32 %v2737_v24, %v2569_v25  ;;  %v3235_v30 = vmax.f32 %v8062_v42, 0.0  ;;  %v3237_v44 = vmax.f32 %v8064_v41, 0.0  ;;  %v8065_v42 = vld [vmem:[#allocation35_spill] sm:$0xff] }
 0x3b3   :  { %v3078_v10 = vpop.f32.mrf.mxu1  ;;  %3425 = vst [vmem:[#allocation2] sm:$0xff] %v3361_v63  ;;  %v2907_v23 = vadd.f32 %v2906_v13, %v2738_v27  ;;  %2610 = vmatmul.bf16.gmra.mxu2 %v8060_v20  ;;  %2948 = vmatmul.bf16.gmra.mxu0 %v6194_v32 }
 0x3b4   :  { %2779 = vmatmul.bf16.gmra.mxu3 %v6190_v55  ;;  %v8063_v55 = vld [vmem:[#allocation108_spill] sm:$0xff] }
 0x3b5   :  { %v3076_v26 = vadd.f32 %v3075_v22, %v2907_v23  ;;  %v2405_v58 = vadd.f32 %v8063_v55, %v7294_v1 }
 0x3b6   :  { %4476 = vmatmul.msk.bf16.gmra.mxu1 %vm1446_vm0, %v8061_v37  ;;  %v2571_v54 = vpop.f32.mrf.mxu2 }
 0x3b7   :  { %v3236_v25 = vmax.f32 %v3076_v26, 0.0  ;;  %v2572_v5 = vadd.f32 %v2571_v54, %v2403_v62  ;;  %v2740_v63 = vpop.f32.mrf.mxu3 }
 0x3b8   :  { %v2911_v13 = vpop.f32.mrf.mxu0 }
 0x3b9   :  { %v3362_v17 = vpack.c.bf16 %v3236_v25, %v3235_v30  ;;  %v2741_v11 = vadd.f32 %v2740_v63, %v2572_v5  ;;  %v8066_v30 = vld [vmem:[#allocation112_spill] sm:$0xff]  ;;  %v8069_v63 = vld [vmem:[#allocation111_spill] sm:$0xff] }
 0x3bb   :  { %v3080_v28 = vpop.f32.mrf.mxu1  ;;  %3426 = vst [vmem:[#allocation2 + $0x8] sm:$0xff] %v3362_v17  ;;  %v2910_v32 = vadd.f32 %v2909_v21, %v2741_v11  ;;  %v8067_v21 = vld [vmem:[#allocation110_spill] sm:$0xff] }
 0x3bc   :  { %v8070_v11 = vld [vmem:[#allocation114_spill] sm:$0xff] }
 0x3bd   :  { %v3079_v52 = vadd.f32 %v3078_v10, %v2910_v32  ;;  %v8068_v10 = vld [vmem:[#allocation113_spill] sm:$0xff]  ;;  %v3239_v32 = vmax.f32 %v8070_v11, 0.0  ;;  %v8073_v11 = vld [vmem:[#allocation40_spill] sm:$0xff] }
 0x3be   :  { %v2573_v22 = vpop.f32.mrf.mxu2  ;;  %v2408_v25 = vadd.f32 %v8068_v10, %v7294_v1 }
 0x3bf   :  { %v3238_v24 = vmax.f32 %v3079_v52, 0.0  ;;  %v2574_v27 = vadd.f32 %v2573_v22, %v2405_v58  ;;  %v2742_v23 = vpop.f32.mrf.mxu3 }
 0x3c0   :  { %v2914_v20 = vpop.f32.mrf.mxu0 }
 0x3c1   :  { %v3363_v26 = vpack.c.bf16 %v3238_v24, %v3237_v44  ;;  %v2743_v62 = vadd.f32 %v2742_v23, %v2574_v27  ;;  %v8071_v27 = vld [vmem:[#allocation115_spill] sm:$0xff] }
 0x3c2   :  { %v2410_v23 = vadd.f32 %v8071_v27, %v7294_v1 }
 0x3c3   :  { %v3083_v37 = vpop.f32.mrf.mxu1  ;;  %3427 = vst [vmem:[#allocation2 + $0x10] sm:$0xff] %v3363_v26  ;;  %v2912_v54 = vadd.f32 %v2911_v13, %v2743_v62  ;;  %2615 = vmatmul.bf16.gmra.mxu2 %v8065_v42  ;;  %2953 = vmatmul.bf16.gmra.mxu0 %v8066_v30  ;;  %v8072_v62 = vld [vmem:[#allocation116_spill] sm:$0xff] }
 0x3c4   :  { %2784 = vmatmul.bf16.gmra.mxu3 %v8067_v21 }
 0x3c5   :  { %v3081_v5 = vadd.f32 %v3080_v28, %v2912_v54  ;;  %v3241_v54 = vmax.f32 %v8072_v62, 0.0 }
 0x3c6   :  { %4477 = vmatmul.msk.bf16.gmra.mxu1 %vm1446_vm0, %v8069_v63  ;;  %v2576_v17 = vpop.f32.mrf.mxu2 }
 0x3c7   :  { %v3240_v55 = vmax.f32 %v3081_v5, 0.0  ;;  %v2577_v58 = vadd.f32 %v2576_v17, %v2408_v25  ;;  %v2745_v52 = vpop.f32.mrf.mxu3 }
 0x3c8   :  { %v2916_v13 = vpop.f32.mrf.mxu0 }
 0x3c9   :  { %v3364_v22 = vpack.c.bf16 %v3240_v55, %v3239_v32  ;;  %v2746_v41 = vadd.f32 %v2745_v52, %v2577_v58  ;;  %v3243_v55 = vmax.f32 %v6294_v29, 0.0 }
 0x3cb   :  { %v3085_v44 = vpop.f32.mrf.mxu1  ;;  %3428 = vst [vmem:[#allocation2 + $0x18] sm:$0xff] %v3364_v22  ;;  %v2915_v24 = vadd.f32 %v2914_v20, %v2746_v41  ;;  %v2413_v20 = vadd.f32 %v6292_v38, %v7294_v1 }
 0x3cd   :  { %v3084_v26 = vadd.f32 %v3083_v37, %v2915_v24 }
 0x3ce   :  { %v2578_v28 = vpop.f32.mrf.mxu2 }
 0x3cf   :  { %v3242_v42 = vmax.f32 %v3084_v26, 0.0  ;;  %v2579_v30 = vadd.f32 %v2578_v28, %v2410_v23  ;;  %v2747_v21 = vpop.f32.mrf.mxu3  ;;  %v8074_v23 = vld [vmem:[#allocation117_spill] sm:$0xff] }
 0x3d0   :  { %v2919_v10 = vpop.f32.mrf.mxu0  ;;  %v3245_v26 = vmax.f32 %v8074_v23, 0.0 }
 0x3d1   :  { %v3365_v5 = vpack.c.bf16 %v3242_v42, %v3241_v54  ;;  %v2748_v25 = vadd.f32 %v2747_v21, %v2579_v30 }
 0x3d3   :  { %v3088_v63 = vpop.f32.mrf.mxu1  ;;  %3429 = vst [vmem:[#allocation2 + $0x20] sm:$0xff] %v3365_v5  ;;  %v2917_v17 = vadd.f32 %v2916_v13, %v2748_v25  ;;  %2620 = vmatmul.bf16.gmra.mxu2 %v8073_v11  ;;  %2958 = vmatmul.bf16.gmra.mxu0 %v6290_v57  ;;  %v8075_v5 = vld [vmem:[#allocation45_spill] sm:$0xff]  ;;  %v8076_v25 = vld [vmem:[#allocation118_spill] sm:$0xff] }
 0x3d4   :  { %2789 = vmatmul.bf16.gmra.mxu3 %v6286_v33  ;;  %v2415_v33 = vadd.f32 %v6302_v7, %v7294_v1  ;;  %v2418_v7 = vadd.f32 %v6331_v14, %v7294_v1 }
 0x3d5   :  { %v3086_v37 = vadd.f32 %v3085_v44, %v2917_v17  ;;  %v8077_v17 = vld [vmem:[#allocation119_spill] sm:$0xff] }
 0x3d6   :  { %4478 = vmatmul.msk.bf16.gmra.mxu1 %vm1446_vm0, %v6288_v2  ;;  %v2581_v32 = vpop.f32.mrf.mxu2  ;;  %v3247_v11 = vmax.f32 %v8077_v17, 0.0 }
 0x3d7   :  { %v3244_v58 = vmax.f32 %v3086_v37, 0.0  ;;  %v2582_v52 = vadd.f32 %v2581_v32, %v2413_v20  ;;  %v2750_v22 = vpop.f32.mrf.mxu3 }
 0x3d8   :  { %v2921_v13 = vpop.f32.mrf.mxu0 }
 0x3d9   :  { %v3366_v41 = vpack.c.bf16 %v3244_v58, %v3243_v55  ;;  %v2751_v24 = vadd.f32 %v2750_v22, %v2582_v52 }
 0x3db   :  { %v3090_v27 = vpop.f32.mrf.mxu1  ;;  %3430 = vst [vmem:[#allocation2 + $0x28] sm:$0xff] %v3366_v41  ;;  %v2920_v57 = vadd.f32 %v2919_v10, %v2751_v24  ;;  %v8079_v24 = vld [vmem:[#allocation121_spill] sm:$0xff] }
 0x3dd   :  { %v3089_v38 = vadd.f32 %v3088_v63, %v2920_v57 }
 0x3de   :  { %v2583_v44 = vpop.f32.mrf.mxu2 }
 0x3df   :  { %v3246_v2 = vmax.f32 %v3089_v38, 0.0  ;;  %v2584_v28 = vadd.f32 %v2583_v44, %v2415_v33  ;;  %v2752_v62 = vpop.f32.mrf.mxu3 }
 0x3e0   :  { %v2924_v29 = vpop.f32.mrf.mxu0 }
 0x3e1   :  { %v3367_v54 = vpack.c.bf16 %v3246_v2, %v3245_v26  ;;  %v2753_v42 = vadd.f32 %v2752_v62, %v2584_v28  ;;  %v8080_v62 = vld [vmem:[#allocation50_spill] sm:$0xff] }
 0x3e3   :  { %v3093_v30 = vpop.f32.mrf.mxu1  ;;  %3431 = vst [vmem:[#allocation2 + $0x30] sm:$0xff] %v3367_v54  ;;  %v2922_v21 = vadd.f32 %v2921_v13, %v2753_v42  ;;  %2625 = vmatmul.bf16.gmra.mxu2 %v8075_v5  ;;  %2963 = vmatmul.bf16.gmra.mxu0 %v6329_v48  ;;  %v8081_v42 = vld [vmem:[#allocation122_spill] sm:$0xff] }
 0x3e4   :  { %2794 = vmatmul.bf16.gmra.mxu3 %v6325_v39  ;;  %v8078_v39 = vld [vmem:[#allocation120_spill] sm:$0xff] }
 0x3e5   :  { %v3091_v10 = vadd.f32 %v3090_v27, %v2922_v21  ;;  %v2420_v13 = vadd.f32 %v8078_v39, %v7294_v1  ;;  %v3249_v27 = vmax.f32 %v8079_v24, 0.0  ;;  %v8082_v21 = vld [vmem:[#allocation123_spill] sm:$0xff] }
 0x3e6   :  { %4479 = vmatmul.msk.bf16.gmra.mxu1 %vm1446_vm0, %v8076_v25  ;;  %v2586_v63 = vpop.f32.mrf.mxu2  ;;  %v3251_v5 = vmax.f32 %v8082_v21, 0.0 }
 0x3e7   :  { %v3248_v20 = vmax.f32 %v3091_v10, 0.0  ;;  %v2587_v37 = vadd.f32 %v2586_v63, %v2418_v7  ;;  %v2755_v32 = vpop.f32.mrf.mxu3 }
 0x3e8   :  { %v2926_v55 = vpop.f32.mrf.mxu0 }
 0x3e9   :  { %v3368_v58 = vpack.c.bf16 %v3248_v20, %v3247_v11  ;;  %v2756_v52 = vadd.f32 %v2755_v32, %v2587_v37 }
 0x3eb   :  { %v3095_v22 = vpop.f32.mrf.mxu1  ;;  %3432 = vst [vmem:[#allocation2 + $0x38] sm:$0xff] %v3368_v58  ;;  %v2925_v48 = vadd.f32 %v2924_v29, %v2756_v52  ;;  %v2423_v29 = vadd.f32 %v6370_v53, %v7294_v1 }
 0x3ed   :  { %v3094_v14 = vadd.f32 %v3093_v30, %v2925_v48 }
 0x3ee   :  { %v2588_v41 = vpop.f32.mrf.mxu2 }
 0x3ef   :  { %v3250_v57 = vmax.f32 %v3094_v14, 0.0  ;;  %v2589_v33 = vadd.f32 %v2588_v41, %v2420_v13  ;;  %v2757_v38 = vpop.f32.mrf.mxu3 }
 0x3f0   :  { %v2929_v44 = vpop.f32.mrf.mxu0 }
 0x3f1   :  { %v3369_v23 = vpack.c.bf16 %v3250_v57, %v3249_v27  ;;  %v2758_v26 = vadd.f32 %v2757_v38, %v2589_v33  ;;  %v8085_v27 = vld [vmem:[#allocation55_spill] sm:$0xff]  ;;  %v8086_v57 = vld [vmem:[#allocation128_spill] sm:$0xff]  ;;  %v8087_v33 = vld [vmem:[#allocation126_spill] sm:$0xff] }
 0x3f2   :  { %v8088_v38 = vld [vmem:[#allocation129_spill] sm:$0xff] }
 0x3f3   :  { %v3098_v2 = vpop.f32.mrf.mxu1  ;;  %3433 = vst [vmem:[#allocation2 + $0x40] sm:$0xff] %v3369_v23  ;;  %v2927_v28 = vadd.f32 %v2926_v55, %v2758_v26  ;;  %2630 = vmatmul.bf16.gmra.mxu2 %v8080_v62  ;;  %2968 = vmatmul.bf16.gmra.mxu0 %v6368_v18  ;;  %v8084_v55 = vld [vmem:[#allocation125_spill] sm:$0xff]  ;;  %v8089_v26 = vld [vmem:[#allocation127_spill] sm:$0xff] }
 0x3f4   :  { %2799 = vmatmul.bf16.gmra.mxu3 %v6364_v19  ;;  %v8083_v19 = vld [vmem:[#allocation124_spill] sm:$0xff]  ;;  %v3253_v58 = vmax.f32 %v8084_v55, 0.0 }
 0x3f5   :  { %v3096_v54 = vadd.f32 %v3095_v22, %v2927_v28  ;;  %v2425_v37 = vadd.f32 %v8083_v19, %v7294_v1  ;;  %v8090_v28 = vld [vmem:[#allocation130_spill] sm:$0xff] }
 0x3f6   :  { %4480 = vmatmul.msk.bf16.gmra.mxu1 %vm1446_vm0, %v8081_v42  ;;  %v2591_v30 = vpop.f32.mrf.mxu2  ;;  %v3255_v62 = vmax.f32 %v8090_v28, 0.0 }
 0x3f7   :  { %v3252_v7 = vmax.f32 %v3096_v54, 0.0  ;;  %v2592_v10 = vadd.f32 %v2591_v30, %v2423_v29  ;;  %v2760_v25 = vpop.f32.mrf.mxu3 }
 0x3f8   :  { %v2931_v63 = vpop.f32.mrf.mxu0 }
 0x3f9   :  { %v3370_v17 = vpack.c.bf16 %v3252_v7, %v3251_v5  ;;  %v2761_v11 = vadd.f32 %v2760_v25, %v2592_v10  ;;  %v8091_v25 = vld [vmem:[#allocation131_spill] sm:$0xff] }
 0x3fb   :  { %v3100_v20 = vpop.f32.mrf.mxu1  ;;  %3434 = vst [vmem:[#allocation2 + $0x48] sm:$0xff] %v3370_v17  ;;  %v2930_v18 = vadd.f32 %v2929_v44, %v2761_v11  ;;  %v2428_v44 = vadd.f32 %v8088_v38, %v7294_v1 }
 0x3fd   :  { %v3099_v53 = vadd.f32 %v3098_v2, %v2930_v18 }
 0x3fe   :  { %v2593_v32 = vpop.f32.mrf.mxu2 }
 0x3ff   :  { %v3254_v52 = vmax.f32 %v3099_v53, 0.0  ;;  %v2594_v22 = vadd.f32 %v2593_v32, %v2425_v37  ;;  %v2762_v48 = vpop.f32.mrf.mxu3 }
 0x400   :  { %v2934_v39 = vpop.f32.mrf.mxu0 }
 0x401   :  { %v3371_v13 = vpack.c.bf16 %v3254_v52, %v3253_v58  ;;  %v2763_v14 = vadd.f32 %v2762_v48, %v2594_v22  ;;  %v8093_v48 = vld [vmem:[#allocation60_spill] sm:$0xff] }
 0x403   :  { %v3103_v41 = vpop.f32.mrf.mxu1  ;;  %3435 = vst [vmem:[#allocation2 + $0x50] sm:$0xff] %v3371_v13  ;;  %v2932_v24 = vadd.f32 %v2931_v63, %v2763_v14  ;;  %2635 = vmatmul.bf16.gmra.mxu2 %v8085_v27  ;;  %2973 = vmatmul.bf16.gmra.mxu0 %v8086_v57  ;;  %v2430_v63 = vadd.f32 %v8091_v25, %v7294_v1 }
 0x404   :  { %2804 = vmatmul.bf16.gmra.mxu3 %v8087_v33 }
 0x405   :  { %v3101_v23 = vadd.f32 %v3100_v20, %v2932_v24  ;;  %v8092_v20 = vld [vmem:[#allocation132_spill] sm:$0xff] }
 0x406   :  { %4481 = vmatmul.msk.bf16.gmra.mxu1 %vm1446_vm0, %v8089_v26  ;;  %v2596_v2 = vpop.f32.mrf.mxu2  ;;  %v3257_v18 = vmax.f32 %v8092_v20, 0.0 }
 0x407   :  { %v3256_v29 = vmax.f32 %v3101_v23, 0.0  ;;  %v2597_v54 = vadd.f32 %v2596_v2, %v2428_v44  ;;  %v2765_v42 = vpop.f32.mrf.mxu3  ;;  %v8094_v2 = vld [vmem:[#allocation133_spill] sm:$0xff] }
 0x408   :  { %v2936_v30 = vpop.f32.mrf.mxu0  ;;  %v3261_v28 = vmax.f32 %v8094_v2, 0.0 }
 0x409   :  { %v3372_v21 = vpack.c.bf16 %v3256_v29, %v3255_v62  ;;  %v2766_v5 = vadd.f32 %v2765_v42, %v2597_v54 }
 0x40b   :  { %v3105_v7 = vpop.f32.mrf.mxu1  ;;  %3436 = vst [vmem:[#allocation2 + $0x58] sm:$0xff] %v3372_v21  ;;  %v2935_v10 = vadd.f32 %v2934_v39, %v2766_v5  ;;  %v2433_v39 = vadd.f32 %v6466_v56, %v7294_v1  ;;  %v8095_v5 = vld [vmem:[#allocation5_spill] sm:$0xff] }
 0x40d   :  { %v3104_v17 = vadd.f32 %v3103_v41, %v2935_v10  ;;  %v3259_v41 = vmax.f32 %v6468_v31, 0.0  ;;  %v8096_v10 = vld [vmem:[#allocation134_spill] sm:$0xff] }
 0x40e   :  { %v2598_v11 = vpop.f32.mrf.mxu2 }
 0x40f   :  { %v3258_v19 = vmax.f32 %v3104_v17, 0.0  ;;  %v2599_v37 = vadd.f32 %v2598_v11, %v2430_v63  ;;  %v2767_v53 = vpop.f32.mrf.mxu3  ;;  %v8097_v63 = vld [vmem:[#allocation135_spill] sm:$0xff] }
 0x410   :  { %v2939_v32 = vpop.f32.mrf.mxu0  ;;  %v3263_v17 = vmax.f32 %v8097_v63, 0.0 }
 0x411   :  { %v3373_v55 = vpack.c.bf16 %v3258_v19, %v3257_v18  ;;  %v2768_v58 = vadd.f32 %v2767_v53, %v2599_v37 }
 0x413   :  { %v3108_v52 = vpop.f32.mrf.mxu1  ;;  %3437 = vst [vmem:[#allocation2 + $0x60] sm:$0xff] %v3373_v55  ;;  %v2937_v22 = vadd.f32 %v2936_v30, %v2768_v58  ;;  %2640 = vmatmul.bf16.gmra.mxu2 %v8093_v48  ;;  %2978 = vmatmul.bf16.gmra.mxu0 %v6464_v8 }
 0x414   :  { %2809 = vmatmul.bf16.gmra.mxu3 %v6460_v50  ;;  %v2435_v50 = vadd.f32 %v6482_v4, %v7294_v1  ;;  %v2438_v4 = vadd.f32 %v6511_v16, %v7294_v1 }
 0x415   :  { %v3106_v13 = vadd.f32 %v3105_v7, %v2937_v22 }
 0x416   :  { %4482 = vmatmul.msk.bf16.gmra.mxu1 %vm1446_vm0, %v6462_v60  ;;  %v2601_v14 = vpop.f32.mrf.mxu2 }
 0x417   :  { %v3260_v24 = vmax.f32 %v3106_v13, 0.0  ;;  %v2602_v27 = vadd.f32 %v2601_v14, %v2433_v39  ;;  %v2770_v57 = vpop.f32.mrf.mxu3 }
 0x418   :  { %v2941_v33 = vpop.f32.mrf.mxu0 }
 0x419   :  { %v3374_v38 = vpack.c.bf16 %v3260_v24, %v3259_v41  ;;  %v2771_v44 = vadd.f32 %v2770_v57, %v2602_v27 }
 0x41b   :  { %v3110_v23 = vpop.f32.mrf.mxu1  ;;  %3438 = vst [vmem:[#allocation2 + $0x68] sm:$0xff] %v3374_v38  ;;  %v2940_v8 = vadd.f32 %v2939_v32, %v2771_v44  ;;  %v2443_v38 = vadd.f32 %v6550_v35, %v7294_v1 }
 0x41d   :  { %v3109_v56 = vadd.f32 %v3108_v52, %v2940_v8  ;;  %v8099_v52 = vld [vmem:[#allocation137_spill] sm:$0xff] }
 0x41e   :  { %v2603_v26 = vpop.f32.mrf.mxu2  ;;  %v3265_v22 = vmax.f32 %v8099_v52, 0.0 }
 0x41f   :  { %v3262_v60 = vmax.f32 %v3109_v56, 0.0  ;;  %v2604_v62 = vadd.f32 %v2603_v26, %v2435_v50  ;;  %v2772_v29 = vpop.f32.mrf.mxu3  ;;  %v8102_v50 = vld [vmem:[#allocation139_spill] sm:$0xff] }
 0x420   :  { %v2944_v31 = vpop.f32.mrf.mxu0  ;;  %v3267_v56 = vmax.f32 %v8102_v50, 0.0 }
 0x421   :  { %v3375_v54 = vpack.c.bf16 %v3262_v60, %v3261_v28  ;;  %v2773_v42 = vadd.f32 %v2772_v29, %v2604_v62 }
 0x423   :  { %v3113_v30 = vpop.f32.mrf.mxu1  ;;  %3439 = vst [vmem:[#allocation2 + $0x70] sm:$0xff] %v3375_v54  ;;  %v2942_v21 = vadd.f32 %v2941_v33, %v2773_v42  ;;  %2645 = vmatmul.bf16.gmra.mxu2 %v8095_v5  ;;  %2983 = vmatmul.bf16.gmra.mxu0 %v6509_v49  ;;  %v8100_v33 = vld [vmem:[#allocation7_spill] sm:$0xff] }
 0x424   :  { %2814 = vmatmul.bf16.gmra.mxu3 %v6505_v12  ;;  %v8098_v12 = vld [vmem:[#allocation136_spill] sm:$0xff] }
 0x425   :  { %v3111_v7 = vadd.f32 %v3110_v23, %v2942_v21  ;;  %v2440_v55 = vadd.f32 %v8098_v12, %v7294_v1  ;;  %v8101_v23 = vld [vmem:[#allocation138_spill] sm:$0xff] }
 0x426   :  { %4483 = vmatmul.msk.bf16.gmra.mxu1 %vm1446_vm0, %v8096_v10  ;;  %v2606_v25 = vpop.f32.mrf.mxu2 }
 0x427   :  { %v3264_v11 = vmax.f32 %v3111_v7, 0.0  ;;  %v2607_v20 = vadd.f32 %v2606_v25, %v2438_v4  ;;  %v2775_v18 = vpop.f32.mrf.mxu3 }
 0x428   :  { %v2946_v19 = vpop.f32.mrf.mxu0 }
 0x429   :  { %v3376_v37 = vpack.c.bf16 %v3264_v11, %v3263_v17  ;;  %v2776_v53 = vadd.f32 %v2775_v18, %v2607_v20  ;;  %v8105_v20 = vld [vmem:[#allocation9_spill] sm:$0xff]  ;;  %v8106_v18 = vld [vmem:[#allocation144_spill] sm:$0xff] }
 0x42b   :  { %v3115_v32 = vpop.f32.mrf.mxu1  ;;  %3440 = vst [vmem:[#allocation2 + $0x78] sm:$0xff] %v3376_v37  ;;  %v2945_v49 = vadd.f32 %v2944_v31, %v2776_v53  ;;  %v8108_v37 = vld [vmem:[#allocation145_spill] sm:$0xff] }
 0x42c   :  { %v2448_v53 = vadd.f32 %v8108_v37, %v7294_v1  ;;  %v8115_v37 = vld [vmem:[#allocation13_spill] sm:$0xff] }
 0x42d   :  { %v3114_v16 = vadd.f32 %v3113_v30, %v2945_v49  ;;  %v8104_v30 = vld [vmem:[#allocation141_spill] sm:$0xff]  ;;  %v8109_v49 = vld [vmem:[#allocation143_spill] sm:$0xff] }
 0x42e   :  { %v2608_v58 = vpop.f32.mrf.mxu2  ;;  %v3269_v21 = vmax.f32 %v8104_v30, 0.0 }
 0x42f   :  { %v3266_v48 = vmax.f32 %v3114_v16, 0.0  ;;  %v2609_v39 = vadd.f32 %v2608_v58, %v2440_v55  ;;  %v2777_v13 = vpop.f32.mrf.mxu3  ;;  %v8110_v55 = vld [vmem:[#allocation146_spill] sm:$0xff] }
 0x430   :  { %v2949_v14 = vpop.f32.mrf.mxu0  ;;  %v3271_v16 = vmax.f32 %v8110_v55, 0.0 }
 0x431   :  { %v3377_v41 = vpack.c.bf16 %v3266_v48, %v3265_v22  ;;  %v2778_v24 = vadd.f32 %v2777_v13, %v2609_v39 }
 0x433   :  { %v3118_v27 = vpop.f32.mrf.mxu1  ;;  %3441 = vst [vmem:[#allocation2 + $0x80] sm:$0xff] %v3377_v41  ;;  %v2947_v57 = vadd.f32 %v2946_v19, %v2778_v24  ;;  %2650 = vmatmul.bf16.gmra.mxu2 %v8100_v33  ;;  %2988 = vmatmul.bf16.gmra.mxu0 %v6548_v45  ;;  %v8107_v19 = vld [vmem:[#allocation142_spill] sm:$0xff]  ;;  %v8111_v24 = vld [vmem:[#allocation147_spill] sm:$0xff] }
 0x434   :  { %2819 = vmatmul.bf16.gmra.mxu3 %v6544_v3  ;;  %v8103_v3 = vld [vmem:[#allocation140_spill] sm:$0xff] }
 0x435   :  { %v3116_v44 = vadd.f32 %v3115_v32, %v2947_v57  ;;  %v2445_v54 = vadd.f32 %v8103_v3, %v7294_v1  ;;  %v3275_v3 = vmax.f32 %v6648_v15, 0.0 }
 0x436   :  { %4484 = vmatmul.msk.bf16.gmra.mxu1 %vm1446_vm0, %v8101_v23  ;;  %v2611_v8 = vpop.f32.mrf.mxu2 }
 0x437   :  { %v3268_v26 = vmax.f32 %v3116_v44, 0.0  ;;  %v2612_v2 = vadd.f32 %v2611_v8, %v2443_v38  ;;  %v2780_v28 = vpop.f32.mrf.mxu3  ;;  %v8112_v38 = vld [vmem:[#allocation148_spill] sm:$0xff] }
 0x438   :  { %v2951_v60 = vpop.f32.mrf.mxu0  ;;  %v3273_v44 = vmax.f32 %v8112_v38, 0.0 }
 0x439   :  { %v3378_v62 = vpack.c.bf16 %v3268_v26, %v3267_v56  ;;  %v2781_v29 = vadd.f32 %v2780_v28, %v2612_v2 }
 0x43b   :  { %v3120_v31 = vpop.f32.mrf.mxu1  ;;  %3442 = vst [vmem:[#allocation2 + $0x88] sm:$0xff] %v3378_v62  ;;  %v2950_v45 = vadd.f32 %v2949_v14, %v2781_v29  ;;  %v8113_v62 = vld [vmem:[#allocation11_spill] sm:$0xff]  ;;  %v2453_v29 = vadd.f32 %v6646_v43, %v7294_v1 }
 0x43d   :  { %v3119_v35 = vadd.f32 %v3118_v27, %v2950_v45  ;;  %v2450_v27 = vadd.f32 %v8111_v24, %v7294_v1  ;;  %v8119_v24 = vld [vmem:[#allocation153_spill] sm:$0xff] }
 0x43e   :  { %v2613_v42 = vpop.f32.mrf.mxu2 }
 0x43f   :  { %v3270_v5 = vmax.f32 %v3119_v35, 0.0  ;;  %v2614_v4 = vadd.f32 %v2613_v42, %v2445_v54  ;;  %v2782_v7 = vpop.f32.mrf.mxu3 }
 0x440   :  { %v2954_v10 = vpop.f32.mrf.mxu0 }
 0x441   :  { %v3379_v25 = vpack.c.bf16 %v3270_v5, %v3269_v21  ;;  %v2783_v63 = vadd.f32 %v2782_v7, %v2614_v4 }
 0x443   :  { %v3123_v17 = vpop.f32.mrf.mxu1  ;;  %3443 = vst [vmem:[#allocation2 + $0x90] sm:$0xff] %v3379_v25  ;;  %v2952_v11 = vadd.f32 %v2951_v60, %v2783_v63  ;;  %2655 = vmatmul.bf16.gmra.mxu2 %v8105_v20  ;;  %2993 = vmatmul.bf16.gmra.mxu0 %v8106_v18 }
 0x444   :  { %2824 = vmatmul.bf16.gmra.mxu3 %v8107_v19 }
 0x445   :  { %v3121_v32 = vadd.f32 %v3120_v31, %v2952_v11 }
 0x446   :  { %4485 = vmatmul.msk.bf16.gmra.mxu1 %vm1446_vm0, %v8109_v49  ;;  %v2616_v12 = vpop.f32.mrf.mxu2 }
 0x447   :  { %v3272_v58 = vmax.f32 %v3121_v32, 0.0  ;;  %v2617_v52 = vadd.f32 %v2616_v12, %v2448_v53  ;;  %v2785_v22 = vpop.f32.mrf.mxu3  ;;  %v8116_v32 = vld [vmem:[#allocation150_spill] sm:$0xff]  ;;  %v8117_v12 = vld [vmem:[#allocation151_spill] sm:$0xff] }
 0x448   :  { %v2956_v48 = vpop.f32.mrf.mxu0  ;;  %v3279_v55 = vmax.f32 %v8117_v12, 0.0  ;;  %v8131_v12 = vld [vmem:[#allocation164_spill] sm:$0xff] }
 0x449   :  { %v3380_v39 = vpack.c.bf16 %v3272_v58, %v3271_v16  ;;  %v2786_v13 = vadd.f32 %v2785_v22, %v2617_v52 }
 0x44b   :  { %v3125_v14 = vpop.f32.mrf.mxu1  ;;  %3444 = vst [vmem:[#allocation2 + $0x98] sm:$0xff] %v3380_v39  ;;  %v2955_v41 = vadd.f32 %v2954_v10, %v2786_v13  ;;  %v8114_v10 = vld [vmem:[#allocation149_spill] sm:$0xff] }
 0x44c   :  { %v3277_v25 = vmax.f32 %v8114_v10, 0.0 }
 0x44d   :  { %v3124_v57 = vadd.f32 %v3123_v17, %v2955_v41 }
 0x44e   :  { %v2618_v33 = vpop.f32.mrf.mxu2 }
 0x44f   :  { %v3274_v23 = vmax.f32 %v3124_v57, 0.0  ;;  %v2619_v8 = vadd.f32 %v2618_v33, %v2450_v27  ;;  %v2787_v50 = vpop.f32.mrf.mxu3  ;;  %v3281_v27 = vmax.f32 %v8119_v24, 0.0 }
 0x450   :  { %v2959_v56 = vpop.f32.mrf.mxu0 }
 0x451   :  { %v3381_v26 = vpack.c.bf16 %v3274_v23, %v3273_v44  ;;  %v2788_v2 = vadd.f32 %v2787_v50, %v2619_v8 }
 0x453   :  { %v3128_v28 = vpop.f32.mrf.mxu1  ;;  %3445 = vst [vmem:[#allocation2 + $0xa0] sm:$0xff] %v3381_v26  ;;  %v2957_v60 = vadd.f32 %v2956_v48, %v2788_v2  ;;  %2660 = vmatmul.bf16.gmra.mxu2 %v8113_v62  ;;  %2998 = vmatmul.bf16.gmra.mxu0 %v6644_v36  ;;  %v8120_v26 = vld [vmem:[#allocation15_spill] sm:$0xff]  ;;  %v8121_v2 = vld [vmem:[#allocation156_spill] sm:$0xff] }
 0x454   :  { %2829 = vmatmul.bf16.gmra.mxu3 %v6640_v59  ;;  %v2455_v59 = vadd.f32 %v6656_v34, %v7294_v1  ;;  %v2458_v34 = vadd.f32 %v6685_v51, %v7294_v1 }
 0x455   :  { %v3126_v31 = vadd.f32 %v3125_v14, %v2957_v60  ;;  %v8123_v60 = vld [vmem:[#allocation157_spill] sm:$0xff] }
 0x456   :  { %4486 = vmatmul.msk.bf16.gmra.mxu1 %vm1446_vm0, %v6642_v6  ;;  %v2621_v45 = vpop.f32.mrf.mxu2  ;;  %v2463_v62 = vadd.f32 %v8123_v60, %v7294_v1 }
 0x457   :  { %v3276_v54 = vmax.f32 %v3126_v31, 0.0  ;;  %v2622_v35 = vadd.f32 %v2621_v45, %v2453_v29  ;;  %v2790_v42 = vpop.f32.mrf.mxu3  ;;  %v8124_v31 = vld [vmem:[#allocation155_spill] sm:$0xff] }
 0x458   :  { %v2961_v30 = vpop.f32.mrf.mxu0 }
 0x459   :  { %v3382_v21 = vpack.c.bf16 %v3276_v54, %v3275_v3  ;;  %v2791_v5 = vadd.f32 %v2790_v42, %v2622_v35  ;;  %v8125_v3 = vld [vmem:[#allocation158_spill] sm:$0xff] }
 0x45a   :  { %v3283_v54 = vmax.f32 %v8125_v3, 0.0 }
 0x45b   :  { %v3130_v4 = vpop.f32.mrf.mxu1  ;;  %3446 = vst [vmem:[#allocation2 + $0xa8] sm:$0xff] %v3382_v21  ;;  %v2960_v36 = vadd.f32 %v2959_v56, %v2791_v5 }
 0x45d   :  { %v3129_v43 = vadd.f32 %v3128_v28, %v2960_v36  ;;  %v8122_v28 = vld [vmem:[#allocation154_spill] sm:$0xff] }
 0x45e   :  { %v2623_v7 = vpop.f32.mrf.mxu2 }
 0x45f   :  { %v3278_v6 = vmax.f32 %v3129_v43, 0.0  ;;  %v2624_v63 = vadd.f32 %v2623_v7, %v2455_v59  ;;  %v2792_v17 = vpop.f32.mrf.mxu3  ;;  %v8126_v43 = vld [vmem:[#allocation159_spill] sm:$0xff] }
 0x460   :  { %v2964_v15 = vpop.f32.mrf.mxu0  ;;  %v2465_v7 = vadd.f32 %v8126_v43, %v7294_v1 }
 0x461   :  { %v3383_v11 = vpack.c.bf16 %v3278_v6, %v3277_v25  ;;  %v2793_v20 = vadd.f32 %v2792_v17, %v2624_v63  ;;  %v8127_v6 = vld [vmem:[#allocation160_spill] sm:$0xff] }
 0x462   :  { %v3285_v63 = vmax.f32 %v8127_v6, 0.0 }
 0x463   :  { %v3133_v18 = vpop.f32.mrf.mxu1  ;;  %3447 = vst [vmem:[#allocation2 + $0xb0] sm:$0xff] %v3383_v11  ;;  %v2962_v19 = vadd.f32 %v2961_v30, %v2793_v20  ;;  %2665 = vmatmul.bf16.gmra.mxu2 %v8115_v37  ;;  %3003 = vmatmul.bf16.gmra.mxu0 %v6683_v9 }
 0x464   :  { %2834 = vmatmul.bf16.gmra.mxu3 %v6679_v40  ;;  %v8118_v40 = vld [vmem:[#allocation152_spill] sm:$0xff] }
 0x465   :  { %v3131_v53 = vadd.f32 %v3130_v4, %v2962_v19  ;;  %v2460_v14 = vadd.f32 %v8118_v40, %v7294_v1 }
 0x466   :  { %4487 = vmatmul.msk.bf16.gmra.mxu1 %vm1446_vm0, %v8116_v32  ;;  %v2626_v49 = vpop.f32.mrf.mxu2  ;;  %v8129_v32 = vld [vmem:[#allocation163_spill] sm:$0xff] }
 0x467   :  { %v3280_v16 = vmax.f32 %v3131_v53, 0.0  ;;  %v2627_v58 = vadd.f32 %v2626_v49, %v2458_v34  ;;  %v2795_v52 = vpop.f32.mrf.mxu3  ;;  %v8128_v53 = vld [vmem:[#allocation18_spill] sm:$0xff]  ;;  %v8130_v49 = vld [vmem:[#allocation161_spill] sm:$0xff] }
 0x468   :  { %v2966_v22 = vpop.f32.mrf.mxu0 }
 0x469   :  { %v3384_v48 = vpack.c.bf16 %v3280_v16, %v3279_v55  ;;  %v2796_v39 = vadd.f32 %v2795_v52, %v2627_v58  ;;  %v2468_v55 = vadd.f32 %v8131_v12, %v7294_v1  ;;  %v8132_v58 = vld [vmem:[#allocation162_spill] sm:$0xff]  ;;  %v8144_v12 = vld [vmem:[#allocation169_spill] sm:$0xff] }
 0x46b   :  { %v3135_v13 = vpop.f32.mrf.mxu1  ;;  %3448 = vst [vmem:[#allocation2 + $0xb8] sm:$0xff] %v3384_v48  ;;  %v2965_v9 = vadd.f32 %v2964_v15, %v2796_v39 }
 0x46d   :  { %v3134_v51 = vadd.f32 %v3133_v18, %v2965_v9 }
 0x46e   :  { %v2628_v41 = vpop.f32.mrf.mxu2 }
 0x46f   :  { %v3282_v57 = vmax.f32 %v3134_v51, 0.0  ;;  %v2629_v33 = vadd.f32 %v2628_v41, %v2460_v14  ;;  %v2797_v38 = vpop.f32.mrf.mxu3 }
 0x470   :  { %v2969_v44 = vpop.f32.mrf.mxu0 }
 0x471   :  { %v3385_v23 = vpack.c.bf16 %v3282_v57, %v3281_v27  ;;  %v2798_v8 = vadd.f32 %v2797_v38, %v2629_v33  ;;  %v8134_v27 = vld [vmem:[#allocation17_spill] sm:$0xff] }
 0x472   :  { %v2470_v57 = vadd.f32 %v8134_v27, %v7294_v1 }
 0x473   :  { %v3138_v50 = vpop.f32.mrf.mxu1  ;;  %3449 = vst [vmem:[#allocation2 + $0xc0] sm:$0xff] %v3385_v23  ;;  %v2967_v56 = vadd.f32 %v2966_v22, %v2798_v8  ;;  %2670 = vmatmul.bf16.gmra.mxu2 %v8120_v26  ;;  %3008 = vmatmul.bf16.gmra.mxu0 %v8121_v2  ;;  %v8133_v22 = vld [vmem:[#allocation165_spill] sm:$0xff] }
 0x474   :  { %2839 = vmatmul.bf16.gmra.mxu3 %v8122_v28  ;;  %v3287_v48 = vmax.f32 %v8133_v22, 0.0 }
 0x475   :  { %v3136_v29 = vadd.f32 %v3135_v13, %v2967_v56 }
 0x476   :  { %4488 = vmatmul.msk.bf16.gmra.mxu1 %vm1446_vm0, %v8124_v31  ;;  %v2631_v45 = vpop.f32.mrf.mxu2  ;;  %v8137_v31 = vld [vmem:[#allocation166_spill] sm:$0xff] }
 0x477   :  { %v3284_v35 = vmax.f32 %v3136_v29, 0.0  ;;  %v2632_v42 = vadd.f32 %v2631_v45, %v2463_v62  ;;  %v2800_v30 = vpop.f32.mrf.mxu3  ;;  %v8136_v29 = vld [vmem:[#allocation21_spill] sm:$0xff]  ;;  %v2473_v45 = vadd.f32 %v8137_v31, %v7294_v1  ;;  %v8150_v31 = vld [vmem:[#allocation28_spill] sm:$0xff] }
 0x478   :  { %v2971_v21 = vpop.f32.mrf.mxu0 }
 0x479   :  { %v3386_v5 = vpack.c.bf16 %v3284_v35, %v3283_v54  ;;  %v2801_v4 = vadd.f32 %v2800_v30, %v2632_v42  ;;  %v8138_v54 = vld [vmem:[#allocation98_spill] sm:$0xff]  ;;  %v8139_v42 = vld [vmem:[#allocation167_spill] sm:$0xff] }
 0x47a   :  { %v3291_v30 = vmax.f32 %v8139_v42, 0.0 }
 0x47b   :  { %v3140_v36 = vpop.f32.mrf.mxu1  ;;  %3450 = vst [vmem:[#allocation2 + $0xc8] sm:$0xff] %v3386_v5  ;;  %v2970_v59 = vadd.f32 %v2969_v44, %v2801_v4  ;;  %v8135_v44 = vld [vmem:[#allocation96_spill] sm:$0xff] }
 0x47c   :  { %v3289_v23 = vmax.f32 %v8135_v44, 0.0 }
 0x47d   :  { %v3139_v10 = vadd.f32 %v3138_v50, %v2970_v59 }
 0x47e   :  { %v2633_v25 = vpop.f32.mrf.mxu2 }
 0x47f   :  { %v3286_v17 = vmax.f32 %v3139_v10, 0.0  ;;  %v2634_v15 = vadd.f32 %v2633_v25, %v2465_v7  ;;  %v2802_v11 = vpop.f32.mrf.mxu3 }
 0x480   :  { %v2974_v20 = vpop.f32.mrf.mxu0 }
 0x481   :  { %v3387_v18 = vpack.c.bf16 %v3286_v17, %v3285_v63  ;;  %v2803_v19 = vadd.f32 %v2802_v11, %v2634_v15  ;;  %v8141_v63 = vld [vmem:[#allocation168_spill] sm:$0xff] }
 0x482   :  { %v3293_v17 = vmax.f32 %v8141_v63, 0.0 }
 0x483   :  { %v3143_v37 = vpop.f32.mrf.mxu1  ;;  %3451 = vst [vmem:[#allocation2 + $0xd0] sm:$0xff] %v3387_v18  ;;  %v2972_v34 = vadd.f32 %v2971_v21, %v2803_v19  ;;  %2675 = vmatmul.bf16.gmra.mxu2 %v8128_v53  ;;  %3013 = vmatmul.bf16.gmra.mxu0 %v8129_v32  ;;  %v8142_v32 = vld [vmem:[#allocation24_spill] sm:$0xff] }
 0x484   :  { %2844 = vmatmul.bf16.gmra.mxu3 %v8130_v49  ;;  %v8143_v49 = vld [vmem:[#allocation171_spill] sm:$0xff] }
 0x485   :  { %v3141_v16 = vadd.f32 %v3140_v36, %v2972_v34 }
 0x486   :  { %4489 = vmatmul.msk.bf16.gmra.mxu1 %vm1446_vm0, %v8132_v58  ;;  %v2636_v52 = vpop.f32.mrf.mxu2 }
 0x487   :  { %v3288_v39 = vmax.f32 %v3141_v16, 0.0  ;;  %v2637_v13 = vadd.f32 %v2636_v52, %v2468_v55  ;;  %v2805_v9 = vpop.f32.mrf.mxu3  ;;  %v8145_v55 = vld [vmem:[#allocation172_spill] sm:$0xff]  ;;  %v8146_v52 = vld [vmem:[#allocation170_spill] sm:$0xff] }
 0x488   :  { %v2976_v40 = vpop.f32.mrf.mxu0  ;;  %v2478_v16 = vadd.f32 %v8145_v55, %v7294_v1  ;;  %v8158_v55 = vld [vmem:[#allocation33_spill] sm:$0xff] }
 0x489   :  { %v3388_v14 = vpack.c.bf16 %v3288_v39, %v3287_v48  ;;  %v2806_v51 = vadd.f32 %v2805_v9, %v2637_v13  ;;  %v8147_v48 = vld [vmem:[#allocation173_spill] sm:$0xff] }
 0x48a   :  { %v3295_v39 = vmax.f32 %v8147_v48, 0.0 }
 0x48b   :  { %v3145_v41 = vpop.f32.mrf.mxu1  ;;  %3452 = vst [vmem:[#allocation2 + $0xd8] sm:$0xff] %v3388_v14  ;;  %v2975_v24 = vadd.f32 %v2974_v20, %v2806_v51 }
 0x48d   :  { %v3144_v33 = vadd.f32 %v3143_v37, %v2975_v24 }
 0x48e   :  { %v2638_v38 = vpop.f32.mrf.mxu2 }
 0x48f   :  { %v3290_v8 = vmax.f32 %v3144_v33, 0.0  ;;  %v2639_v50 = vadd.f32 %v2638_v38, %v2470_v57  ;;  %v2807_v56 = vpop.f32.mrf.mxu3  ;;  %v8148_v57 = vld [vmem:[#allocation23_spill] sm:$0xff] }
 0x490   :  { %v2979_v26 = vpop.f32.mrf.mxu0  ;;  %v2480_v33 = vadd.f32 %v8148_v57, %v7294_v1 }
 0x491   :  { %v3389_v2 = vpack.c.bf16 %v3290_v8, %v3289_v23  ;;  %v2808_v28 = vadd.f32 %v2807_v56, %v2639_v50  ;;  %v8149_v23 = vld [vmem:[#allocation26_spill] sm:$0xff] }
 0x492   :  { %v3297_v8 = vmax.f32 %v8149_v23, 0.0 }
 0x493   :  { %v3148_v60 = vpop.f32.mrf.mxu1  ;;  %3453 = vst [vmem:[#allocation2 + $0xe0] sm:$0xff] %v3389_v2  ;;  %v2977_v62 = vadd.f32 %v2976_v40, %v2808_v28  ;;  %2680 = vmatmul.bf16.gmra.mxu2 %v8136_v29  ;;  %3018 = vmatmul.bf16.gmra.mxu0 %v6818_v47 }
 0x494   :  { %2849 = vmatmul.bf16.gmra.mxu3 %v6814_v46  ;;  %v8140_v46 = vld [vmem:[#allocation20_spill] sm:$0xff] }
 0x495   :  { %v3146_v3 = vadd.f32 %v3145_v41, %v2977_v62  ;;  %v2475_v10 = vadd.f32 %v8140_v46, %v7294_v1 }
 0x496   :  { %4490 = vmatmul.msk.bf16.gmra.mxu1 %vm1446_vm0, %v8138_v54  ;;  %v2641_v35 = vpop.f32.mrf.mxu2  ;;  %v8153_v54 = vld [vmem:[#allocation176_spill] sm:$0xff] }
 0x497   :  { %v3292_v21 = vmax.f32 %v3146_v3, 0.0  ;;  %v2642_v5 = vadd.f32 %v2641_v35, %v2473_v45  ;;  %v2810_v4 = vpop.f32.mrf.mxu3  ;;  %v8151_v45 = vld [vmem:[#allocation175_spill] sm:$0xff]  ;;  %v8152_v3 = vld [vmem:[#allocation29_spill] sm:$0xff]  ;;  %v2483_v35 = vadd.f32 %v8153_v54, %v7294_v1  ;;  %v8166_v54 = vld [vmem:[#allocation38_spill] sm:$0xff] }
 0x498   :  { %v2981_v36 = vpop.f32.mrf.mxu0 }
 0x499   :  { %v3390_v59 = vpack.c.bf16 %v3292_v21, %v3291_v30  ;;  %v2811_v43 = vadd.f32 %v2810_v4, %v2642_v5  ;;  %v8154_v30 = vld [vmem:[#allocation174_spill] sm:$0xff]  ;;  %v8155_v5 = vld [vmem:[#allocation177_spill] sm:$0xff] }
 0x49a   :  { %v3299_v4 = vmax.f32 %v8155_v5, 0.0 }
 0x49b   :  { %v3150_v7 = vpop.f32.mrf.mxu1  ;;  %3454 = vst [vmem:[#allocation2 + $0xe8] sm:$0xff] %v3390_v59  ;;  %v2980_v47 = vadd.f32 %v2979_v26, %v2811_v43 }
 0x49d   :  { %v3149_v25 = vadd.f32 %v3148_v60, %v2980_v47 }
 0x49e   :  { %v2643_v6 = vpop.f32.mrf.mxu2 }
 0x49f   :  { %v3294_v15 = vmax.f32 %v3149_v25, 0.0  ;;  %v2644_v11 = vadd.f32 %v2643_v6, %v2475_v10  ;;  %v2812_v20 = vpop.f32.mrf.mxu3  ;;  %v8156_v6 = vld [vmem:[#allocation27_spill] sm:$0xff] }
 0x4a0   :  { %v2984_v18 = vpop.f32.mrf.mxu0  ;;  %v2485_v63 = vadd.f32 %v8156_v6, %v7294_v1 }
 0x4a1   :  { %v3391_v19 = vpack.c.bf16 %v3294_v15, %v3293_v17  ;;  %v2813_v37 = vadd.f32 %v2812_v20, %v2644_v11  ;;  %v8157_v11 = vld [vmem:[#allocation31_spill] sm:$0xff] }
 0x4a2   :  { %v3301_v20 = vmax.f32 %v8157_v11, 0.0 }
 0x4a3   :  { %v3153_v34 = vpop.f32.mrf.mxu1  ;;  %3455 = vst [vmem:[#allocation2 + $0xf0] sm:$0xff] %v3391_v19  ;;  %v2982_v53 = vadd.f32 %v2981_v36, %v2813_v37  ;;  %2685 = vmatmul.bf16.gmra.mxu2 %v8142_v32  ;;  %3023 = vmatmul.bf16.gmra.mxu0 %v8143_v49 }
 0x4a4   :  { %2854 = vmatmul.bf16.gmra.mxu3 %v8144_v12 }
 0x4a5   :  { %v3151_v58 = vadd.f32 %v3150_v7, %v2982_v53 }
 0x4a6   :  { %4491 = vmatmul.msk.bf16.gmra.mxu1 %vm1446_vm0, %v8146_v52  ;;  %v2646_v22 = vpop.f32.mrf.mxu2  ;;  %v8161_v52 = vld [vmem:[#allocation180_spill] sm:$0xff] }
 0x4a7   :  { %v3296_v13 = vmax.f32 %v3151_v58, 0.0  ;;  %v2647_v9 = vadd.f32 %v2646_v22, %v2478_v16  ;;  %v2815_v40 = vpop.f32.mrf.mxu3  ;;  %v8159_v16 = vld [vmem:[#allocation179_spill] sm:$0xff]  ;;  %v8160_v58 = vld [vmem:[#allocation34_spill] sm:$0xff]  ;;  %v2488_v22 = vadd.f32 %v8161_v52, %v7294_v1 }
 0x4a8   :  { %v2986_v14 = vpop.f32.mrf.mxu0 }
 0x4a9   :  { %v3392_v51 = vpack.c.bf16 %v3296_v13, %v3295_v39  ;;  %v2816_v41 = vadd.f32 %v2815_v40, %v2647_v9  ;;  %v8162_v39 = vld [vmem:[#allocation178_spill] sm:$0xff]  ;;  %v8163_v9 = vld [vmem:[#allocation181_spill] sm:$0xff] }
 0x4aa   :  { %v3303_v40 = vmax.f32 %v8163_v9, 0.0 }
 0x4ab   :  { %v3155_v24 = vpop.f32.mrf.mxu1  ;;  %3456 = vst [vmem:[#allocation2 + $0xf8] sm:$0xff] %v3392_v51  ;;  %v2985_v27 = vadd.f32 %v2984_v18, %v2816_v41 }
 0x4ad   :  { %v3154_v38 = vadd.f32 %v3153_v34, %v2985_v27 }
 0x4ae   :  { %v2648_v44 = vpop.f32.mrf.mxu2 }
 0x4af   :  { %v3298_v50 = vmax.f32 %v3154_v38, 0.0  ;;  %v2649_v56 = vadd.f32 %v2648_v44, %v2480_v33  ;;  %v2817_v26 = vpop.f32.mrf.mxu3  ;;  %v8164_v44 = vld [vmem:[#allocation32_spill] sm:$0xff] }
 0x4b0   :  { %v2989_v2 = vpop.f32.mrf.mxu0  ;;  %v2490_v23 = vadd.f32 %v8164_v44, %v7294_v1 }
 0x4b1   :  { %v3393_v28 = vpack.c.bf16 %v3298_v50, %v3297_v8  ;;  %v2818_v60 = vadd.f32 %v2817_v26, %v2649_v56  ;;  %v8165_v56 = vld [vmem:[#allocation36_spill] sm:$0xff] }
 0x4b2   :  { %v3305_v26 = vmax.f32 %v8165_v56, 0.0 }
 0x4b3   :  { %v3158_v62 = vpop.f32.mrf.mxu1  ;;  %3457 = vst [vmem:[#allocation2 + $0x100] sm:$0xff] %v3393_v28  ;;  %v2987_v29 = vadd.f32 %v2986_v14, %v2818_v60  ;;  %2690 = vmatmul.bf16.gmra.mxu2 %v8150_v31  ;;  %3028 = vmatmul.bf16.gmra.mxu0 %v8151_v45 }
 0x4b4   :  { %2859 = vmatmul.bf16.gmra.mxu3 %v8152_v3 }
 0x4b5   :  { %v3156_v42 = vadd.f32 %v3155_v24, %v2987_v29 }
 0x4b6   :  { %4492 = vmatmul.msk.bf16.gmra.mxu1 %vm1446_vm0, %v8154_v30  ;;  %v2651_v21 = vpop.f32.mrf.mxu2 }
 0x4b7   :  { %v3300_v36 = vmax.f32 %v3156_v42, 0.0  ;;  %v2652_v59 = vadd.f32 %v2651_v21, %v2483_v35  ;;  %v2820_v43 = vpop.f32.mrf.mxu3  ;;  %v8167_v35 = vld [vmem:[#allocation182_spill] sm:$0xff]  ;;  %v8168_v21 = vld [vmem:[#allocation39_spill] sm:$0xff] }
 0x4b8   :  { %v2991_v7 = vpop.f32.mrf.mxu0  ;;  %v2493_v42 = vadd.f32 %v8167_v35, %v7294_v1  ;;  %v8182_v35 = vld [vmem:[#allocation49_spill] sm:$0xff] }
 0x4b9   :  { %v3394_v47 = vpack.c.bf16 %v3300_v36, %v3299_v4  ;;  %v2821_v46 = vadd.f32 %v2820_v43, %v2652_v59  ;;  %v8169_v4 = vld [vmem:[#allocation183_spill] sm:$0xff] }
 0x4ba   :  { %v3307_v36 = vmax.f32 %v8169_v4, 0.0 }
 0x4bb   :  { %v3160_v10 = vpop.f32.mrf.mxu1  ;;  %3458 = vst [vmem:[#allocation2 + $0x108] sm:$0xff] %v3394_v47  ;;  %v2990_v25 = vadd.f32 %v2989_v2, %v2821_v46 }
 0x4bd   :  { %v3159_v17 = vadd.f32 %v3158_v62, %v2990_v25 }
 0x4be   :  { %v2653_v15 = vpop.f32.mrf.mxu2 }
 0x4bf   :  { %v3302_v18 = vmax.f32 %v3159_v17, 0.0  ;;  %v2654_v19 = vadd.f32 %v2653_v15, %v2485_v63  ;;  %v2822_v37 = vpop.f32.mrf.mxu3  ;;  %v8171_v15 = vld [vmem:[#allocation41_spill] sm:$0xff] }
 0x4c0   :  { %v2994_v34 = vpop.f32.mrf.mxu0  ;;  %v3309_v11 = vmax.f32 %v8171_v15, 0.0 }
 0x4c1   :  { %v3395_v53 = vpack.c.bf16 %v3302_v18, %v3301_v20  ;;  %v2823_v32 = vadd.f32 %v2822_v37, %v2654_v19 }
 0x4c3   :  { %v3163_v49 = vpop.f32.mrf.mxu1  ;;  %3459 = vst [vmem:[#allocation2 + $0x110] sm:$0xff] %v3395_v53  ;;  %v2992_v12 = vadd.f32 %v2991_v7, %v2823_v32  ;;  %2695 = vmatmul.bf16.gmra.mxu2 %v8158_v55  ;;  %3033 = vmatmul.bf16.gmra.mxu0 %v8159_v16  ;;  %v8173_v55 = vld [vmem:[#allocation185_spill] sm:$0xff]  ;;  %v8174_v16 = vld [vmem:[#allocation44_spill] sm:$0xff] }
 0x4c4   :  { %2864 = vmatmul.bf16.gmra.mxu3 %v8160_v58  ;;  %v8175_v58 = vld [vmem:[#allocation186_spill] sm:$0xff] }
 0x4c5   :  { %v3161_v48 = vadd.f32 %v3160_v10, %v2992_v12  ;;  %v8172_v12 = vld [vmem:[#allocation43_spill] sm:$0xff]  ;;  %v2498_v52 = vadd.f32 %v8175_v58, %v7294_v1  ;;  %v8190_v58 = vld [vmem:[#allocation54_spill] sm:$0xff] }
 0x4c6   :  { %4493 = vmatmul.msk.bf16.gmra.mxu1 %vm1446_vm0, %v8162_v39  ;;  %v2656_v13 = vpop.f32.mrf.mxu2 }
 0x4c7   :  { %v3304_v14 = vmax.f32 %v3161_v48, 0.0  ;;  %v2657_v51 = vadd.f32 %v2656_v13, %v2488_v22  ;;  %v2825_v41 = vpop.f32.mrf.mxu3  ;;  %v8176_v48 = vld [vmem:[#allocation184_spill] sm:$0xff]  ;;  %v8177_v13 = vld [vmem:[#allocation187_spill] sm:$0xff] }
 0x4c8   :  { %v2996_v24 = vpop.f32.mrf.mxu0  ;;  %v3311_v9 = vmax.f32 %v8177_v13, 0.0 }
 0x4c9   :  { %v3396_v27 = vpack.c.bf16 %v3304_v14, %v3303_v40  ;;  %v2826_v57 = vadd.f32 %v2825_v41, %v2657_v51 }
 0x4cb   :  { %v3165_v33 = vpop.f32.mrf.mxu1  ;;  %3460 = vst [vmem:[#allocation2 + $0x118] sm:$0xff] %v3396_v27  ;;  %v2995_v38 = vadd.f32 %v2994_v34, %v2826_v57 }
 0x4cd   :  { %v3164_v8 = vadd.f32 %v3163_v49, %v2995_v38  ;;  %v8178_v38 = vld [vmem:[#allocation42_spill] sm:$0xff] }
 0x4ce   :  { %v2658_v50 = vpop.f32.mrf.mxu2  ;;  %v2500_v44 = vadd.f32 %v8178_v38, %v7294_v1 }
 0x4cf   :  { %v3306_v2 = vmax.f32 %v3164_v8, 0.0  ;;  %v2659_v28 = vadd.f32 %v2658_v50, %v2490_v23  ;;  %v2827_v60 = vpop.f32.mrf.mxu3  ;;  %v8179_v50 = vld [vmem:[#allocation46_spill] sm:$0xff] }
 0x4d0   :  { %v2999_v62 = vpop.f32.mrf.mxu0  ;;  %v3313_v56 = vmax.f32 %v8179_v50, 0.0 }
 0x4d1   :  { %v3397_v29 = vpack.c.bf16 %v3306_v2, %v3305_v26  ;;  %v2828_v31 = vadd.f32 %v2827_v60, %v2659_v28 }
 0x4d3   :  { %v3168_v45 = vpop.f32.mrf.mxu1  ;;  %3461 = vst [vmem:[#allocation2 + $0x120] sm:$0xff] %v3397_v29  ;;  %v2997_v3 = vadd.f32 %v2996_v24, %v2828_v31  ;;  %2700 = vmatmul.bf16.gmra.mxu2 %v8166_v54  ;;  %3038 = vmatmul.bf16.gmra.mxu0 %v6998_v61  ;;  %v8181_v54 = vld [vmem:[#allocation189_spill] sm:$0xff] }
 0x4d4   :  { %2869 = vmatmul.bf16.gmra.mxu3 %v6994_v0  ;;  %v8170_v0 = vld [vmem:[#allocation37_spill] sm:$0xff] }
 0x4d5   :  { %v3166_v30 = vadd.f32 %v3165_v33, %v2997_v3  ;;  %v2495_v6 = vadd.f32 %v8170_v0, %v7294_v1  ;;  %v8180_v3 = vld [vmem:[#allocation48_spill] sm:$0xff] }
 0x4d6   :  { %4494 = vmatmul.msk.bf16.gmra.mxu1 %vm1446_vm0, %v8168_v21  ;;  %v2661_v5 = vpop.f32.mrf.mxu2 }
 0x4d7   :  { %v3308_v59 = vmax.f32 %v3166_v30, 0.0  ;;  %v2662_v43 = vadd.f32 %v2661_v5, %v2493_v42  ;;  %v2830_v7 = vpop.f32.mrf.mxu3  ;;  %v8183_v42 = vld [vmem:[#allocation190_spill] sm:$0xff]  ;;  %v8184_v5 = vld [vmem:[#allocation188_spill] sm:$0xff] }
 0x4d8   :  { %v3001_v47 = vpop.f32.mrf.mxu0  ;;  %v2503_v30 = vadd.f32 %v8183_v42, %v7294_v1  ;;  %v8198_v42 = vld [vmem:[#allocation59_spill] sm:$0xff] }
 0x4d9   :  { %v3398_v46 = vpack.c.bf16 %v3308_v59, %v3307_v36  ;;  %v2831_v10 = vadd.f32 %v2830_v7, %v2662_v43  ;;  %v8185_v36 = vld [vmem:[#allocation191_spill] sm:$0xff] }
 0x4da   :  { %v3315_v59 = vmax.f32 %v8185_v36, 0.0 }
 0x4db   :  { %v3170_v25 = vpop.f32.mrf.mxu1  ;;  %3462 = vst [vmem:[#allocation2 + $0x128] sm:$0xff] %v3398_v46  ;;  %v3000_v61 = vadd.f32 %v2999_v62, %v2831_v10 }
 0x4dd   :  { %v3169_v63 = vadd.f32 %v3168_v45, %v3000_v61 }
 0x4de   :  { %v2663_v17 = vpop.f32.mrf.mxu2 }
 0x4df   :  { %v3310_v20 = vmax.f32 %v3169_v63, 0.0  ;;  %v2664_v18 = vadd.f32 %v2663_v17, %v2495_v6  ;;  %v2832_v19 = vpop.f32.mrf.mxu3  ;;  %v8186_v6 = vld [vmem:[#allocation47_spill] sm:$0xff] }
 0x4e0   :  { %v3004_v37 = vpop.f32.mrf.mxu0  ;;  %v2505_v63 = vadd.f32 %v8186_v6, %v7294_v1 }
 0x4e1   :  { %v3399_v34 = vpack.c.bf16 %v3310_v20, %v3309_v11  ;;  %v2833_v53 = vadd.f32 %v2832_v19, %v2664_v18  ;;  %v8187_v11 = vld [vmem:[#allocation51_spill] sm:$0xff] }
 0x4e2   :  { %v3317_v20 = vmax.f32 %v8187_v11, 0.0 }
 0x4e3   :  { %v3173_v32 = vpop.f32.mrf.mxu1  ;;  %3463 = vst [vmem:[#allocation2 + $0x130] sm:$0xff] %v3399_v34  ;;  %v3002_v49 = vadd.f32 %v3001_v47, %v2833_v53  ;;  %2705 = vmatmul.bf16.gmra.mxu2 %v8172_v12  ;;  %3043 = vmatmul.bf16.gmra.mxu0 %v8173_v55  ;;  %v8188_v55 = vld [vmem:[#allocation53_spill] sm:$0xff] }
 0x4e4   :  { %2874 = vmatmul.bf16.gmra.mxu3 %v8174_v16  ;;  %v8189_v16 = vld [vmem:[#allocation193_spill] sm:$0xff] }
 0x4e5   :  { %v3171_v22 = vadd.f32 %v3170_v25, %v3002_v49 }
 0x4e6   :  { %4495 = vmatmul.msk.bf16.gmra.mxu1 %vm1446_vm0, %v8176_v48  ;;  %v2666_v39 = vpop.f32.mrf.mxu2 }
 0x4e7   :  { %v3312_v40 = vmax.f32 %v3171_v22, 0.0  ;;  %v2667_v14 = vadd.f32 %v2666_v39, %v2498_v52  ;;  %v2835_v51 = vpop.f32.mrf.mxu3  ;;  %v8191_v52 = vld [vmem:[#allocation194_spill] sm:$0xff]  ;;  %v8192_v39 = vld [vmem:[#allocation192_spill] sm:$0xff] }
 0x4e8   :  { %v3006_v41 = vpop.f32.mrf.mxu0  ;;  %v2508_v22 = vadd.f32 %v8191_v52, %v7294_v1 }
 0x4e9   :  { %v3400_v24 = vpack.c.bf16 %v3312_v40, %v3311_v9  ;;  %v2836_v27 = vadd.f32 %v2835_v51, %v2667_v14  ;;  %v8193_v9 = vld [vmem:[#allocation195_spill] sm:$0xff] }
 0x4ea   :  { %v3319_v40 = vmax.f32 %v8193_v9, 0.0 }
 0x4eb   :  { %v3175_v57 = vpop.f32.mrf.mxu1  ;;  %3464 = vst [vmem:[#allocation2 + $0x138] sm:$0xff] %v3400_v24  ;;  %v3005_v33 = vadd.f32 %v3004_v37, %v2836_v27 }
 0x4ed   :  { %v3174_v23 = vadd.f32 %v3173_v32, %v3005_v33 }
 0x4ee   :  { %v2668_v8 = vpop.f32.mrf.mxu2 }
 0x4ef   :  { %v3314_v26 = vmax.f32 %v3174_v23, 0.0  ;;  %v2669_v2 = vadd.f32 %v2668_v8, %v2500_v44  ;;  %v2837_v28 = vpop.f32.mrf.mxu3  ;;  %v8194_v44 = vld [vmem:[#allocation52_spill] sm:$0xff] }
 0x4f0   :  { %v3009_v60 = vpop.f32.mrf.mxu0  ;;  %v2510_v23 = vadd.f32 %v8194_v44, %v7294_v1 }
 0x4f1   :  { %v3401_v62 = vpack.c.bf16 %v3314_v26, %v3313_v56  ;;  %v2838_v29 = vadd.f32 %v2837_v28, %v2669_v2  ;;  %v8195_v56 = vld [vmem:[#allocation56_spill] sm:$0xff] }
 0x4f2   :  { %v3321_v26 = vmax.f32 %v8195_v56, 0.0 }
 0x4f3   :  { %v3178_v31 = vpop.f32.mrf.mxu1  ;;  %3465 = vst [vmem:[#allocation2 + $0x140] sm:$0xff] %v3401_v62  ;;  %v3007_v45 = vadd.f32 %v3006_v41, %v2838_v29  ;;  %2710 = vmatmul.bf16.gmra.mxu2 %v8180_v3  ;;  %3048 = vmatmul.bf16.gmra.mxu0 %v8181_v54  ;;  %v8196_v54 = vld [vmem:[#allocation58_spill] sm:$0xff] }
 0x4f4   :  { %2879 = vmatmul.bf16.gmra.mxu3 %v8182_v35  ;;  %v8197_v35 = vld [vmem:[#allocation197_spill] sm:$0xff] }
 0x4f5   :  { %v3176_v21 = vadd.f32 %v3175_v57, %v3007_v45 }
 0x4f6   :  { %4496 = vmatmul.msk.bf16.gmra.mxu1 %vm1446_vm0, %v8184_v5  ;;  %v2671_v4 = vpop.f32.mrf.mxu2 }
 0x4f7   :  { %v3316_v43 = vmax.f32 %v3176_v21, 0.0  ;;  %v2672_v7 = vadd.f32 %v2671_v4, %v2503_v30  ;;  %v2840_v47 = vpop.f32.mrf.mxu3  ;;  %v8199_v30 = vld [vmem:[#allocation198_spill] sm:$0xff]  ;;  %v8200_v4 = vld [vmem:[#allocation196_spill] sm:$0xff] }
 0x4f8   :  { %v3011_v46 = vpop.f32.mrf.mxu0  ;;  %v2513_v21 = vadd.f32 %v8199_v30, %v7294_v1 }
 0x4f9   :  { %v3402_v10 = vpack.c.bf16 %v3316_v43, %v3315_v59  ;;  %v2841_v25 = vadd.f32 %v2840_v47, %v2672_v7  ;;  %v8201_v59 = vld [vmem:[#allocation199_spill] sm:$0xff] }
 0x4fa   :  { %v3323_v43 = vmax.f32 %v8201_v59, 0.0 }
 0x4fb   :  { %v3180_v61 = vpop.f32.mrf.mxu1  ;;  %3466 = vst [vmem:[#allocation2 + $0x148] sm:$0xff] %v3402_v10  ;;  %v3010_v0 = vadd.f32 %v3009_v60, %v2841_v25 }
 0x4fd   :  { %v3179_v17 = vadd.f32 %v3178_v31, %v3010_v0 }
 0x4fe   :  { %v2673_v15 = vpop.f32.mrf.mxu2 }
 0x4ff   :  { %v3318_v18 = vmax.f32 %v3179_v17, 0.0  ;;  %v2674_v19 = vadd.f32 %v2673_v15, %v2505_v63  ;;  %v2842_v37 = vpop.f32.mrf.mxu3  ;;  %v8202_v63 = vld [vmem:[#allocation57_spill] sm:$0xff] }
 0x500   :  { %v3014_v34 = vpop.f32.mrf.mxu0  ;;  %v2515_v17 = vadd.f32 %v8202_v63, %v7294_v1 }
 0x501   :  { %v3403_v53 = vpack.c.bf16 %v3318_v18, %v3317_v20  ;;  %v2843_v32 = vadd.f32 %v2842_v37, %v2674_v19  ;;  %v8203_v20 = vld [vmem:[#allocation61_spill] sm:$0xff] }
 0x502   :  { %v3325_v18 = vmax.f32 %v8203_v20, 0.0 }
 0x503   :  { %v3183_v49 = vpop.f32.mrf.mxu1  ;;  %3467 = vst [vmem:[#allocation2 + $0x150] sm:$0xff] %v3403_v53  ;;  %v3012_v12 = vadd.f32 %v3011_v46, %v2843_v32  ;;  %2715 = vmatmul.bf16.gmra.mxu2 %v8188_v55  ;;  %3053 = vmatmul.bf16.gmra.mxu0 %v8189_v16  ;;  %v8204_v16 = vld [vmem:[#allocation65_spill] sm:$0xff] }
 0x504   :  { %2884 = vmatmul.bf16.gmra.mxu3 %v8190_v58  ;;  %v2518_v58 = vadd.f32 %v8204_v16, %v7294_v1 }
 0x505   :  { %v3181_v48 = vadd.f32 %v3180_v61, %v3012_v12 }
 0x506   :  { %4497 = vmatmul.msk.bf16.gmra.mxu1 %vm1446_vm0, %v8192_v39  ;;  %v2676_v13 = vpop.f32.mrf.mxu2 }
 0x507   :  { %v3320_v14 = vmax.f32 %v3181_v48, 0.0  ;;  %v2677_v51 = vadd.f32 %v2676_v13, %v2508_v22  ;;  %v2845_v41 = vpop.f32.mrf.mxu3  ;;  %v8205_v48 = vld [vmem:[#allocation200_spill] sm:$0xff] }
 0x508   :  { %v3016_v24 = vpop.f32.mrf.mxu0  ;;  %v3327_v39 = vmax.f32 %v8205_v48, 0.0 }
 0x509   :  { %v3404_v27 = vpack.c.bf16 %v3320_v14, %v3319_v40  ;;  %v2846_v57 = vadd.f32 %v2845_v41, %v2677_v51 }
 0x50b   :  { %v3185_v33 = vpop.f32.mrf.mxu1  ;;  %3468 = vst [vmem:[#allocation2 + $0x158] sm:$0xff] %v3404_v27  ;;  %v3015_v38 = vadd.f32 %v3014_v34, %v2846_v57  ;;  %v8206_v57 = vld [vmem:[#allocation6_spill] sm:$0xff] }
 0x50d   :  { %v3184_v8 = vadd.f32 %v3183_v49, %v3015_v38 }
 0x50e   :  { %v2678_v50 = vpop.f32.mrf.mxu2 }
 0x50f   :  { %v3322_v2 = vmax.f32 %v3184_v8, 0.0  ;;  %v2679_v28 = vadd.f32 %v2678_v50, %v2510_v23  ;;  %v2847_v60 = vpop.f32.mrf.mxu3  ;;  %v8207_v23 = vld [vmem:[#allocation64_spill] sm:$0xff] }
 0x510   :  { %v3019_v62 = vpop.f32.mrf.mxu0  ;;  %v3329_v8 = vmax.f32 %v8207_v23, 0.0 }
 0x511   :  { %v3405_v29 = vpack.c.bf16 %v3322_v2, %v3321_v26  ;;  %v2848_v31 = vadd.f32 %v2847_v60, %v2679_v28 }
 0x513   :  { %v3188_v45 = vpop.f32.mrf.mxu1  ;;  %3469 = vst [vmem:[#allocation2 + $0x160] sm:$0xff] %v3405_v29  ;;  %v3017_v3 = vadd.f32 %v3016_v24, %v2848_v31  ;;  %2720 = vmatmul.bf16.gmra.mxu2 %v8196_v54  ;;  %3058 = vmatmul.bf16.gmra.mxu0 %v8197_v35  ;;  %v8208_v31 = vld [vmem:[#allocation62_spill] sm:$0xff]  ;;  %v8209_v35 = vld [vmem:[#allocation63_spill] sm:$0xff] }
 0x514   :  { %2889 = vmatmul.bf16.gmra.mxu3 %v8198_v42  ;;  %v3331_v42 = vmax.f32 %v8209_v35, 0.0 }
 0x515   :  { %v3186_v5 = vadd.f32 %v3185_v33, %v3017_v3  ;;  %v2520_v33 = vadd.f32 %v8206_v57, %v7294_v1 }
 0x516   :  { %4498 = vmatmul.msk.bf16.gmra.mxu1 %vm1446_vm0, %v8200_v4  ;;  %v2681_v36 = vpop.f32.mrf.mxu2 }
 0x517   :  { %v3324_v7 = vmax.f32 %v3186_v5, 0.0  ;;  %v2682_v47 = vadd.f32 %v2681_v36, %v2513_v21  ;;  %v2850_v46 = vpop.f32.mrf.mxu3 }
 0x518   :  { %v3021_v10 = vpop.f32.mrf.mxu0 }
 0x519   :  { %v3406_v25 = vpack.c.bf16 %v3324_v7, %v3323_v43  ;;  %v2851_v61 = vadd.f32 %v2850_v46, %v2682_v47  ;;  %v8210_v47 = vld [vmem:[#allocation66_spill] sm:$0xff] }
 0x51a   :  { %v2525_v46 = vadd.f32 %v8210_v47, %v7294_v1 }
 0x51b   :  { %v3190_v0 = vpop.f32.mrf.mxu1  ;;  %3470 = vst [vmem:[#allocation2 + $0x168] sm:$0xff] %v3406_v25  ;;  %v3020_v6 = vadd.f32 %v3019_v62, %v2851_v61  ;;  %v8211_v61 = vld [vmem:[#allocation70_spill] sm:$0xff] }
 0x51d   :  { %v3189_v15 = vadd.f32 %v3188_v45, %v3020_v6  ;;  %v2523_v45 = vadd.f32 %v8208_v31, %v7294_v1 }
 0x51e   :  { %v2683_v11 = vpop.f32.mrf.mxu2 }
 0x51f   :  { %v3326_v19 = vmax.f32 %v3189_v15, 0.0  ;;  %v2684_v37 = vadd.f32 %v2683_v11, %v2515_v17  ;;  %v2852_v34 = vpop.f32.mrf.mxu3 }
 0x520   :  { %v3024_v53 = vpop.f32.mrf.mxu0 }
 0x521   :  { %v3407_v32 = vpack.c.bf16 %v3326_v19, %v3325_v18  ;;  %v2853_v49 = vadd.f32 %v2852_v34, %v2684_v37  ;;  %v8212_v37 = vld [vmem:[#allocation8_spill] sm:$0xff] }
 0x522   :  { %v2528_v34 = vadd.f32 %v8212_v37, %v7294_v1 }
 0x523   :  { %v3193_v12 = vpop.f32.mrf.mxu1  ;;  %3471 = vst [vmem:[#allocation2 + $0x170] sm:$0xff] %v3407_v32  ;;  %v3022_v55 = vadd.f32 %v3021_v10, %v2853_v49  ;;  %v8213_v49 = vld [vmem:[#allocation69_spill] sm:$0xff] }
 0x525   :  { %v3191_v52 = vadd.f32 %v3190_v0, %v3022_v55  ;;  %v3333_v0 = vmax.f32 %v8211_v61, 0.0 }
 0x526   :  { %v2686_v22 = vpop.f32.mrf.mxu2 }
 0x527   :  { %v3328_v13 = vmax.f32 %v3191_v52, 0.0  ;;  %v2687_v9 = vadd.f32 %v2686_v22, %v2518_v58  ;;  %v2855_v40 = vpop.f32.mrf.mxu3 }
 0x528   :  { %v3026_v14 = vpop.f32.mrf.mxu0 }
 0x529   :  { %v3408_v51 = vpack.c.bf16 %v3328_v13, %v3327_v39  ;;  %v2856_v41 = vadd.f32 %v2855_v40, %v2687_v9  ;;  %v8214_v9 = vld [vmem:[#allocation67_spill] sm:$0xff] }
 0x52a   :  { %v2530_v40 = vadd.f32 %v8214_v9, %v7294_v1 }
 0x52b   :  { %v3195_v24 = vpop.f32.mrf.mxu1  ;;  %3472 = vst [vmem:[#allocation2 + $0x178] sm:$0xff] %v3408_v51  ;;  %v3025_v27 = vadd.f32 %v3024_v53, %v2856_v41  ;;  %v8215_v41 = vld [vmem:[#allocation68_spill] sm:$0xff] }
 0x52d   :  { %v3194_v38 = vadd.f32 %v3193_v12, %v3025_v27  ;;  %v3335_v12 = vmax.f32 %v8213_v49, 0.0 }
 0x52e   :  { %v2688_v44 = vpop.f32.mrf.mxu2 }
 0x52f   :  { %v3330_v50 = vmax.f32 %v3194_v38, 0.0  ;;  %v2689_v56 = vadd.f32 %v2688_v44, %v2520_v33  ;;  %v2857_v26 = vpop.f32.mrf.mxu3 }
 0x530   :  { %v3029_v2 = vpop.f32.mrf.mxu0 }
 0x531   :  { %v3409_v28 = vpack.c.bf16 %v3330_v50, %v3329_v8  ;;  %v2858_v60 = vadd.f32 %v2857_v26, %v2689_v56  ;;  %v8216_v56 = vld [vmem:[#allocation71_spill] sm:$0xff] }
 0x532   :  { %v2533_v26 = vadd.f32 %v8216_v56, %v7294_v1 }
 0x533   :  { %v3198_v62 = vpop.f32.mrf.mxu1  ;;  %3473 = vst [vmem:[#allocation2 + $0x180] sm:$0xff] %v3409_v28  ;;  %v3027_v29 = vadd.f32 %v3026_v14, %v2858_v60  ;;  %v8217_v60 = vld [vmem:[#allocation75_spill] sm:$0xff] }
 0x535   :  { %v3196_v3 = vadd.f32 %v3195_v24, %v3027_v29  ;;  %v3337_v24 = vmax.f32 %v8215_v41, 0.0 }
 0x536   :  { %v2691_v54 = vpop.f32.mrf.mxu2 }
 0x537   :  { %v3332_v30 = vmax.f32 %v3196_v3, 0.0  ;;  %v2692_v21 = vadd.f32 %v2691_v54, %v2523_v45  ;;  %v2860_v5 = vpop.f32.mrf.mxu3 }
 0x538   :  { %v3031_v4 = vpop.f32.mrf.mxu0 }
 0x539   :  { %v3410_v36 = vpack.c.bf16 %v3332_v30, %v3331_v42  ;;  %v2861_v59 = vadd.f32 %v2860_v5, %v2692_v21  ;;  %v8218_v21 = vld [vmem:[#allocation10_spill] sm:$0xff] }
 0x53a   :  { %v2535_v5 = vadd.f32 %v8218_v21, %v7294_v1 }
 0x53b   :  { %v3200_v43 = vpop.f32.mrf.mxu1  ;;  %3474 = vst [vmem:[#allocation2 + $0x188] sm:$0xff] %v3410_v36  ;;  %v3030_v7 = vadd.f32 %v3029_v2, %v2861_v59  ;;  %v8219_v59 = vld [vmem:[#allocation74_spill] sm:$0xff] }
 0x53d   :  { %v3199_v10 = vadd.f32 %v3198_v62, %v3030_v7  ;;  %v3339_v62 = vmax.f32 %v8217_v60, 0.0 }
 0x53e   :  { %v2693_v25 = vpop.f32.mrf.mxu2 }
 0x53f   :  { %v3334_v6 = vmax.f32 %v3199_v10, 0.0  ;;  %v2694_v63 = vadd.f32 %v2693_v25, %v2525_v46  ;;  %v2862_v17 = vpop.f32.mrf.mxu3 }
 0x540   :  { %v3034_v15 = vpop.f32.mrf.mxu0 }
 0x541   :  { %v3411_v11 = vpack.c.bf16 %v3334_v6, %v3333_v0  ;;  %v2863_v20 = vadd.f32 %v2862_v17, %v2694_v63  ;;  %v8220_v63 = vld [vmem:[#allocation72_spill] sm:$0xff] }
 0x542   :  { %v2538_v17 = vadd.f32 %v8220_v63, %v7294_v1 }
 0x543   :  { %v3203_v18 = vpop.f32.mrf.mxu1  ;;  %3475 = vst [vmem:[#allocation2 + $0x190] sm:$0xff] %v3411_v11  ;;  %v3032_v19 = vadd.f32 %v3031_v4, %v2863_v20  ;;  %v8221_v20 = vld [vmem:[#allocation73_spill] sm:$0xff] }
 0x545   :  { %v3201_v53 = vadd.f32 %v3200_v43, %v3032_v19  ;;  %v3341_v43 = vmax.f32 %v8219_v59, 0.0 }
 0x546   :  { %v2696_v32 = vpop.f32.mrf.mxu2 }
 0x547   :  { %v3336_v55 = vmax.f32 %v3201_v53, 0.0  ;;  %v2697_v16 = vadd.f32 %v2696_v32, %v2528_v34  ;;  %v2865_v58 = vpop.f32.mrf.mxu3 }
 0x548   :  { %v3036_v52 = vpop.f32.mrf.mxu0 }
 0x549   :  { %v3412_v22 = vpack.c.bf16 %v3336_v55, %v3335_v12  ;;  %v2866_v48 = vadd.f32 %v2865_v58, %v2697_v16  ;;  %v8222_v16 = vld [vmem:[#allocation76_spill] sm:$0xff] }
 0x54a   :  { %v2540_v58 = vadd.f32 %v8222_v16, %v7294_v1 }
 0x54b   :  { %v3205_v39 = vpop.f32.mrf.mxu1  ;;  %3476 = vst [vmem:[#allocation2 + $0x198] sm:$0xff] %v3412_v22  ;;  %v3035_v13 = vadd.f32 %v3034_v15, %v2866_v48  ;;  %v8223_v48 = vld [vmem:[#allocation80_spill] sm:$0xff] }
 0x54d   :  { %v3204_v14 = vadd.f32 %v3203_v18, %v3035_v13  ;;  %v3343_v18 = vmax.f32 %v8221_v20, 0.0 }
 0x54e   :  { %v2698_v51 = vpop.f32.mrf.mxu2 }
 0x54f   :  { %v3338_v27 = vmax.f32 %v3204_v14, 0.0  ;;  %v2699_v57 = vadd.f32 %v2698_v51, %v2530_v40  ;;  %v2867_v33 = vpop.f32.mrf.mxu3 }
 0x550   :  { %v3039_v38 = vpop.f32.mrf.mxu0 }
 0x551   :  { %v3413_v44 = vpack.c.bf16 %v3338_v27, %v3337_v24  ;;  %v2868_v23 = vadd.f32 %v2867_v33, %v2699_v57  ;;  %v8224_v57 = vld [vmem:[#allocation12_spill] sm:$0xff] }
 0x552   :  { %v2543_v33 = vadd.f32 %v8224_v57, %v7294_v1 }
 0x553   :  { %v3208_v8 = vpop.f32.mrf.mxu1  ;;  %3477 = vst [vmem:[#allocation2 + $0x1a0] sm:$0xff] %v3413_v44  ;;  %v3037_v50 = vadd.f32 %v3036_v52, %v2868_v23  ;;  %v8225_v23 = vld [vmem:[#allocation79_spill] sm:$0xff] }
 0x555   :  { %v3206_v2 = vadd.f32 %v3205_v39, %v3037_v50  ;;  %v3345_v39 = vmax.f32 %v8223_v48, 0.0 }
 0x556   :  { %v2701_v28 = vpop.f32.mrf.mxu2 }
 0x557   :  { %v3340_v29 = vmax.f32 %v3206_v2, 0.0  ;;  %v2702_v31 = vadd.f32 %v2701_v28, %v2533_v26  ;;  %v2870_v45 = vpop.f32.mrf.mxu3 }
 0x558   :  { %v3041_v3 = vpop.f32.mrf.mxu0 }
 0x559   :  { %v3414_v54 = vpack.c.bf16 %v3340_v29, %v3339_v62  ;;  %v2871_v35 = vadd.f32 %v2870_v45, %v2702_v31  ;;  %v8226_v31 = vld [vmem:[#allocation77_spill] sm:$0xff] }
 0x55a   :  { %v2545_v45 = vadd.f32 %v8226_v31, %v7294_v1 }
 0x55b   :  { %v3210_v42 = vpop.f32.mrf.mxu1  ;;  %3478 = vst [vmem:[#allocation2 + $0x1a8] sm:$0xff] %v3414_v54  ;;  %v3040_v30 = vadd.f32 %v3039_v38, %v2871_v35  ;;  %v8227_v35 = vld [vmem:[#allocation78_spill] sm:$0xff] }
 0x55d   :  { %v3209_v4 = vadd.f32 %v3208_v8, %v3040_v30  ;;  %v3347_v8 = vmax.f32 %v8225_v23, 0.0 }
 0x55e   :  { %v2703_v36 = vpop.f32.mrf.mxu2 }
 0x55f   :  { %v3342_v7 = vmax.f32 %v3209_v4, 0.0  ;;  %v2704_v47 = vadd.f32 %v2703_v36, %v2535_v5  ;;  %v2872_v46 = vpop.f32.mrf.mxu3 }
 0x560   :  { %v3044_v10 = vpop.f32.mrf.mxu0 }
 0x561   :  { %v3415_v25 = vpack.c.bf16 %v3342_v7, %v3341_v43  ;;  %v2873_v61 = vadd.f32 %v2872_v46, %v2704_v47  ;;  %v8228_v7 = vld [vmem:[#allocation81_spill] sm:$0xff] }
 0x562   :  { %v2548_v47 = vadd.f32 %v8228_v7, %v7294_v1 }
 0x563   :  { %v3213_v0 = vpop.f32.mrf.mxu1  ;;  %3479 = vst [vmem:[#allocation2 + $0x1b0] sm:$0xff] %v3415_v25  ;;  %v3042_v6 = vadd.f32 %v3041_v3, %v2873_v61  ;;  %v8229_v61 = vld [vmem:[#allocation85_spill] sm:$0xff] }
 0x565   :  { %v3211_v15 = vadd.f32 %v3210_v42, %v3042_v6  ;;  %v3349_v42 = vmax.f32 %v8227_v35, 0.0 }
 0x566   :  { %v2706_v11 = vpop.f32.mrf.mxu2 }
 0x567   :  { %v3344_v19 = vmax.f32 %v3211_v15, 0.0  ;;  %v2707_v37 = vadd.f32 %v2706_v11, %v2538_v17  ;;  %v2875_v34 = vpop.f32.mrf.mxu3 }
 0x568   :  { %v3046_v53 = vpop.f32.mrf.mxu0 }
 0x569   :  { %v3416_v32 = vpack.c.bf16 %v3344_v19, %v3343_v18  ;;  %v2876_v49 = vadd.f32 %v2875_v34, %v2707_v37  ;;  %v8230_v18 = vld [vmem:[#allocation14_spill] sm:$0xff] }
 0x56a   :  { %v2550_v19 = vadd.f32 %v8230_v18, %v7294_v1 }
 0x56b   :  { %v3215_v12 = vpop.f32.mrf.mxu1  ;;  %3480 = vst [vmem:[#allocation2 + $0x1b8] sm:$0xff] %v3416_v32  ;;  %v3045_v55 = vadd.f32 %v3044_v10, %v2876_v49  ;;  %v8231_v32 = vld [vmem:[#allocation84_spill] sm:$0xff] }
 0x56c   :  { %v3353_v49 = vmax.f32 %v8231_v32, 0.0 }
 0x56d   :  { %v3214_v52 = vadd.f32 %v3213_v0, %v3045_v55  ;;  %v3351_v0 = vmax.f32 %v8229_v61, 0.0 }
 0x56e   :  { %v2708_v22 = vpop.f32.mrf.mxu2 }
 0x56f   :  { %v3346_v13 = vmax.f32 %v3214_v52, 0.0  ;;  %v2709_v9 = vadd.f32 %v2708_v22, %v2540_v58  ;;  %v2877_v40 = vpop.f32.mrf.mxu3 }
 0x570   :  { %v3049_v14 = vpop.f32.mrf.mxu0 }
 0x571   :  { %v3417_v51 = vpack.c.bf16 %v3346_v13, %v3345_v39  ;;  %v2878_v41 = vadd.f32 %v2877_v40, %v2709_v9  ;;  %v8232_v39 = vld [vmem:[#allocation82_spill] sm:$0xff] }
 0x572   :  { %v2553_v13 = vadd.f32 %v8232_v39, %v7294_v1 }
 0x573   :  { %v3218_v24 = vpop.f32.mrf.mxu1  ;;  %3481 = vst [vmem:[#allocation2 + $0x1c0] sm:$0xff] %v3417_v51  ;;  %v3047_v27 = vadd.f32 %v3046_v53, %v2878_v41 }
 0x575   :  { %v3216_v38 = vadd.f32 %v3215_v12, %v3047_v27 }
 0x576   :  { %v2711_v44 = vpop.f32.mrf.mxu2 }
 0x577   :  { %v3348_v50 = vmax.f32 %v3216_v38, 0.0  ;;  %v2712_v56 = vadd.f32 %v2711_v44, %v2543_v33  ;;  %v2880_v26 = vpop.f32.mrf.mxu3 }
 0x578   :  { %v3051_v60 = vpop.f32.mrf.mxu0 }
 0x579   :  { %v3418_v2 = vpack.c.bf16 %v3348_v50, %v3347_v8  ;;  %v2881_v28 = vadd.f32 %v2880_v26, %v2712_v56  ;;  %v8234_v8 = vld [vmem:[#allocation86_spill] sm:$0xff] }
 0x57a   :  { %v2555_v50 = vadd.f32 %v8234_v8, %v7294_v1  ;;  %v8236_v1 = vld [vmem:[#allocation16_spill] sm:$0xff] }
 0x57b   :  { %3482 = vst [vmem:[#allocation2 + $0x1c8] sm:$0xff] %v3418_v2  ;;  %v3050_v62 = vadd.f32 %v3049_v14, %v2881_v28  ;;  %v3220_v29 = vpop.f32.mrf.mxu1  ;;  %v8233_v14 = vld [vmem:[#allocation83_spill] sm:$0xff]  ;;  %v8235_v2 = vld [vmem:[#allocation90_spill] sm:$0xff] }
 0x57c   :  { %v3355_v51 = vmax.f32 %v8233_v14, 0.0  ;;  %v3357_v28 = vmax.f32 %v8235_v2, 0.0 }
 0x57d   :  { %v3219_v3 = vadd.f32 %v3218_v24, %v3050_v62 }
 0x57e   :  { %v2713_v54 = vpop.f32.mrf.mxu2 }
 0x57f   :  { %v3350_v30 = vmax.f32 %v3219_v3, 0.0  ;;  %v2714_v21 = vadd.f32 %v2713_v54, %v2545_v45  ;;  %v2882_v5 = vpop.f32.mrf.mxu3 }
 0x580   :  { %v3054_v43 = vpop.f32.mrf.mxu0 }
 0x581   :  { %v3419_v4 = vpack.c.bf16 %v3350_v30, %v3349_v42  ;;  %v2883_v36 = vadd.f32 %v2882_v5, %v2714_v21  ;;  %v3359_v30 = vmax.f32 %v8236_v1, 0.0 }
 0x583   :  { %3483 = vst [vmem:[#allocation2 + $0x1d0] sm:$0xff] %v3419_v4  ;;  %v3052_v59 = vadd.f32 %v3051_v60, %v2883_v36  ;;  %v3223_v10 = vpop.f32.mrf.mxu1 }
 0x585   :  { %v3221_v46 = vadd.f32 %v3220_v29, %v3052_v59 }
 0x586   :  { %v2716_v25 = vpop.f32.mrf.mxu2 }
 0x587   :  { %v3352_v6 = vmax.f32 %v3221_v46, 0.0  ;;  %v2717_v63 = vadd.f32 %v2716_v25, %v2548_v47  ;;  %v2885_v17 = vpop.f32.mrf.mxu3 }
 0x588   :  { %v3056_v34 = vpop.f32.mrf.mxu0 }
 0x589   :  { %v3420_v15 = vpack.c.bf16 %v3352_v6, %v3351_v0  ;;  %v2886_v11 = vadd.f32 %v2885_v17, %v2717_v63 }
 0x58b   :  { %3484 = vst [vmem:[#allocation2 + $0x1d8] sm:$0xff] %v3420_v15  ;;  %v3055_v20 = vadd.f32 %v3054_v43, %v2886_v11  ;;  %v3225_v58 = vpop.f32.mrf.mxu1 }
 0x58d   :  { %v3224_v37 = vadd.f32 %v3223_v10, %v3055_v20 }
 0x58e   :  { %v2718_v53 = vpop.f32.mrf.mxu2 }
 0x58f   :  { %v3354_v12 = vmax.f32 %v3224_v37, 0.0  ;;  %v2719_v55 = vadd.f32 %v2718_v53, %v2550_v19  ;;  %v2887_v16 = vpop.f32.mrf.mxu3 }
 0x590   :  { %v3059_v57 = vpop.f32.mrf.mxu0 }
 0x591   :  { %v3421_v52 = vpack.c.bf16 %v3354_v12, %v3353_v49  ;;  %v2888_v22 = vadd.f32 %v2887_v16, %v2719_v55 }
 0x593   :  { %3485 = vst [vmem:[#allocation2 + $0x1e0] sm:$0xff] %v3421_v52  ;;  %v3057_v48 = vadd.f32 %v3056_v34, %v2888_v22  ;;  %v3228_v44 = vpop.f32.mrf.mxu1 }
 0x595   :  { %v3226_v9 = vadd.f32 %v3225_v58, %v3057_v48 }
 0x596   :  { %v2721_v40 = vpop.f32.mrf.mxu2 }
 0x597   :  { %v3356_v41 = vmax.f32 %v3226_v9, 0.0  ;;  %v2722_v24 = vadd.f32 %v2721_v40, %v2553_v13  ;;  %v2890_v27 = vpop.f32.mrf.mxu3 }
 0x598   :  { %v3061_v3 = vpop.f32.mrf.mxu0 }
 0x599   :  { %v3422_v33 = vpack.c.bf16 %v3356_v41, %v3355_v51  ;;  %v2891_v38 = vadd.f32 %v2890_v27, %v2722_v24 }
 0x59b   :  { %3486 = vst [vmem:[#allocation2 + $0x1e8] sm:$0xff] %v3422_v33  ;;  %v3060_v23 = vadd.f32 %v3059_v57, %v2891_v38  ;;  %v3230_v35 = vpop.f32.mrf.mxu1 }
 0x59d   :  { %v3229_v56 = vadd.f32 %v3228_v44, %v3060_v23 }
 0x59e   :  { %v2723_v26 = vpop.f32.mrf.mxu2 }
 0x59f   :  { %v3358_v60 = vmax.f32 %v3229_v56, 0.0  ;;  %v2724_v62 = vadd.f32 %v2723_v26, %v2555_v50  ;;  %v2892_v29 = vpop.f32.mrf.mxu3 }
 0x5a1   :  { %v3423_v31 = vpack.c.bf16 %v3358_v60, %v3357_v28  ;;  %v2893_v45 = vadd.f32 %v2892_v29, %v2724_v62 }
 0x5a3   :  { %3487 = vst [vmem:[#allocation2 + $0x1f0] sm:$0xff] %v3423_v31  ;;  %v3062_v54 = vadd.f32 %v3061_v3, %v2893_v45 }
 0x5a5   :  { %v3231_v42 = vadd.f32 %v3230_v35, %v3062_v54 }
 0x5a7   :  { %v3360_v21 = vmax.f32 %v3231_v42, 0.0 }
 0x5a9   :  { %v3424_v5 = vpack.c.bf16 %v3360_v21, %v3359_v30 }
 0x5ab   :  { %3488 = vst [vmem:[#allocation2 + $0x1f8] sm:$0xff] %v3424_v5 }
 0x5ac   :  { %3501 = dma.vmem_to_hbm [thread:$0]  %s3494_s23, 8192, %s3496_s26, [#allocation3], %s4778_s27, %s4778_s27, %s4779_s28  }
 0x5ad   :  { %4775 = dma.done.wait [#allocation3], 8192  }
 0x5ae   :  { %4776 = vsyncadd [#allocation3], 4294959104 }
 0x5af   :  { %3506 = vsyncpa [#allocation3], 1 }

</bundles_post_ra>
